<compile_context>
chip_gen: v7x
topology: tpu7x:2x2x1
jax: 0.10.0
libtpu: 0.0.40
codegen_flags: <defaults>
</compile_context>

<pallas_src>
import functools

import jax
import jax.numpy as jnp
from jax.experimental import pallas as pl
from jax.experimental.pallas import tpu as pltpu

INPUTS_SIZE = 33 * 33        # 1089
H1 = 512
H2 = 256
OUT = 1


def _mlp_kernel(x_ref, w1_ref, b1_ref, w2_ref, b2_ref, w3_ref, b3_ref, o_ref):
    # fc1 + relu on the MXU: bf16 operands, f32 accumulation.  The bf16 casts are VPU
    # filler that hides under the mem-bound step (the x tile DMA dominates).
    x = x_ref[...].astype(jnp.bfloat16)                         # (bt, 1089)
    w1 = w1_ref[...].astype(jnp.bfloat16)                       # (1089, 512)
    h1 = jnp.dot(x, w1, preferred_element_type=jnp.float32)     # (bt, 512) f32
    h1 = jnp.maximum(h1 + b1_ref[...], 0.0)

    # fc2 + relu.
    w2 = w2_ref[...].astype(jnp.bfloat16)                       # (512, 256)
    h2 = jnp.dot(h1.astype(jnp.bfloat16), w2,
                 preferred_element_type=jnp.float32)            # (bt, 256) f32
    h2 = jnp.maximum(h2 + b2_ref[...], 0.0)

    # fc3: contract w3_row (1, 256) against h2's feature dim (same orientation as
    # q @ k^T) so the result lands lane-major as (1, bt) -- a lane-dense, unmasked
    # store with no broadcast padding and no relayout.  Kept in f32 (tiny matmul).
    o = jax.lax.dot_general(w3_ref[...], h2, (((1,), (1,)), ((), ())),
                            preferred_element_type=jnp.float32)  # (1, bt)
    o_ref[...] = (o + b3_ref[0]).astype(o_ref.dtype)


def _preferred_tile():
    try:
        kind = jax.devices()[0].device_kind.lower()
    except Exception:
        kind = ""
    return 1024 if any(t in kind for t in ("v6", "v7", "7x")) else 512


def _pick_batch_tile(B):
    """Batch tile: multiple of 128 (lane-aligned output blocks), capped by the
    per-generation preference, and sized so the grid has >= 2 steps whenever the
    batch allows it (v7x megacore)."""
    pref = _preferred_tile()
    half = -(-B // 2)                      # ceil(B / 2)
    half128 = -(-half // 128) * 128        # round up to a lane multiple
    return max(128, min(pref, half128))


@functools.partial(jax.jit, static_argnames=("batch_tile",))
def _forward(x, w1, b1, w2, b2, w3, b3, *, batch_tile):
    B, F = x.shape
    assert F == INPUTS_SIZE

    # Only the batch dim is (optionally) padded; the feature dim stays 1089 and is
    # padded internally by Mosaic (no wrapper materialization pass).
    B_pad = -(-B // batch_tile) * batch_tile
    if B_pad != B:
        x = jnp.pad(x, ((0, B_pad - B), (0, 0)))

    b1_row = b1.reshape(1, H1)
    b2_row = b2.reshape(1, H2)
    w3_row = w3.reshape(1, H2)             # (256, 1) -> (1, 256)
    b3_s = b3.reshape(1)                   # SMEM scalar

    grid = (B_pad // batch_tile,)
    const = lambda i: (0, 0)               # weights / biases: same full block each step

    out = pl.pallas_call(
        _mlp_kernel,
        out_shape=jax.ShapeDtypeStruct((1, B_pad), jnp.float32),
        grid_spec=pltpu.PrefetchScalarGridSpec(
            num_scalar_prefetch=0,
            grid=grid,
            in_specs=[
                pl.BlockSpec((batch_tile, F), lambda i: (i, 0)),   # x   (f32, unpadded K)
                pl.BlockSpec((F, H1), const),                      # w1  (f32)
                pl.BlockSpec((1, H1), const),                      # b1  (f32)
                pl.BlockSpec((H1, H2), const),                     # w2  (f32)
                pl.BlockSpec((1, H2), const),                      # b2  (f32)
                pl.BlockSpec((1, H2), const),                      # w3 row (f32)
                pl.BlockSpec(memory_space=pltpu.MemorySpace.SMEM), # b3 scalar
            ],
            out_specs=pl.BlockSpec((1, batch_tile), lambda i: (0, i)),
        ),
        compiler_params=pltpu.CompilerParams(
            dimension_semantics=("parallel",),       # shards the batch grid over 2 TCs on v7x
            vmem_limit_bytes=40 * 1024 * 1024),      # v5e scoped default (16 MiB) is too low
    )(x, w1, b1_row, w2, b2_row, w3_row, b3_s)

    # (1, B_pad) -> (B, 1); padded rows (zeros in, ReLU(bias) out) are dropped here.
    return out.reshape(B_pad, 1)[:B]


def rubik_cube_net(x, w1, b1, w2, b2, w3, b3, *, batch_tile=None):
    if batch_tile is None:
        batch_tile = _pick_batch_tile(x.shape[0])
    return _forward(x, w1, b1, w2, b2, w3, b3, batch_tile=batch_tile)


def init_params(key):
    """Deterministic PyTorch-Linear-style init (uniform +-1/sqrt(fan_in));
    weights stored as (in, out), biases as (1, out)."""
    ks = jax.random.split(key, 6)

    def lin(kw, kb, fan_in, fan_out):
        bound = 1.0 / jnp.sqrt(fan_in)
        w = jax.random.uniform(kw, (fan_in, fan_out), jnp.float32, -bound, bound)
        b = jax.random.uniform(kb, (1, fan_out), jnp.float32, -bound, bound)
        return w, b

    w1, b1 = lin(ks[0], ks[1], INPUTS_SIZE, H1)
    w2, b2 = lin(ks[2], ks[3], H1, H2)
    w3, b3 = lin(ks[4], ks[5], H2, OUT)
    return w1, b1, w2, b2, w3, b3


def _reference_f32(x, w1, b1, w2, b2, w3, b3):
    h = jnp.maximum(x @ w1 + b1, 0.0)
    h = jnp.maximum(h @ w2 + b2, 0.0)
    return h @ w3 + b3


def _reference_bf16(x, w1, b1, w2, b2, w3, b3):
    """Matches the kernel's precision: bf16 matmul inputs, f32 accumulate, f32 fc3."""
    h = jnp.dot(x.astype(jnp.bfloat16), w1.astype(jnp.bfloat16),
                preferred_element_type=jnp.float32)
    h = jnp.maximum(h + b1, 0.0)
    h = jnp.dot(h.astype(jnp.bfloat16), w2.astype(jnp.bfloat16),
                preferred_element_type=jnp.float32)
    h = jnp.maximum(h + b2, 0.0)
    return jnp.dot(h, w3, preferred_element_type=jnp.float32) + b3


if __name__ == "__main__":
    key = jax.random.PRNGKey(0)
    k_x, k_x2, k_p = jax.random.split(key, 3)
    params = init_params(k_p)

    # Small demo batch (padded up to one 128-row tile inside the wrapper).
    B = 8
    x = jax.random.normal(k_x, (B, INPUTS_SIZE), jnp.float32)
    out = jax.block_until_ready(rubik_cube_net(x, *params))
    assert out.shape == (B, OUT)
    assert jnp.allclose(out, _reference_bf16(x, *params), atol=1e-2, rtol=1e-2), \
        "mismatch vs bf16-matched reference"
    assert jnp.allclose(out, _reference_f32(x, *params), atol=5e-2, rtol=5e-2), \
        "mismatch vs f32 reference"

    # Second check: batch that is not a tile multiple -> multi-step grid + batch padding.
    B2 = 1000
    x2 = jax.random.normal(k_x2, (B2, INPUTS_SIZE), jnp.float32)
    out2 = jax.block_until_ready(rubik_cube_net(x2, *params))
    assert out2.shape == (B2, OUT)
    assert jnp.allclose(out2, _reference_bf16(x2, *params), atol=1e-2, rtol=1e-2), \
        "mismatch vs bf16-matched reference (multi-tile grid)"

    print("KERNEL_OK")
</pallas_src>

<mosaic_0001>
module attributes {stable_mosaic.version = 11 : i64} {
  func.func @_mlp_kernel(%arg0: i32, %arg1: memref<128x1089xf32, #tpu.memory_space<vmem>>, %arg2: memref<1089x512xf32, #tpu.memory_space<vmem>>, %arg3: memref<1x512xf32, #tpu.memory_space<vmem>>, %arg4: memref<512x256xf32, #tpu.memory_space<vmem>>, %arg5: memref<1x256xf32, #tpu.memory_space<vmem>>, %arg6: memref<1x256xf32, #tpu.memory_space<vmem>>, %arg7: memref<1xf32, #tpu.memory_space<smem>>, %arg8: memref<1x128xf32, #tpu.memory_space<vmem>>) attributes {dimension_semantics = [#tpu.dimension_semantics<parallel>], iteration_bounds = array<i64: 1>, scalar_prefetch = 0 : i64, scratch_operands = 0 : i64, tpu.core_type = #tpu.core_type<tc>, window_params = [{transform_indices = @transform_0, window_bounds = array<i64: 128, 1089>}, {pipeline_mode = #tpu.pipeline_mode<synchronous>, transform_indices = @transform_1, window_bounds = array<i64: 1089, 512>}, {pipeline_mode = #tpu.pipeline_mode<synchronous>, transform_indices = @transform_2, window_bounds = array<i64: 1, 512>}, {pipeline_mode = #tpu.pipeline_mode<synchronous>, transform_indices = @transform_3, window_bounds = array<i64: 512, 256>}, {pipeline_mode = #tpu.pipeline_mode<synchronous>, transform_indices = @transform_4, window_bounds = array<i64: 1, 256>}, {pipeline_mode = #tpu.pipeline_mode<synchronous>, transform_indices = @transform_5, window_bounds = array<i64: 1, 256>}, {transform_indices = @transform_6, window_bounds = array<i64: 1>}, {transform_indices = @transform_7, window_bounds = array<i64: 1, 128>}]} {
    %c0 = arith.constant 0 : index
    %c0_0 = arith.constant 0 : index
    %0 = vector.load %arg1[%c0, %c0_0] : memref<128x1089xf32, #tpu.memory_space<vmem>>, vector<128x1089xf32>
    %1 = arith.truncf %0 : vector<128x1089xf32> to vector<128x1089xbf16>
    %c0_1 = arith.constant 0 : index
    %c0_2 = arith.constant 0 : index
    %2 = vector.load %arg2[%c0_1, %c0_2] : memref<1089x512xf32, #tpu.memory_space<vmem>>, vector<1089x512xf32>
    %3 = arith.truncf %2 : vector<1089x512xf32> to vector<1089x512xbf16>
    %cst = arith.constant dense<0.000000e+00> : vector<128x512xf32>
    %4 = tpu.matmul %1, %3, %cst {dimension_numbers = #tpu.dot_dimension_numbers<[1], [0], [0], [1], [0, 0, 1, 1], [], []>} : vector<128x1089xbf16>, vector<1089x512xbf16>, vector<128x512xf32> -> vector<128x512xf32>
    %c0_3 = arith.constant 0 : index
    %c0_4 = arith.constant 0 : index
    %5 = vector.load %arg3[%c0_3, %c0_4] : memref<1x512xf32, #tpu.memory_space<vmem>>, vector<1x512xf32>
    %6 = vector.broadcast %5 : vector<1x512xf32> to vector<128x512xf32>
    %7 = arith.addf %4, %6 : vector<128x512xf32>
    %cst_5 = arith.constant 0.000000e+00 : f32
    %8 = vector.broadcast %cst_5 : f32 to vector<128x512xf32>
    %9 = arith.maximumf %7, %8 : vector<128x512xf32>
    %c0_6 = arith.constant 0 : index
    %c0_7 = arith.constant 0 : index
    %10 = vector.load %arg4[%c0_6, %c0_7] : memref<512x256xf32, #tpu.memory_space<vmem>>, vector<512x256xf32>
    %11 = arith.truncf %10 : vector<512x256xf32> to vector<512x256xbf16>
    %12 = arith.truncf %9 : vector<128x512xf32> to vector<128x512xbf16>
    %cst_8 = arith.constant dense<0.000000e+00> : vector<128x256xf32>
    %13 = tpu.matmul %12, %11, %cst_8 {dimension_numbers = #tpu.dot_dimension_numbers<[1], [0], [0], [1], [0, 0, 1, 1], [], []>} : vector<128x512xbf16>, vector<512x256xbf16>, vector<128x256xf32> -> vector<128x256xf32>
    %c0_9 = arith.constant 0 : index
    %c0_10 = arith.constant 0 : index
    %14 = vector.load %arg5[%c0_9, %c0_10] : memref<1x256xf32, #tpu.memory_space<vmem>>, vector<1x256xf32>
    %15 = vector.broadcast %14 : vector<1x256xf32> to vector<128x256xf32>
    %16 = arith.addf %13, %15 : vector<128x256xf32>
    %cst_11 = arith.constant 0.000000e+00 : f32
    %17 = vector.broadcast %cst_11 : f32 to vector<128x256xf32>
    %18 = arith.maximumf %16, %17 : vector<128x256xf32>
    %c0_12 = arith.constant 0 : index
    %c0_13 = arith.constant 0 : index
    %19 = vector.load %arg6[%c0_12, %c0_13] : memref<1x256xf32, #tpu.memory_space<vmem>>, vector<1x256xf32>
    %cst_14 = arith.constant dense<0.000000e+00> : vector<1x128xf32>
    %20 = tpu.matmul %19, %18, %cst_14 {dimension_numbers = #tpu.dot_dimension_numbers<[1], [1], [0], [0], [0, 0, 1, 0], [], []>} : vector<1x256xf32>, vector<128x256xf32>, vector<1x128xf32> -> vector<1x128xf32>
    %c0_15 = arith.constant 0 : index
    %21 = memref.load %arg7[%c0_15] : memref<1xf32, #tpu.memory_space<smem>>
    %22 = vector.broadcast %21 : f32 to vector<1x128xf32>
    %23 = arith.addf %20, %22 : vector<1x128xf32>
    %c0_16 = arith.constant 0 : index
    %c0_17 = arith.constant 0 : index
    %24 = vector.load %arg8[%c0_16, %c0_17] : memref<1x128xf32, #tpu.memory_space<vmem>>, vector<1x128xf32>
    tpu.vector_store %arg8[%c0_16, %c0_17], %23 {strides = array<i32>} : memref<1x128xf32, #tpu.memory_space<vmem>>, vector<1x128xf32>,
    return
  }
  func.func @transform_0(%arg0: i32) -> (i32, i32) {
    %c0_i32 = arith.constant 0 : i32
    %c0_i32_0 = arith.constant 0 : i32
    return %arg0, %c0_i32 : i32, i32
  }
  func.func @transform_1(%arg0: i32) -> (i32, i32) {
    %c0_i32 = arith.constant 0 : i32
    %c0_i32_0 = arith.constant 0 : i32
    %c0_i32_1 = arith.constant 0 : i32
    return %c0_i32, %c0_i32_0 : i32, i32
  }
  func.func @transform_2(%arg0: i32) -> (i32, i32) {
    %c0_i32 = arith.constant 0 : i32
    %c0_i32_0 = arith.constant 0 : i32
    %c0_i32_1 = arith.constant 0 : i32
    return %c0_i32, %c0_i32_0 : i32, i32
  }
  func.func @transform_3(%arg0: i32) -> (i32, i32) {
    %c0_i32 = arith.constant 0 : i32
    %c0_i32_0 = arith.constant 0 : i32
    %c0_i32_1 = arith.constant 0 : i32
    return %c0_i32, %c0_i32_0 : i32, i32
  }
  func.func @transform_4(%arg0: i32) -> (i32, i32) {
    %c0_i32 = arith.constant 0 : i32
    %c0_i32_0 = arith.constant 0 : i32
    %c0_i32_1 = arith.constant 0 : i32
    return %c0_i32, %c0_i32_0 : i32, i32
  }
  func.func @transform_5(%arg0: i32) -> (i32, i32) {
    %c0_i32 = arith.constant 0 : i32
    %c0_i32_0 = arith.constant 0 : i32
    %c0_i32_1 = arith.constant 0 : i32
    return %c0_i32, %c0_i32_0 : i32, i32
  }
  func.func @transform_6(%arg0: i32) -> i32 {
    %c0_i32 = arith.constant 0 : i32
    %c0_i32_0 = arith.constant 0 : i32
    return %c0_i32 : i32
  }
  func.func @transform_7(%arg0: i32) -> (i32, i32) {
    %c0_i32 = arith.constant 0 : i32
    %c0_i32_0 = arith.constant 0 : i32
    return %c0_i32, %arg0 : i32, i32
  }
}

</mosaic_0001>

<bundles_post_ra>
// kernel: _forward.1
= control target key start
LH: loop header
LB: loop body
LE: loop exit
PB: predicated region body
PF: predicated region fallthrough
CT: control target
= control target key end

     0   :  { %13 = vsyncpa [#allocation4], 0  ;;  %s4623_s0 = inlined_call_operand.vmem [shape: f32[128,1089], index: 0, kind: input, shape index: {}]   ;;  %s4624_s1 = inlined_call_operand.hbm [shape: f32[1089,512], index: 1, kind: input, shape index: {}]   ;;  %s4625_s2 = inlined_call_operand.hbm [shape: f32[1,512], index: 2, kind: input, shape index: {}]   ;;  %s4626_s3 = inlined_call_operand.hbm [shape: f32[512,256], index: 3, kind: input, shape index: {}]   ;;  %s4627_s4 = inlined_call_operand.hbm [shape: f32[1,256], index: 4, kind: input, shape index: {}]   ;;  %s4628_s5 = inlined_call_operand.hbm [shape: f32[1,256], index: 5, kind: input, shape index: {}]   ;;  %s4629_s6 = inlined_call_operand.<no memory space> [shape: f32[1], index: 6, kind: input, shape index: {}]   ;;  %s4630_s7 = inlined_call_operand.vmem [shape: f32[1,128], index: 7, kind: output, shape index: {}]  }
   0x1   :  { %14 = vsyncpa [#allocation6], 0 }
   0x2   :  { %15 = vsyncpa [#allocation9], 0  ;;  %s3530_s24 = smov [#allocation5]   ;;  %s3531_s26 = smov [#allocation8]  }
   0x3   :  { %s36_s25 = sshll.u32 %s3530_s24, 4  ;;  %s58_s27 = sshll.u32 %s3531_s26, 4  ;;  %s37_s25 = int_to_ptr.vmem [resolvable:$true] %s36_s25  ;;  %s59_s27 = int_to_ptr.vmem [resolvable:$true] %s58_s27 }
   0x4   :  { %s3414_s30 = scalar_lea.hbm %s4625_s2, 64 }
   0x5   :  { %p3415_p0 = scmp.ne.s32.totalorder %s4625_s2, %s3414_s30  ;;  %p3418_p1 = scmp.lt.u32.totalorder %s3414_s30, %s4625_s2 }
   0x7   :  { %p3420_p2 = pnand %p3418_p1, %p3415_p0 }
   0x9   :  { %3423 = shalt.err (!%p3420_p2)
}
   0xa   :  { %s3424_s12 = scalar_lea.vmem %s37_s25, 64  ;;  %p3429_p4 = scmp.lt.s32.totalorder %s37_s25, %s37_s25 }
   0xb   :  { %p3425_p3 = scmp.ne.s32.totalorder %s37_s25, %s3424_s12  ;;  %p3430_p5 = scmp.lt.s32.totalorder %s3424_s12, %s3424_s12 }
   0xd   :  { %p3431_p6 = por %p3430_p5, %p3429_p4 }
   0xf   :  { %p3432_p7 = pnand %p3431_p6, %p3425_p3 }
  0x11   :  { %3435 = shalt.err (!%p3432_p7)
}
  0x12   :  { %39 = dma.hbm_to_vmem [thread:$0]  %s4625_s2, 64, %s37_s25, [#allocation6]  }
  0x13   :  { %s3436_s17 = scalar_lea.hbm %s4627_s4, 32 }
  0x14   :  { %p3437_p8 = scmp.ne.s32.totalorder %s4627_s4, %s3436_s17  ;;  %p3440_p9 = scmp.lt.u32.totalorder %s3436_s17, %s4627_s4 }
  0x16   :  { %p3442_p10 = pnand %p3440_p9, %p3437_p8 }
  0x18   :  { %3445 = shalt.err (!%p3442_p10)
}
  0x19   :  { %s3446_s22 = scalar_lea.vmem %s59_s27, 32  ;;  %p3451_p12 = scmp.lt.s32.totalorder %s59_s27, %s59_s27 }
  0x1a   :  { %p3447_p11 = scmp.ne.s32.totalorder %s59_s27, %s3446_s22  ;;  %p3452_p13 = scmp.lt.s32.totalorder %s3446_s22, %s3446_s22 }
  0x1c   :  { %p3453_p0 = por %p3452_p13, %p3451_p12 }
  0x1e   :  { %p3454_p1 = pnand %p3453_p0, %p3447_p11 }
  0x20   :  { %3457 = shalt.err (!%p3454_p1)
}
  0x21   :  { %61 = dma.hbm_to_vmem [thread:$0]  %s4627_s4, 32, %s59_s27, [#allocation9]  }
  0x22   :  { %s3532_s24 = smov [#allocation3]   ;;  %s3458_s29 = scalar_lea.hbm %s4624_s1, 70144 }
  0x23   :  { %s23_s25 = sshll.u32 %s3532_s24, 4  ;;  %p3459_p2 = scmp.ne.s32.totalorder %s4624_s1, %s3458_s29  ;;  %s24_s25 = int_to_ptr.vmem [resolvable:$true] %s23_s25 }
  0x24   :  { %p3462_p3 = scmp.lt.u32.totalorder %s3458_s29, %s4624_s1 }
  0x26   :  { %p3464_p4 = pnand %p3462_p3, %p3459_p2 }
  0x28   :  { %3467 = shalt.err (!%p3464_p4)
}
  0x29   :  { %s3468_s11 = scalar_lea.vmem %s24_s25, 70144  ;;  %p3473_p6 = scmp.lt.s32.totalorder %s24_s25, %s24_s25 }
  0x2a   :  { %p3469_p5 = scmp.ne.s32.totalorder %s24_s25, %s3468_s11  ;;  %p3474_p7 = scmp.lt.s32.totalorder %s3468_s11, %s3468_s11 }
  0x2c   :  { %p3475_p8 = por %p3474_p7, %p3473_p6 }
  0x2e   :  { %p3476_p9 = pnand %p3475_p8, %p3469_p5 }
  0x30   :  { %3479 = shalt.err (!%p3476_p9)
}
  0x31   :  { %s3533_s4 = smov 512   ;;  %s3534_s27 = smov 32  }
  0x32   :  { %29 = dma.hbm_to_vmem [thread:$0]  %s4624_s1, 70144, %s24_s25, [#allocation4], %s3533_s4, %s3533_s4, %s3534_s27  }
  0x33   :  { %s3535_s14 = smov [#allocation7]   ;;  %s3480_s18 = scalar_lea.hbm %s4626_s3, 16384 }
  0x34   :  { %s45_s15 = sshll.u32 %s3535_s14, 4  ;;  %p3481_p10 = scmp.ne.s32.totalorder %s4626_s3, %s3480_s18  ;;  %s46_s15 = int_to_ptr.vmem [resolvable:$true] %s45_s15 }
  0x35   :  { %p3484_p11 = scmp.lt.u32.totalorder %s3480_s18, %s4626_s3 }
  0x37   :  { %p3486_p12 = pnand %p3484_p11, %p3481_p10 }
  0x39   :  { %3489 = shalt.err (!%p3486_p12)
}
  0x3a   :  { %s3490_s2 = scalar_lea.vmem %s46_s15, 16384  ;;  %p3495_p0 = scmp.lt.s32.totalorder %s46_s15, %s46_s15 }
  0x3b   :  { %p3491_p13 = scmp.ne.s32.totalorder %s46_s15, %s3490_s2  ;;  %p3496_p1 = scmp.lt.s32.totalorder %s3490_s2, %s3490_s2 }
  0x3d   :  { %p3497_p2 = por %p3496_p1, %p3495_p0 }
  0x3f   :  { %p3498_p3 = pnand %p3497_p2, %p3491_p13 }
  0x41   :  { %3501 = shalt.err (!%p3498_p3)
}
  0x42   :  { %s3536_s1 = smov 256   ;;  %s3537_s23 = smov 16  }
  0x43   :  { %51 = dma.hbm_to_vmem [thread:$0]  %s4626_s3, 16384, %s46_s15, [#allocation6], %s3536_s1, %s3536_s1, %s3537_s23  }
  0x44   :  { %s3538_s26 = smov [#allocation10]   ;;  %s3502_s8 = scalar_lea.hbm %s4628_s5, 32 }
  0x45   :  { %s68_s28 = sshll.u32 %s3538_s26, 4  ;;  %p3503_p4 = scmp.ne.s32.totalorder %s4628_s5, %s3502_s8  ;;  %s69_s28 = int_to_ptr.vmem [resolvable:$true] %s68_s28 }
  0x46   :  { %p3506_p5 = scmp.lt.u32.totalorder %s3502_s8, %s4628_s5 }
  0x48   :  { %p3508_p6 = pnand %p3506_p5, %p3503_p4 }
  0x4a   :  { %3511 = shalt.err (!%p3508_p6)
}
  0x4b   :  { %s3512_s27 = scalar_lea.vmem %s69_s28, 32  ;;  %p3517_p8 = scmp.lt.s32.totalorder %s69_s28, %s69_s28 }
  0x4c   :  { %p3513_p7 = scmp.ne.s32.totalorder %s69_s28, %s3512_s27  ;;  %p3518_p9 = scmp.lt.s32.totalorder %s3512_s27, %s3512_s27 }
  0x4e   :  { %p3519_p10 = por %p3518_p9, %p3517_p8 }
  0x50   :  { %p3520_p11 = pnand %p3519_p10, %p3513_p7 }
  0x52   :  { %3523 = shalt.err (!%p3520_p11)
}
  0x53   :  { %71 = dma.hbm_to_vmem [thread:$0]  %s4628_s5, 32, %s69_s28, [#allocation9]  }
  0x54   :  { %3524 = dma.done.wait [#allocation4], 70144  }
  0x55   :  { %3525 = vsyncadd [#allocation4], 4294897152 }
  0x56   :  { %3526 = dma.done.wait [#allocation6], 16448  }
  0x57   :  { %3527 = vsyncadd [#allocation6], 4294950848 }
  0x58   :  { %3528 = dma.done.wait [#allocation9], 64  }
  0x59   :  { %3529 = vsyncadd [#allocation9], 4294967232  ;;  %v4631_v0 = vmov 0   ;;  %v307_v1 = vld [vmem:[#allocation3 + $0x8] sm:$0xff]  ;;  %v306_v6 = vld [vmem:[#allocation3] sm:$0xff]  ;;  %vm1177_vm0 = vcmask 1040384  }
  0x5a   :  { %1676 = vmatprep.mubr.bf16.mxu1 %v4631_v0  ;;  %v311_v2 = vld [vmem:[#allocation3 + $0x28] sm:$0xff]  ;;  %v310_v7 = vld [vmem:[#allocation3 + $0x20] sm:$0xff]  ;;  %v3642_v50 = vsel %vm1177_vm0, 65535, %v4631_v0  ;;  %v309_v62 = vld [vmem:[#allocation3 + $0x18] sm:$0xff]  ;;  %vm1152_vm1 = vcmask 531456  }
  0x5b   :  { %v819_v3 = vld [vmem:[#allocation3 + $0x1008] sm:$0xff]  ;;  %v855_v4 = vpack.c.bf16 %v311_v2, %v307_v1  ;;  %v854_v9 = vpack.c.bf16 %v310_v7, %v306_v6  ;;  %v818_v10 = vld [vmem:[#allocation3 + $0x1000] sm:$0xff]  ;;  %v313_v63 = vld [vmem:[#allocation3 + $0x38] sm:$0xff] }
  0x5c   :  { %v823_v5 = vld [vmem:[#allocation3 + $0x1028] sm:$0xff]  ;;  %v822_v11 = vld [vmem:[#allocation3 + $0x1020] sm:$0xff] }
  0x5d   :  { %v1111_v8 = vpack.c.bf16 %v823_v5, %v819_v3  ;;  %v315_v12 = vld [vmem:[#allocation3 + $0x48] sm:$0xff]  ;;  %1192 = vmatprep.subr.bf16.mxu0 %v855_v4  ;;  %v1110_v13 = vpack.c.bf16 %v822_v11, %v818_v10  ;;  %v314_v19 = vld [vmem:[#allocation3 + $0x40] sm:$0xff]  ;;  %v312_v10 = vld [vmem:[#allocation3 + $0x30] sm:$0xff] }
  0x5e   :  { %v319_v14 = vld [vmem:[#allocation3 + $0x68] sm:$0xff]  ;;  %1193 = vmatpush1.bf16.msra.mxu0 %v854_v9  ;;  %v318_v20 = vld [vmem:[#allocation3 + $0x60] sm:$0xff]  ;;  %v857_v9 = vpack.c.bf16 %v313_v63, %v309_v62  ;;  %v340_v63 = vld [vmem:[#allocation3 + $0x110] sm:$0xff] }
  0x5f   :  { %v827_v15 = vld [vmem:[#allocation3 + $0x1048] sm:$0xff]  ;;  %1644 = vmatprep.subr.bf16.mxu1 %v1111_v8  ;;  %v859_v17 = vpack.c.bf16 %v319_v14, %v315_v12  ;;  %v826_v21 = vld [vmem:[#allocation3 + $0x1040] sm:$0xff]  ;;  %v858_v22 = vpack.c.bf16 %v318_v20, %v314_v19  ;;  %v308_v8 = vld [vmem:[#allocation3 + $0x10] sm:$0xff] }
  0x60   :  { %v831_v16 = vld [vmem:[#allocation3 + $0x1068] sm:$0xff]  ;;  %1645 = vmatpush1.bf16.msra.mxu1 %v1110_v13  ;;  %v830_v23 = vld [vmem:[#allocation3 + $0x1060] sm:$0xff]  ;;  %v317_v13 = vld [vmem:[#allocation3 + $0x58] sm:$0xff] }
  0x61   :  { %v1115_v18 = vpack.c.bf16 %v831_v16, %v827_v15  ;;  %v323_v24 = vld [vmem:[#allocation3 + $0x88] sm:$0xff]  ;;  %1194 = vmatprep.subr.bf16.mxu0 %v859_v17  ;;  %v1114_v26 = vpack.c.bf16 %v830_v23, %v826_v21  ;;  %v322_v30 = vld [vmem:[#allocation3 + $0x80] sm:$0xff]  ;;  %v321_v14 = vld [vmem:[#allocation3 + $0x78] sm:$0xff]  ;;  %v856_v17 = vpack.c.bf16 %v312_v10, %v308_v8 }
  0x62   :  { %v327_v25 = vld [vmem:[#allocation3 + $0xa8] sm:$0xff]  ;;  %v326_v32 = vld [vmem:[#allocation3 + $0xa0] sm:$0xff]  ;;  %1195 = vmatpush1.bf16.msra.mxu0 %v858_v22  ;;  %v316_v21 = vld [vmem:[#allocation3 + $0x50] sm:$0xff]  ;;  %v861_v22 = vpack.c.bf16 %v321_v14, %v317_v13 }
  0x63   :  { %1646 = vmatprep.subr.bf16.mxu1 %v1115_v18  ;;  %v863_v27 = vpack.c.bf16 %v327_v25, %v323_v24  ;;  %v835_v28 = vld [vmem:[#allocation3 + $0x1088] sm:$0xff]  ;;  %v834_v33 = vld [vmem:[#allocation3 + $0x1080] sm:$0xff]  ;;  %v862_v35 = vpack.c.bf16 %v326_v32, %v322_v30  ;;  %v320_v23 = vld [vmem:[#allocation3 + $0x70] sm:$0xff] }
  0x64   :  { %v839_v29 = vld [vmem:[#allocation3 + $0x10a8] sm:$0xff]  ;;  %v838_v34 = vld [vmem:[#allocation3 + $0x10a0] sm:$0xff]  ;;  %1647 = vmatpush1.bf16.msra.mxu1 %v1114_v26  ;;  %v325_v26 = vld [vmem:[#allocation3 + $0x98] sm:$0xff] }
  0x65   :  { %v1119_v31 = vpack.c.bf16 %v839_v29, %v835_v28  ;;  %v331_v36 = vld [vmem:[#allocation3 + $0xc8] sm:$0xff]  ;;  %1196 = vmatprep.subr.bf16.mxu0 %v863_v27  ;;  %v1118_v39 = vpack.c.bf16 %v838_v34, %v834_v33  ;;  %v330_v42 = vld [vmem:[#allocation3 + $0xc0] sm:$0xff]  ;;  %v329_v27 = vld [vmem:[#allocation3 + $0xb8] sm:$0xff] }
  0x66   :  { %v335_v37 = vld [vmem:[#allocation3 + $0xe8] sm:$0xff]  ;;  %v334_v43 = vld [vmem:[#allocation3 + $0xe0] sm:$0xff]  ;;  %1197 = vmatpush1.bf16.msra.mxu0 %v862_v35  ;;  %v116_v29 = vld [vmem:[%s4623_s0 + $0xd0] sm:$0xff] }
  0x67   :  { %v843_v38 = vld [vmem:[#allocation3 + $0x10c8] sm:$0xff]  ;;  %v867_v40 = vpack.c.bf16 %v335_v37, %v331_v36  ;;  %1648 = vmatprep.subr.bf16.mxu1 %v1119_v31  ;;  %v842_v45 = vld [vmem:[#allocation3 + $0x10c0] sm:$0xff]  ;;  %v866_v51 = vpack.c.bf16 %v334_v43, %v330_v42  ;;  %v125_v30 = vld [vmem:[%s4623_s0 + $0x118] sm:$0xff]  ;;  %v860_v31 = vpack.c.bf16 %v320_v23, %v316_v21  ;;  %v865_v36 = vpack.c.bf16 %v329_v27, %v325_v26 }
  0x68   :  { %v847_v41 = vld [vmem:[#allocation3 + $0x10e8] sm:$0xff]  ;;  %v846_v46 = vld [vmem:[#allocation3 + $0x10e0] sm:$0xff]  ;;  %1649 = vmatpush1.bf16.msra.mxu1 %v1118_v39  ;;  %v324_v35 = vld [vmem:[#allocation3 + $0x90] sm:$0xff]  ;;  %v3663_v42 = vpack.c.bf16 %v125_v30, %v116_v29 }
  0x69   :  { %v1123_v44 = vpack.c.bf16 %v847_v41, %v843_v38  ;;  %v339_v47 = vld [vmem:[#allocation3 + $0x108] sm:$0xff]  ;;  %v850_v53 = vld [vmem:[#allocation3 + $0x1100] sm:$0x1]  ;;  %1198 = vmatprep.subr.bf16.mxu0 %v867_v40  ;;  %v1122_v54 = vpack.c.bf16 %v846_v46, %v842_v45  ;;  %v328_v37 = vld [vmem:[#allocation3 + $0xb0] sm:$0xff] }
  0x6a   :  { %v343_v48 = vld [vmem:[#allocation3 + $0x128] sm:$0xff]  ;;  %v338_v56 = vld [vmem:[#allocation3 + $0x100] sm:$0xff]  ;;  %v1126_v58 = vpack.c.bf16 %v850_v53, %v850_v53  ;;  %1199 = vmatpush1.bf16.msra.mxu0 %v866_v51  ;;  %v333_v40 = vld [vmem:[#allocation3 + $0xd8] sm:$0xff] }
  0x6b   :  { %v851_v49 = vld [vmem:[#allocation3 + $0x1108] sm:$0x1]  ;;  %v871_v55 = vpack.c.bf16 %v343_v48, %v339_v47  ;;  %v342_v57 = vld [vmem:[#allocation3 + $0x120] sm:$0xff]  ;;  %1650 = vmatprep.subr.bf16.mxu1 %v1123_v44  ;;  %v337_v41 = vld [vmem:[#allocation3 + $0xf8] sm:$0xff]  ;;  %v864_v44 = vpack.c.bf16 %v328_v37, %v324_v35 }
  0x6c   :  { %v1127_v52 = vpack.c.bf16 %v851_v49, %v851_v49  ;;  %v347_v60 = vld [vmem:[#allocation3 + $0x148] sm:$0xff]  ;;  %v870_v1 = vpack.c.bf16 %v342_v57, %v338_v56  ;;  %v98_v2 = vld [vmem:[%s4623_s0 + $0x40] sm:$0xff]  ;;  %1651 = vmatpush1.bf16.msra.mxu1 %v1122_v54  ;;  %v1181_v4 = vand.u32 %v3642_v50, %v1126_v58  ;;  %v332_v48 = vld [vmem:[#allocation3 + $0xd0] sm:$0xff]  ;;  %v869_v49 = vpack.c.bf16 %v337_v41, %v333_v40 }
  0x6d   :  { %v351_v61 = vld [vmem:[#allocation3 + $0x168] sm:$0xff]  ;;  %1200 = vmatprep.subr.bf16.mxu0 %v871_v55  ;;  %v346_v6 = vld [vmem:[#allocation3 + $0x140] sm:$0xff]  ;;  %v336_v51 = vld [vmem:[#allocation3 + $0xf0] sm:$0xff] }
  0x6e   :  { %v1184_v59 = vand.u32 %v3642_v50, %v1127_v52  ;;  %v107_v3 = vld [vmem:[%s4623_s0 + $0x88] sm:$0xff]  ;;  %v875_v5 = vpack.c.bf16 %v351_v61, %v347_v60  ;;  %v350_v7 = vld [vmem:[#allocation3 + $0x160] sm:$0xff]  ;;  %1201 = vmatpush1.bf16.msra.mxu0 %v870_v1  ;;  %v341_v54 = vld [vmem:[#allocation3 + $0x118] sm:$0xff] }
  0x6f   :  { %v355_v11 = vld [vmem:[#allocation3 + $0x188] sm:$0xff]  ;;  %v3652_v15 = vpack.c.bf16 %v107_v3, %v98_v2  ;;  %v874_v16 = vpack.c.bf16 %v350_v7, %v346_v6  ;;  %v354_v19 = vld [vmem:[#allocation3 + $0x180] sm:$0xff]  ;;  %v345_v55 = vld [vmem:[#allocation3 + $0x138] sm:$0xff] }
  0x70   :  { %1652 = vmatprep.subr.bf16.mxu1 %v1184_v59  ;;  %v359_v12 = vld [vmem:[#allocation3 + $0x1a8] sm:$0xff]  ;;  %1202 = vmatprep.subr.bf16.mxu0 %v875_v5  ;;  %v358_v20 = vld [vmem:[#allocation3 + $0x1a0] sm:$0xff]  ;;  %v868_v59 = vpack.c.bf16 %v336_v51, %v332_v48  ;;  %v873_v1 = vpack.c.bf16 %v345_v55, %v341_v54  ;;  %v344_v2 = vld [vmem:[#allocation3 + $0x130] sm:$0xff] }
  0x71   :  { %1653 = vmatpush1.bf16.msra.mxu1 %v1181_v4  ;;  %v879_v18 = vpack.c.bf16 %v359_v12, %v355_v11  ;;  %v363_v24 = vld [vmem:[#allocation3 + $0x1c8] sm:$0xff]  ;;  %v878_v28 = vpack.c.bf16 %v358_v20, %v354_v19  ;;  %v362_v33 = vld [vmem:[#allocation3 + $0x1c0] sm:$0xff]  ;;  %v349_v5 = vld [vmem:[#allocation3 + $0x158] sm:$0xff] }
  0x72   :  { %1757 = vmatprep.subr.bf16.mxu1 %v857_v9  ;;  %v367_v25 = vld [vmem:[#allocation3 + $0x1e8] sm:$0xff]  ;;  %1203 = vmatpush1.bf16.msra.mxu0 %v874_v16  ;;  %v366_v34 = vld [vmem:[#allocation3 + $0x1e0] sm:$0xff]  ;;  %v353_v6 = vld [vmem:[#allocation3 + $0x178] sm:$0xff]  ;;  %v872_v9 = vpack.c.bf16 %v344_v2, %v340_v63 }
  0x73   :  { %1204 = vmatprep.subr.bf16.mxu0 %v879_v18  ;;  %v883_v32 = vpack.c.bf16 %v367_v25, %v363_v24  ;;  %v371_v38 = vld [vmem:[#allocation3 + $0x208] sm:$0xff]  ;;  %v882_v43 = vpack.c.bf16 %v366_v34, %v362_v33  ;;  %v370_v46 = vld [vmem:[#allocation3 + $0x200] sm:$0xff]  ;;  %v348_v13 = vld [vmem:[#allocation3 + $0x150] sm:$0xff]  ;;  %v877_v14 = vpack.c.bf16 %v353_v6, %v349_v5 }
  0x74   :  { %2972 = vmatmul.mubr.msk.bf16.vlgmr.msra.gmra.mrb[0].mxu1 %vm1152_vm1, %v3652_v15  ;;  %v375_v39 = vld [vmem:[#allocation3 + $0x228] sm:$0xff]  ;;  %v374_v47 = vld [vmem:[#allocation3 + $0x220] sm:$0xff]  ;;  %v352_v16 = vld [vmem:[#allocation3 + $0x170] sm:$0xff] }
  0x75   :  { %1758 = vmatpush1.bf16.msra.mxu1 %v856_v17  ;;  %1686 = vmatprep.mubr.bf16.mxu1 %v4631_v0  ;;  %v887_v45 = vpack.c.bf16 %v375_v39, %v371_v38  ;;  %v379_v52 = vld [vmem:[#allocation3 + $0x248] sm:$0xff]  ;;  %v886_v56 = vpack.c.bf16 %v374_v47, %v370_v46  ;;  %v134_v57 = vld [vmem:[%s4623_s0 + $0x160] sm:$0xff]  ;;  %v357_v19 = vld [vmem:[#allocation3 + $0x198] sm:$0xff]  ;;  %v876_v24 = vpack.c.bf16 %v352_v16, %v348_v13 }
  0x76   :  { %1759 = vmatprep.subr.bf16.mxu1 %v861_v22  ;;  %1205 = vmatpush1.bf16.msra.mxu0 %v878_v28  ;;  %v383_v53 = vld [vmem:[#allocation3 + $0x268] sm:$0xff]  ;;  %v378_v61 = vld [vmem:[#allocation3 + $0x240] sm:$0xff]  ;;  %v361_v20 = vld [vmem:[#allocation3 + $0x1b8] sm:$0xff] }
  0x77   :  { %1206 = vmatprep.subr.bf16.mxu0 %v883_v32  ;;  %v143_v58 = vld [vmem:[%s4623_s0 + $0x1a8] sm:$0xff]  ;;  %v891_v60 = vpack.c.bf16 %v383_v53, %v379_v52  ;;  %v382_v62 = vld [vmem:[#allocation3 + $0x260] sm:$0xff]  ;;  %v152_v22 = vld [vmem:[%s4623_s0 + $0x1f0] sm:$0xff]  ;;  %v881_v29 = vpack.c.bf16 %v361_v20, %v357_v19 }
  0x78   :  { %v387_v3 = vld [vmem:[#allocation3 + $0x288] sm:$0xff]  ;;  %v3674_v7 = vpack.c.bf16 %v143_v58, %v134_v57  ;;  %v890_v8 = vpack.c.bf16 %v382_v62, %v378_v61  ;;  %v386_v11 = vld [vmem:[#allocation3 + $0x280] sm:$0xff]  ;;  %v161_v23 = vld [vmem:[%s4623_s0 + $0x238] sm:$0xff] }
  0x79   :  { %1760 = vmatpush1.bf16.msra.mxu1 %v860_v31  ;;  %v391_v4 = vld [vmem:[#allocation3 + $0x2a8] sm:$0xff]  ;;  %v390_v12 = vld [vmem:[#allocation3 + $0x2a0] sm:$0xff]  ;;  %v356_v28 = vld [vmem:[#allocation3 + $0x190] sm:$0xff]  ;;  %v3685_v35 = vpack.c.bf16 %v161_v23, %v152_v22 }
  0x7a   :  { %1761 = vmatprep.subr.bf16.mxu1 %v865_v36  ;;  %1207 = vmatpush1.bf16.msra.mxu0 %v882_v43  ;;  %v895_v10 = vpack.c.bf16 %v391_v4, %v387_v3  ;;  %v395_v17 = vld [vmem:[#allocation3 + $0x2c8] sm:$0xff]  ;;  %v894_v21 = vpack.c.bf16 %v390_v12, %v386_v11  ;;  %v394_v26 = vld [vmem:[#allocation3 + $0x2c0] sm:$0xff]  ;;  %v360_v30 = vld [vmem:[#allocation3 + $0x1b0] sm:$0xff] }
  0x7b   :  { %1208 = vmatprep.subr.bf16.mxu0 %v887_v45  ;;  %v399_v18 = vld [vmem:[#allocation3 + $0x2e8] sm:$0xff]  ;;  %v398_v27 = vld [vmem:[#allocation3 + $0x2e0] sm:$0xff]  ;;  %v365_v33 = vld [vmem:[#allocation3 + $0x1d8] sm:$0xff]  ;;  %v880_v39 = vpack.c.bf16 %v360_v30, %v356_v28 }
  0x7c   :  { %2973 = vmatmul.mubr.msk.bf16.gmra.mrb[4].mxu1 %vm1152_vm1, %v3663_v42  ;;  %v899_v25 = vpack.c.bf16 %v399_v18, %v395_v17  ;;  %v403_v31 = vld [vmem:[#allocation3 + $0x308] sm:$0xff]  ;;  %v369_v34 = vld [vmem:[#allocation3 + $0x1f8] sm:$0xff]  ;;  %v898_v36 = vpack.c.bf16 %v398_v27, %v394_v26  ;;  %v402_v37 = vld [vmem:[#allocation3 + $0x300] sm:$0xff] }
  0x7d   :  { %1762 = vmatpush1.bf16.msra.mxu1 %v864_v44  ;;  %1696 = vmatprep.mubr.bf16.mxu1 %v4631_v0  ;;  %v407_v32 = vld [vmem:[#allocation3 + $0x328] sm:$0xff]  ;;  %v406_v38 = vld [vmem:[#allocation3 + $0x320] sm:$0xff]  ;;  %v364_v41 = vld [vmem:[#allocation3 + $0x1d0] sm:$0xff]  ;;  %v885_v45 = vpack.c.bf16 %v369_v34, %v365_v33 }
  0x7e   :  { %1763 = vmatprep.subr.bf16.mxu1 %v869_v49  ;;  %1209 = vmatpush1.bf16.msra.mxu0 %v886_v56  ;;  %v903_v40 = vpack.c.bf16 %v407_v32, %v403_v31  ;;  %v368_v43 = vld [vmem:[#allocation3 + $0x1f0] sm:$0xff]  ;;  %v411_v44 = vld [vmem:[#allocation3 + $0x348] sm:$0xff]  ;;  %v373_v49 = vld [vmem:[#allocation3 + $0x218] sm:$0xff]  ;;  %v902_v53 = vpack.c.bf16 %v406_v38, %v402_v37 }
  0x7f   :  { %1210 = vmatprep.subr.bf16.mxu0 %v891_v60  ;;  %v415_v46 = vld [vmem:[#allocation3 + $0x368] sm:$0xff]  ;;  %v100_v48 = vld [vmem:[%s4623_s0 + $0x50] sm:$0xff]  ;;  %v377_v51 = vld [vmem:[#allocation3 + $0x238] sm:$0xff]  ;;  %v884_v56 = vpack.c.bf16 %v368_v43, %v364_v41 }
  0x80   :  { %v91_v47 = vld [vmem:[%s4623_s0 + $0x8] sm:$0xff]  ;;  %v170_v54 = vld [vmem:[%s4623_s0 + $0x280] sm:$0xff]  ;;  %v907_v57 = vpack.c.bf16 %v415_v46, %v411_v44  ;;  %v372_v60 = vld [vmem:[#allocation3 + $0x210] sm:$0xff]  ;;  %v889_v61 = vpack.c.bf16 %v377_v51, %v373_v49 }
  0x81   :  { %1764 = vmatpush1.bf16.msra.mxu1 %v868_v59  ;;  %v3693_v52 = vpack.c.bf16 %v100_v48, %v91_v47  ;;  %v179_v55 = vld [vmem:[%s4623_s0 + $0x2c8] sm:$0xff]  ;;  %v410_v58 = vld [vmem:[#allocation3 + $0x340] sm:$0xff]  ;;  %v376_v62 = vld [vmem:[#allocation3 + $0x230] sm:$0xff] }
  0x82   :  { %1765 = vmatprep.subr.bf16.mxu1 %v873_v1  ;;  %1211 = vmatpush1.bf16.msra.mxu0 %v890_v8  ;;  %v414_v59 = vld [vmem:[#allocation3 + $0x360] sm:$0xff]  ;;  %v419_v63 = vld [vmem:[#allocation3 + $0x388] sm:$0xff]  ;;  %v381_v2 = vld [vmem:[#allocation3 + $0x258] sm:$0xff]  ;;  %v3705_v4 = vpack.c.bf16 %v179_v55, %v170_v54  ;;  %v888_v6 = vpack.c.bf16 %v376_v62, %v372_v60 }
  0x83   :  { %1212 = vmatprep.subr.bf16.mxu0 %v895_v10  ;;  %v423_v1 = vld [vmem:[#allocation3 + $0x3a8] sm:$0xff]  ;;  %v385_v3 = vld [vmem:[#allocation3 + $0x278] sm:$0xff]  ;;  %1224 = vmatprep.mubr.bf16.mxu0 %v3693_v52  ;;  %v906_v5 = vpack.c.bf16 %v414_v59, %v410_v58  ;;  %v422_v10 = vld [vmem:[#allocation3 + $0x3a0] sm:$0xff] }
  0x84   :  { %2974 = vmatmul.mubr.msk.bf16.gmra.mrb[8].mxu1 %vm1152_vm1, %v3674_v7  ;;  %v911_v8 = vpack.c.bf16 %v423_v1, %v419_v63  ;;  %v380_v11 = vld [vmem:[#allocation3 + $0x250] sm:$0xff]  ;;  %v893_v12 = vpack.c.bf16 %v385_v3, %v381_v2  ;;  %v431_v16 = vld [vmem:[#allocation3 + $0x3e8] sm:$0xff]  ;;  %v389_v17 = vld [vmem:[#allocation3 + $0x298] sm:$0xff] }
  0x85   :  { %1766 = vmatpush1.bf16.msra.mxu1 %v872_v9  ;;  %1706 = vmatprep.mubr.bf16.mxu1 %v4631_v0  ;;  %v418_v9 = vld [vmem:[#allocation3 + $0x380] sm:$0xff]  ;;  %v384_v13 = vld [vmem:[#allocation3 + $0x270] sm:$0xff]  ;;  %v393_v18 = vld [vmem:[#allocation3 + $0x2b8] sm:$0xff] }
  0x86   :  { %1767 = vmatprep.subr.bf16.mxu1 %v877_v14  ;;  %1213 = vmatpush1.bf16.msra.mxu0 %v894_v21  ;;  %v427_v14 = vld [vmem:[#allocation3 + $0x3c8] sm:$0xff]  ;;  %v910_v19 = vpack.c.bf16 %v422_v10, %v418_v9  ;;  %v188_v20 = vld [vmem:[%s4623_s0 + $0x310] sm:$0xff]  ;;  %v197_v21 = vld [vmem:[%s4623_s0 + $0x358] sm:$0xff]  ;;  %v892_v22 = vpack.c.bf16 %v384_v13, %v380_v11  ;;  %v897_v27 = vpack.c.bf16 %v393_v18, %v389_v17 }
  0x87   :  { %1214 = vmatprep.subr.bf16.mxu0 %v899_v25  ;;  %v915_v23 = vpack.c.bf16 %v431_v16, %v427_v14  ;;  %v430_v25 = vld [vmem:[#allocation3 + $0x3e0] sm:$0xff]  ;;  %v388_v26 = vld [vmem:[#allocation3 + $0x290] sm:$0xff]  ;;  %v439_v30 = vld [vmem:[#allocation3 + $0x428] sm:$0xff]  ;;  %v3719_v34 = vpack.c.bf16 %v197_v21, %v188_v20 }
  0x88   :  { %v392_v28 = vld [vmem:[#allocation3 + $0x2b0] sm:$0xff]  ;;  %v90_v31 = vld [vmem:[%s4623_s0] sm:$0xff]  ;;  %v397_v32 = vld [vmem:[#allocation3 + $0x2d8] sm:$0xff] }
  0x89   :  { %1768 = vmatpush1.bf16.msra.mxu1 %v876_v24  ;;  %v426_v24 = vld [vmem:[#allocation3 + $0x3c0] sm:$0xff]  ;;  %v401_v33 = vld [vmem:[#allocation3 + $0x2f8] sm:$0xff]  ;;  %v99_v37 = vld [vmem:[%s4623_s0 + $0x48] sm:$0xff] }
  0x8a   :  { %1769 = vmatprep.subr.bf16.mxu1 %v881_v29  ;;  %1215 = vmatpush1.bf16.msra.mxu0 %v898_v36  ;;  %v435_v29 = vld [vmem:[#allocation3 + $0x408] sm:$0xff]  ;;  %v914_v36 = vpack.c.bf16 %v430_v25, %v426_v24  ;;  %v434_v38 = vld [vmem:[#allocation3 + $0x400] sm:$0xff]  ;;  %v396_v43 = vld [vmem:[#allocation3 + $0x2d0] sm:$0xff]  ;;  %v901_v46 = vpack.c.bf16 %v401_v33, %v397_v32  ;;  %v3730_v51 = vpack.c.bf16 %v99_v37, %v90_v31 }
  0x8b   :  { %1216 = vmatprep.subr.bf16.mxu0 %v903_v40  ;;  %v896_v40 = vpack.c.bf16 %v392_v28, %v388_v26  ;;  %v919_v41 = vpack.c.bf16 %v439_v30, %v435_v29  ;;  %v109_v44 = vld [vmem:[%s4623_s0 + $0x98] sm:$0xff]  ;;  %v400_v47 = vld [vmem:[#allocation3 + $0x2f0] sm:$0xff]  ;;  %v443_v48 = vld [vmem:[#allocation3 + $0x448] sm:$0xff] }
  0x8c   :  { %2975 = vmatmul.mubr.msk.bf16.gmra.mrb[12].mxu1 %vm1152_vm1, %v3685_v35  ;;  %v447_v49 = vld [vmem:[#allocation3 + $0x468] sm:$0xff]  ;;  %v409_v54 = vld [vmem:[#allocation3 + $0x338] sm:$0xff]  ;;  %v900_v59 = vpack.c.bf16 %v400_v47, %v396_v43  ;;  %v446_v62 = vld [vmem:[#allocation3 + $0x460] sm:$0xff] }
  0x8d   :  { %1770 = vmatpush1.bf16.msra.mxu1 %v880_v39  ;;  %1716 = vmatprep.mubr.bf16.mxu1 %v4631_v0  ;;  %v438_v39 = vld [vmem:[#allocation3 + $0x420] sm:$0xff]  ;;  %v923_v60 = vpack.c.bf16 %v447_v49, %v443_v48  ;;  %v404_v63 = vld [vmem:[#allocation3 + $0x310] sm:$0xff]  ;;  %v451_v3 = vld [vmem:[#allocation3 + $0x488] sm:$0xff] }
  0x8e   :  { %1771 = vmatprep.subr.bf16.mxu1 %v885_v45  ;;  %1217 = vmatpush1.bf16.msra.mxu0 %v902_v53  ;;  %v118_v45 = vld [vmem:[%s4623_s0 + $0xe0] sm:$0xff]  ;;  %v405_v53 = vld [vmem:[#allocation3 + $0x318] sm:$0xff]  ;;  %v918_v55 = vpack.c.bf16 %v438_v39, %v434_v38  ;;  %v408_v2 = vld [vmem:[#allocation3 + $0x330] sm:$0xff] }
  0x8f   :  { %1218 = vmatprep.subr.bf16.mxu0 %v907_v57  ;;  %v215_v57 = vld [vmem:[%s4623_s0 + $0x3e8] sm:$0xff]  ;;  %v3740_v58 = vpack.c.bf16 %v118_v45, %v109_v44  ;;  %v905_v1 = vpack.c.bf16 %v409_v54, %v405_v53  ;;  %v417_v9 = vld [vmem:[#allocation3 + $0x378] sm:$0xff]  ;;  %v450_v13 = vld [vmem:[#allocation3 + $0x480] sm:$0xff]  ;;  %v904_v16 = vpack.c.bf16 %v408_v2, %v404_v63 }
  0x90   :  { %v454_v14 = vld [vmem:[#allocation3 + $0x4a0] sm:$0xff]  ;;  %v412_v18 = vld [vmem:[#allocation3 + $0x350] sm:$0xff]  ;;  %v463_v24 = vld [vmem:[#allocation3 + $0x4e8] sm:$0xff] }
  0x91   :  { %1772 = vmatpush1.bf16.msra.mxu1 %v884_v56  ;;  %v206_v56 = vld [vmem:[%s4623_s0 + $0x3a0] sm:$0xff]  ;;  %v136_v20 = vld [vmem:[%s4623_s0 + $0x170] sm:$0xff]  ;;  %v421_v26 = vld [vmem:[#allocation3 + $0x398] sm:$0xff]  ;;  %v926_v28 = vpack.c.bf16 %v454_v14, %v450_v13 }
  0x92   :  { %1773 = vmatprep.subr.bf16.mxu1 %v889_v61  ;;  %1219 = vmatpush1.bf16.msra.mxu0 %v906_v5  ;;  %v442_v61 = vld [vmem:[#allocation3 + $0x440] sm:$0xff]  ;;  %v455_v5 = vld [vmem:[#allocation3 + $0x4a8] sm:$0xff]  ;;  %v3747_v10 = vpack.c.bf16 %v215_v57, %v206_v56  ;;  %v224_v29 = vld [vmem:[%s4623_s0 + $0x430] sm:$0xff] }
  0x93   :  { %1220 = vmatprep.subr.bf16.mxu0 %v911_v8  ;;  %v413_v8 = vld [vmem:[#allocation3 + $0x358] sm:$0xff]  ;;  %v922_v11 = vpack.c.bf16 %v446_v62, %v442_v61  ;;  %v927_v17 = vpack.c.bf16 %v455_v5, %v451_v3  ;;  %v462_v37 = vld [vmem:[#allocation3 + $0x4e0] sm:$0xff]  ;;  %v420_v38 = vld [vmem:[#allocation3 + $0x390] sm:$0xff] }
  0x94   :  { %2976 = vmatmul.mubr.msk.bf16.gmra.mrb[16].mxu1 %vm1152_vm1, %v3705_v4  ;;  %v909_v21 = vpack.c.bf16 %v417_v9, %v413_v8  ;;  %v233_v30 = vld [vmem:[%s4623_s0 + $0x478] sm:$0xff]  ;;  %v471_v43 = vld [vmem:[#allocation3 + $0x528] sm:$0xff]  ;;  %v126_v44 = vld [vmem:[%s4623_s0 + $0x120] sm:$0xff] }
  0x95   :  { %1774 = vmatpush1.bf16.msra.mxu1 %v888_v6  ;;  %1726 = vmatprep.mubr.bf16.mxu1 %v4631_v0  ;;  %v108_v6 = vld [vmem:[%s4623_s0 + $0x90] sm:$0xff]  ;;  %v429_v45 = vld [vmem:[#allocation3 + $0x3d8] sm:$0xff]  ;;  %v3776_v47 = vpack.c.bf16 %v233_v30, %v224_v29  ;;  %v135_v49 = vld [vmem:[%s4623_s0 + $0x168] sm:$0xff] }
  0x96   :  { %1775 = vmatprep.subr.bf16.mxu1 %v893_v12  ;;  %1221 = vmatpush1.bf16.msra.mxu0 %v910_v19  ;;  %v117_v12 = vld [vmem:[%s4623_s0 + $0xd8] sm:$0xff]  ;;  %v127_v19 = vld [vmem:[%s4623_s0 + $0x128] sm:$0xff]  ;;  %v466_v53 = vld [vmem:[#allocation3 + $0x500] sm:$0xff]  ;;  %v3788_v2 = vpack.c.bf16 %v135_v49, %v126_v44 }
  0x97   :  { %1222 = vmatprep.subr.bf16.mxu0 %v915_v23  ;;  %v459_v23 = vld [vmem:[#allocation3 + $0x4c8] sm:$0xff]  ;;  %v3759_v25 = vpack.c.bf16 %v117_v12, %v108_v6  ;;  %v3769_v31 = vpack.c.bf16 %v136_v20, %v127_v19  ;;  %v470_v54 = vld [vmem:[#allocation3 + $0x520] sm:$0xff]  ;;  %v428_v57 = vld [vmem:[#allocation3 + $0x3d0] sm:$0xff] }
  0x98   :  { %v931_v33 = vpack.c.bf16 %v463_v24, %v459_v23  ;;  %v432_v62 = vld [vmem:[#allocation3 + $0x3f0] sm:$0xff]  ;;  %v475_v63 = vld [vmem:[#allocation3 + $0x548] sm:$0xff]  ;;  %v437_v3 = vld [vmem:[#allocation3 + $0x418] sm:$0xff]  ;;  %v934_v6 = vpack.c.bf16 %v470_v54, %v466_v53 }
  0x99   :  { %1776 = vmatpush1.bf16.msra.mxu1 %v892_v22  ;;  %v416_v22 = vld [vmem:[#allocation3 + $0x370] sm:$0xff]  ;;  %v441_v5 = vld [vmem:[#allocation3 + $0x438] sm:$0xff]  ;;  %v916_v9 = vpack.c.bf16 %v432_v62, %v428_v57  ;;  %v474_v12 = vld [vmem:[#allocation3 + $0x540] sm:$0xff] }
  0x9a   :  { %1777 = vmatprep.subr.bf16.mxu1 %v897_v27  ;;  %1223 = vmatpush1.bf16.msra.mxu0 %v914_v36  ;;  %v425_v27 = vld [vmem:[#allocation3 + $0x3b8] sm:$0xff]  ;;  %v908_v32 = vpack.c.bf16 %v416_v22, %v412_v18  ;;  %v458_v36 = vld [vmem:[#allocation3 + $0x4c0] sm:$0xff]  ;;  %v436_v14 = vld [vmem:[#allocation3 + $0x410] sm:$0xff] }
  0x9b   :  { %1305 = vmatprep.subr.bf16.mxu0 %v919_v41  ;;  %v913_v39 = vpack.c.bf16 %v425_v27, %v421_v26  ;;  %v467_v41 = vld [vmem:[#allocation3 + $0x508] sm:$0xff]  ;;  %v930_v48 = vpack.c.bf16 %v462_v37, %v458_v36  ;;  %v478_v13 = vld [vmem:[#allocation3 + $0x560] sm:$0xff]  ;;  %v144_v20 = vld [vmem:[%s4623_s0 + $0x1b0] sm:$0xff] }
  0x9c   :  { %2977 = vmatmul.mubr.msk.bf16.gmra.mrb[20].mxu1 %vm1152_vm1, %v3719_v34  ;;  %v935_v56 = vpack.c.bf16 %v471_v43, %v467_v41  ;;  %v483_v18 = vld [vmem:[#allocation3 + $0x588] sm:$0xff]  ;;  %v449_v22 = vld [vmem:[#allocation3 + $0x478] sm:$0xff]  ;;  %v938_v23 = vpack.c.bf16 %v478_v13, %v474_v12  ;;  %v482_v24 = vld [vmem:[#allocation3 + $0x580] sm:$0xff] }
  0x9d   :  { %1778 = vmatpush1.bf16.msra.mxu1 %v896_v40  ;;  %1736 = vmatprep.mubr.bf16.mxu1 %v4631_v0  ;;  %v424_v40 = vld [vmem:[#allocation3 + $0x3b0] sm:$0xff]  ;;  %v487_v19 = vld [vmem:[#allocation3 + $0x5a8] sm:$0xff]  ;;  %v486_v26 = vld [vmem:[#allocation3 + $0x5a0] sm:$0xff] }
  0x9e   :  { %1779 = vmatprep.subr.bf16.mxu1 %v901_v46  ;;  %1225 = vmatmul.mubr.bf16.vlgmr.msra.gmra.mrb[0].mxu0 %v3730_v51  ;;  %v433_v46 = vld [vmem:[#allocation3 + $0x3f8] sm:$0xff]  ;;  %v444_v29 = vld [vmem:[#allocation3 + $0x450] sm:$0xff]  ;;  %v163_v30 = vld [vmem:[%s4623_s0 + $0x248] sm:$0xff]  ;;  %v942_v43 = vpack.c.bf16 %v486_v26, %v482_v24 }
  0x9f   :  { %1306 = vmatpush1.bf16.msra.mxu0 %v918_v55  ;;  %1234 = vmatprep.mubr.bf16.mxu0 %v3740_v58  ;;  %v912_v55 = vpack.c.bf16 %v424_v40, %v420_v38  ;;  %v917_v61 = vpack.c.bf16 %v433_v46, %v429_v45  ;;  %v448_v36 = vld [vmem:[#allocation3 + $0x470] sm:$0xff]  ;;  %v491_v37 = vld [vmem:[#allocation3 + $0x5c8] sm:$0xff]  ;;  %v453_v40 = vld [vmem:[#allocation3 + $0x498] sm:$0xff] }
  0xa0   :  { %1307 = vmatprep.subr.bf16.mxu0 %v923_v60  ;;  %v154_v60 = vld [vmem:[%s4623_s0 + $0x200] sm:$0xff]  ;;  %v495_v38 = vld [vmem:[#allocation3 + $0x5e8] sm:$0xff]  ;;  %v457_v41 = vld [vmem:[#allocation3 + $0x4b8] sm:$0xff]  ;;  %v924_v45 = vpack.c.bf16 %v448_v36, %v444_v29 }
  0xa1   :  { %1780 = vmatpush1.bf16.msra.mxu1 %v900_v59  ;;  %v145_v59 = vld [vmem:[%s4623_s0 + $0x1b8] sm:$0xff]  ;;  %v947_v46 = vpack.c.bf16 %v495_v38, %v491_v37  ;;  %v494_v49 = vld [vmem:[#allocation3 + $0x5e0] sm:$0xff]  ;;  %v452_v53 = vld [vmem:[#allocation3 + $0x490] sm:$0xff]  ;;  %v929_v54 = vpack.c.bf16 %v457_v41, %v453_v40 }
  0xa2   :  { %1781 = vmatprep.subr.bf16.mxu1 %v905_v1  ;;  %v479_v1 = vld [vmem:[#allocation3 + $0x568] sm:$0xff]  ;;  %v3792_v8 = vpack.c.bf16 %v154_v60, %v145_v59  ;;  %v461_v59 = vld [vmem:[#allocation3 + $0x4d8] sm:$0xff]  ;;  %v498_v62 = vld [vmem:[#allocation3 + $0x600] sm:$0xff] }
  0xa3   :  { %1308 = vmatpush1.bf16.msra.mxu0 %v922_v11  ;;  %v939_v11 = vpack.c.bf16 %v479_v1, %v475_v63  ;;  %v503_v57 = vld [vmem:[#allocation3 + $0x628] sm:$0xff]  ;;  %v465_v60 = vld [vmem:[#allocation3 + $0x4f8] sm:$0xff]  ;;  %v502_v63 = vld [vmem:[#allocation3 + $0x620] sm:$0xff] }
  0xa4   :  { %2978 = vmatmul.mubr.msk.bf16.gmra.mrb[24].mxu1 %vm1152_vm1, %v3747_v10  ;;  %1309 = vmatprep.subr.bf16.mxu0 %v927_v17  ;;  %v440_v17 = vld [vmem:[#allocation3 + $0x430] sm:$0xff]  ;;  %v507_v13 = vld [vmem:[#allocation3 + $0x648] sm:$0xff]  ;;  %v514_v36 = vld [vmem:[#allocation3 + $0x680] sm:$0xff] }
  0xa5   :  { %1782 = vmatpush1.bf16.msra.mxu1 %v904_v16  ;;  %1746 = vmatprep.mubr.bf16.mxu1 %v4631_v0  ;;  %v921_v16 = vpack.c.bf16 %v441_v5, %v437_v3  ;;  %v920_v27 = vpack.c.bf16 %v440_v17, %v436_v14  ;;  %v460_v5 = vld [vmem:[#allocation3 + $0x4d0] sm:$0xff]  ;;  %v511_v14 = vld [vmem:[#allocation3 + $0x668] sm:$0xff]  ;;  %v469_v17 = vld [vmem:[#allocation3 + $0x518] sm:$0xff] }
  0xa6   :  { %1783 = vmatprep.subr.bf16.mxu1 %v909_v21  ;;  %1235 = vmatmul.mubr.bf16.gmra.mrb[4].mxu0 %v3759_v25  ;;  %v445_v21 = vld [vmem:[#allocation3 + $0x458] sm:$0xff]  ;;  %v464_v12 = vld [vmem:[#allocation3 + $0x4f0] sm:$0xff]  ;;  %v519_v29 = vld [vmem:[#allocation3 + $0x6a8] sm:$0xff] }
  0xa7   :  { %1310 = vmatpush1.bf16.msra.mxu0 %v926_v28  ;;  %1244 = vmatprep.mubr.bf16.mxu0 %v3769_v31  ;;  %v943_v28 = vpack.c.bf16 %v487_v19, %v483_v18  ;;  %v473_v18 = vld [vmem:[#allocation3 + $0x538] sm:$0xff]  ;;  %v950_v19 = vpack.c.bf16 %v502_v63, %v498_v62  ;;  %v468_v24 = vld [vmem:[#allocation3 + $0x510] sm:$0xff]  ;;  %v518_v37 = vld [vmem:[#allocation3 + $0x6a0] sm:$0xff] }
  0xa8   :  { %1311 = vmatprep.subr.bf16.mxu0 %v931_v33  ;;  %v925_v33 = vpack.c.bf16 %v449_v22, %v445_v21  ;;  %v932_v21 = vpack.c.bf16 %v464_v12, %v460_v5  ;;  %v955_v22 = vpack.c.bf16 %v511_v14, %v507_v13  ;;  %v937_v26 = vpack.c.bf16 %v473_v18, %v469_v17  ;;  %v476_v41 = vld [vmem:[#allocation3 + $0x550] sm:$0xff]  ;;  %v535_v5 = vld [vmem:[#allocation3 + $0x728] sm:$0xff]  ;;  %v530_v12 = vld [vmem:[#allocation3 + $0x700] sm:$0xff] }
  0xa9   :  { %1784 = vmatpush1.bf16.msra.mxu1 %v908_v32  ;;  %v172_v32 = vld [vmem:[%s4623_s0 + $0x290] sm:$0xff]  ;;  %v534_v13 = vld [vmem:[#allocation3 + $0x720] sm:$0xff] }
  0xaa   :  { %1785 = vmatprep.subr.bf16.mxu1 %v913_v39  ;;  %v3812_v44 = vpack.c.bf16 %v172_v32, %v163_v30  ;;  %v477_v30 = vld [vmem:[#allocation3 + $0x558] sm:$0xff]  ;;  %v484_v62 = vld [vmem:[#allocation3 + $0x590] sm:$0xff] }
  0xab   :  { %1312 = vmatpush1.bf16.msra.mxu0 %v930_v48  ;;  %v490_v48 = vld [vmem:[#allocation3 + $0x5c0] sm:$0xff]  ;;  %v481_v32 = vld [vmem:[#allocation3 + $0x578] sm:$0xff]  ;;  %v492_v18 = vld [vmem:[#allocation3 + $0x5d0] sm:$0xff] }
  0xac   :  { %2979 = vmatmul.mubr.msk.bf16.gmra.mrb[28].mxu1 %vm1152_vm1, %v3776_v47  ;;  %1313 = vmatprep.subr.bf16.mxu0 %v935_v56  ;;  %v499_v56 = vld [vmem:[#allocation3 + $0x608] sm:$0xff] }
  0xad   :  { %1786 = vmatpush1.bf16.msra.mxu1 %v912_v55  ;;  %1789 = vmatprep.mubr.bf16.mxu1 %v3693_v52  ;;  %v153_v52 = vld [vmem:[%s4623_s0 + $0x1f8] sm:$0xff]  ;;  %v456_v55 = vld [vmem:[#allocation3 + $0x4b0] sm:$0xff]  ;;  %v951_v3 = vpack.c.bf16 %v503_v57, %v499_v56  ;;  %v958_v57 = vpack.c.bf16 %v518_v37, %v514_v36 }
  0xae   :  { %1787 = vmatprep.subr.bf16.mxu1 %v917_v61  ;;  %1245 = vmatmul.mubr.bf16.gmra.mrb[8].mxu0 %v3788_v2  ;;  %v3809_v39 = vpack.c.bf16 %v153_v52, %v144_v20  ;;  %v946_v61 = vpack.c.bf16 %v494_v49, %v490_v48  ;;  %v928_v1 = vpack.c.bf16 %v456_v55, %v452_v53  ;;  %v510_v52 = vld [vmem:[#allocation3 + $0x660] sm:$0xff]  ;;  %v480_v48 = vld [vmem:[#allocation3 + $0x570] sm:$0xff]  ;;  %v523_v49 = vld [vmem:[#allocation3 + $0x6c8] sm:$0xff] }
  0xaf   :  { %1314 = vmatpush1.bf16.msra.mxu0 %v934_v6  ;;  %1254 = vmatprep.mubr.bf16.mxu0 %v3792_v8  ;;  %v181_v6 = vld [vmem:[%s4623_s0 + $0x2d8] sm:$0xff]  ;;  %v527_v53 = vld [vmem:[#allocation3 + $0x6e8] sm:$0xff]  ;;  %v500_v36 = vld [vmem:[#allocation3 + $0x610] sm:$0xff] }
  0xb0   :  { %1315 = vmatprep.subr.bf16.mxu0 %v939_v11  ;;  %v933_v11 = vpack.c.bf16 %v465_v60, %v461_v59  ;;  %v485_v55 = vld [vmem:[#allocation3 + $0x598] sm:$0xff]  ;;  %v940_v59 = vpack.c.bf16 %v480_v48, %v476_v41  ;;  %v963_v60 = vpack.c.bf16 %v527_v53, %v523_v49  ;;  %v551_v41 = vld [vmem:[#allocation3 + $0x7a8] sm:$0xff]  ;;  %v546_v48 = vld [vmem:[#allocation3 + $0x780] sm:$0xff] }
  0xb1   :  { %1788 = vmatpush1.bf16.msra.mxu1 %v916_v9  ;;  %v190_v9 = vld [vmem:[%s4623_s0 + $0x320] sm:$0xff]  ;;  %v489_v56 = vld [vmem:[#allocation3 + $0x5b8] sm:$0xff]  ;;  %v2399_v0 = vld [vmem:[#allocation7 + $0x68] sm:$0xff] }
  0xb2   :  { %1870 = vmatprep.subr.bf16.mxu1 %v921_v16  ;;  %v3832_v20 = vpack.c.bf16 %v190_v9, %v181_v6  ;;  %v945_v63 = vpack.c.bf16 %v489_v56, %v485_v55  ;;  %v493_v6 = vld [vmem:[#allocation3 + $0x5d8] sm:$0xff]  ;;  %v550_v49 = vld [vmem:[#allocation3 + $0x7a0] sm:$0xff]  ;;  %v508_v56 = vld [vmem:[#allocation3 + $0x650] sm:$0xff] }
  0xb3   :  { %1316 = vmatpush1.bf16.msra.mxu0 %v938_v23  ;;  %v506_v23 = vld [vmem:[#allocation3 + $0x640] sm:$0xff]  ;;  %v497_v9 = vld [vmem:[#allocation3 + $0x5f8] sm:$0xff] }
  0xb4   :  { %1790 = vmatmul.mubr.bf16.vlgmr.msra.gmra.mrb[32].mxu1 %v3730_v51  ;;  %1317 = vmatprep.subr.bf16.mxu0 %v943_v28  ;;  %v162_v51 = vld [vmem:[%s4623_s0 + $0x240] sm:$0xff]  ;;  %v515_v28 = vld [vmem:[#allocation3 + $0x688] sm:$0xff] }
  0xb5   :  { %1871 = vmatpush1.bf16.msra.mxu1 %v920_v27  ;;  %1799 = vmatprep.mubr.bf16.mxu1 %v3740_v58  ;;  %v171_v58 = vld [vmem:[%s4623_s0 + $0x288] sm:$0xff]  ;;  %v472_v27 = vld [vmem:[#allocation3 + $0x530] sm:$0xff]  ;;  %v959_v40 = vpack.c.bf16 %v519_v29, %v515_v28  ;;  %v505_v28 = vld [vmem:[#allocation3 + $0x638] sm:$0xff]  ;;  %v966_v29 = vpack.c.bf16 %v534_v13, %v530_v12 }
  0xb6   :  { %1872 = vmatprep.subr.bf16.mxu1 %v925_v33  ;;  %1255 = vmatmul.mubr.bf16.gmra.mrb[12].mxu0 %v3809_v39  ;;  %v3829_v16 = vpack.c.bf16 %v171_v58, %v162_v51  ;;  %v954_v33 = vpack.c.bf16 %v510_v52, %v506_v23  ;;  %v936_v38 = vpack.c.bf16 %v472_v27, %v468_v24  ;;  %v526_v58 = vld [vmem:[#allocation3 + $0x6e0] sm:$0xff]  ;;  %v496_v23 = vld [vmem:[#allocation3 + $0x5f0] sm:$0xff]  ;;  %v539_v52 = vld [vmem:[#allocation3 + $0x748] sm:$0xff] }
  0xb7   :  { %1318 = vmatpush1.bf16.msra.mxu0 %v942_v43  ;;  %1264 = vmatprep.mubr.bf16.mxu0 %v3812_v44  ;;  %v199_v43 = vld [vmem:[%s4623_s0 + $0x368] sm:$0xff]  ;;  %v501_v27 = vld [vmem:[#allocation3 + $0x618] sm:$0xff]  ;;  %v516_v12 = vld [vmem:[#allocation3 + $0x690] sm:$0xff] }
  0xb8   :  { %1319 = vmatprep.subr.bf16.mxu0 %v947_v46  ;;  %v941_v46 = vpack.c.bf16 %v481_v32, %v477_v30  ;;  %v543_v24 = vld [vmem:[#allocation3 + $0x768] sm:$0xff]  ;;  %v948_v30 = vpack.c.bf16 %v496_v23, %v492_v18  ;;  %v953_v37 = vpack.c.bf16 %v505_v28, %v501_v27  ;;  %v562_v23 = vld [vmem:[#allocation3 + $0x800] sm:$0xff]  ;;  %v524_v28 = vld [vmem:[#allocation3 + $0x6d0] sm:$0xff] }
  0xb9   :  { %1873 = vmatpush1.bf16.msra.mxu1 %v924_v45  ;;  %v208_v45 = vld [vmem:[%s4623_s0 + $0x3b0] sm:$0xff]  ;;  %v971_v32 = vpack.c.bf16 %v543_v24, %v539_v52  ;;  %v567_v18 = vld [vmem:[#allocation3 + $0x828] sm:$0xff]  ;;  %v566_v52 = vld [vmem:[#allocation3 + $0x820] sm:$0xff] }
  0xba   :  { %1874 = vmatprep.subr.bf16.mxu1 %v929_v54  ;;  %v3852_v51 = vpack.c.bf16 %v208_v45, %v199_v43  ;;  %v509_v43 = vld [vmem:[#allocation3 + $0x658] sm:$0xff] }
  0xbb   :  { %1320 = vmatpush1.bf16.msra.mxu0 %v946_v61  ;;  %v522_v61 = vld [vmem:[#allocation3 + $0x6c0] sm:$0xff]  ;;  %v513_v45 = vld [vmem:[#allocation3 + $0x678] sm:$0xff] }
  0xbc   :  { %1800 = vmatmul.mubr.bf16.gmra.mrb[36].mxu1 %v3759_v25  ;;  %1321 = vmatprep.subr.bf16.mxu0 %v951_v3  ;;  %v180_v25 = vld [vmem:[%s4623_s0 + $0x2d0] sm:$0xff]  ;;  %v531_v3 = vld [vmem:[#allocation3 + $0x708] sm:$0xff] }
  0xbd   :  { %1875 = vmatpush1.bf16.msra.mxu1 %v928_v1  ;;  %1809 = vmatprep.mubr.bf16.mxu1 %v3769_v31  ;;  %v189_v31 = vld [vmem:[%s4623_s0 + $0x318] sm:$0xff]  ;;  %v488_v1 = vld [vmem:[#allocation3 + $0x5b0] sm:$0xff]  ;;  %v967_v17 = vpack.c.bf16 %v535_v5, %v531_v3  ;;  %v974_v5 = vpack.c.bf16 %v550_v49, %v546_v48 }
  0xbe   :  { %1876 = vmatprep.subr.bf16.mxu1 %v933_v11  ;;  %1265 = vmatmul.mubr.bf16.gmra.mrb[16].mxu0 %v3829_v16  ;;  %v3849_v54 = vpack.c.bf16 %v189_v31, %v180_v25  ;;  %v962_v11 = vpack.c.bf16 %v526_v58, %v522_v61  ;;  %v944_v14 = vpack.c.bf16 %v488_v1, %v484_v62  ;;  %v542_v31 = vld [vmem:[#allocation3 + $0x760] sm:$0xff]  ;;  %v512_v61 = vld [vmem:[#allocation3 + $0x670] sm:$0xff]  ;;  %v555_v58 = vld [vmem:[#allocation3 + $0x7c8] sm:$0xff] }
  0xbf   :  { %1322 = vmatpush1.bf16.msra.mxu0 %v950_v19  ;;  %1274 = vmatprep.mubr.bf16.mxu0 %v3832_v20  ;;  %v217_v19 = vld [vmem:[%s4623_s0 + $0x3f8] sm:$0xff]  ;;  %v559_v62 = vld [vmem:[#allocation3 + $0x7e8] sm:$0xff]  ;;  %v532_v48 = vld [vmem:[#allocation3 + $0x710] sm:$0xff] }
  0xc0   :  { %1323 = vmatprep.subr.bf16.mxu0 %v955_v22  ;;  %v949_v22 = vpack.c.bf16 %v497_v9, %v493_v6  ;;  %v517_v1 = vld [vmem:[#allocation3 + $0x698] sm:$0xff]  ;;  %v956_v6 = vpack.c.bf16 %v512_v61, %v508_v56  ;;  %v979_v9 = vpack.c.bf16 %v559_v62, %v555_v58  ;;  %v583_v56 = vld [vmem:[#allocation3 + $0x8a8] sm:$0xff]  ;;  %v578_v61 = vld [vmem:[#allocation3 + $0x880] sm:$0xff] }
  0xc1   :  { %1877 = vmatpush1.bf16.msra.mxu1 %v932_v21  ;;  %v226_v21 = vld [vmem:[%s4623_s0 + $0x440] sm:$0xff]  ;;  %v521_v3 = vld [vmem:[#allocation3 + $0x6b8] sm:$0xff] }
  0xc2   :  { %1878 = vmatprep.subr.bf16.mxu1 %v937_v26  ;;  %v3872_v25 = vpack.c.bf16 %v226_v21, %v217_v19  ;;  %v961_v13 = vpack.c.bf16 %v521_v3, %v517_v1  ;;  %v525_v19 = vld [vmem:[#allocation3 + $0x6d8] sm:$0xff]  ;;  %v582_v58 = vld [vmem:[#allocation3 + $0x8a0] sm:$0xff]  ;;  %v540_v3 = vld [vmem:[#allocation3 + $0x750] sm:$0xff] }
  0xc3   :  { %1324 = vmatpush1.bf16.msra.mxu0 %v954_v33  ;;  %v538_v33 = vld [vmem:[#allocation3 + $0x740] sm:$0xff]  ;;  %v529_v21 = vld [vmem:[#allocation3 + $0x6f8] sm:$0xff] }
  0xc4   :  { %1810 = vmatmul.mubr.bf16.gmra.mrb[40].mxu1 %v3788_v2  ;;  %1325 = vmatprep.subr.bf16.mxu0 %v959_v40  ;;  %v198_v2 = vld [vmem:[%s4623_s0 + $0x360] sm:$0xff]  ;;  %v547_v40 = vld [vmem:[#allocation3 + $0x788] sm:$0xff] }
  0xc5   :  { %1879 = vmatpush1.bf16.msra.mxu1 %v936_v38  ;;  %1819 = vmatprep.mubr.bf16.mxu1 %v3792_v8  ;;  %v207_v8 = vld [vmem:[%s4623_s0 + $0x3a8] sm:$0xff]  ;;  %v504_v38 = vld [vmem:[#allocation3 + $0x630] sm:$0xff]  ;;  %v975_v55 = vpack.c.bf16 %v551_v41, %v547_v40  ;;  %v537_v40 = vld [vmem:[#allocation3 + $0x738] sm:$0xff]  ;;  %v982_v41 = vpack.c.bf16 %v566_v52, %v562_v23 }
  0xc6   :  { %1880 = vmatprep.subr.bf16.mxu1 %v941_v46  ;;  %1275 = vmatmul.mubr.bf16.gmra.mrb[20].mxu0 %v3849_v54  ;;  %v3869_v26 = vpack.c.bf16 %v207_v8, %v198_v2  ;;  %v970_v46 = vpack.c.bf16 %v542_v31, %v538_v33  ;;  %v952_v53 = vpack.c.bf16 %v504_v38, %v500_v36  ;;  %v558_v8 = vld [vmem:[#allocation3 + $0x7e0] sm:$0xff]  ;;  %v528_v33 = vld [vmem:[#allocation3 + $0x6f0] sm:$0xff]  ;;  %v571_v31 = vld [vmem:[#allocation3 + $0x848] sm:$0xff] }
  0xc7   :  { %1326 = vmatpush1.bf16.msra.mxu0 %v958_v57  ;;  %1284 = vmatprep.mubr.bf16.mxu0 %v3852_v51  ;;  %v93_v57 = vld [vmem:[%s4623_s0 + $0x18] sm:$0xff]  ;;  %v575_v36 = vld [vmem:[#allocation3 + $0x868] sm:$0xff]  ;;  %v548_v23 = vld [vmem:[#allocation3 + $0x790] sm:$0xff] }
  0xc8   :  { %1327 = vmatprep.subr.bf16.mxu0 %v963_v60  ;;  %v957_v60 = vpack.c.bf16 %v513_v45, %v509_v43  ;;  %v533_v38 = vld [vmem:[#allocation3 + $0x718] sm:$0xff]  ;;  %v964_v43 = vpack.c.bf16 %v528_v33, %v524_v28  ;;  %v987_v45 = vpack.c.bf16 %v575_v36, %v571_v31  ;;  %v599_v28 = vld [vmem:[#allocation3 + $0x928] sm:$0xff]  ;;  %v594_v33 = vld [vmem:[#allocation3 + $0x900] sm:$0xff] }
  0xc9   :  { %1881 = vmatpush1.bf16.msra.mxu1 %v940_v59  ;;  %v102_v59 = vld [vmem:[%s4623_s0 + $0x60] sm:$0xff]  ;;  %v969_v49 = vpack.c.bf16 %v537_v40, %v533_v38  ;;  %v556_v40 = vld [vmem:[#allocation3 + $0x7d0] sm:$0xff] }
  0xca   :  { %1882 = vmatprep.subr.bf16.mxu1 %v945_v63  ;;  %v3892_v2 = vpack.c.bf16 %v102_v59, %v93_v57  ;;  %v541_v57 = vld [vmem:[#allocation3 + $0x758] sm:$0xff]  ;;  %v598_v31 = vld [vmem:[#allocation3 + $0x920] sm:$0xff] }
  0xcb   :  { %1328 = vmatpush1.bf16.msra.mxu0 %v962_v11  ;;  %v554_v11 = vld [vmem:[#allocation3 + $0x7c0] sm:$0xff]  ;;  %v545_v59 = vld [vmem:[#allocation3 + $0x778] sm:$0xff] }
  0xcc   :  { %1820 = vmatmul.mubr.bf16.gmra.mrb[44].mxu1 %v3809_v39  ;;  %1329 = vmatprep.subr.bf16.mxu0 %v967_v17  ;;  %v216_v39 = vld [vmem:[%s4623_s0 + $0x3f0] sm:$0xff]  ;;  %v563_v17 = vld [vmem:[#allocation3 + $0x808] sm:$0xff] }
  0xcd   :  { %1883 = vmatpush1.bf16.msra.mxu1 %v944_v14  ;;  %1829 = vmatprep.mubr.bf16.mxu1 %v3812_v44  ;;  %v225_v44 = vld [vmem:[%s4623_s0 + $0x438] sm:$0xff]  ;;  %v520_v14 = vld [vmem:[#allocation3 + $0x6b0] sm:$0xff]  ;;  %v983_v27 = vpack.c.bf16 %v567_v18, %v563_v17  ;;  %v990_v18 = vpack.c.bf16 %v582_v58, %v578_v61 }
  0xce   :  { %1884 = vmatprep.subr.bf16.mxu1 %v949_v22  ;;  %1285 = vmatmul.mubr.bf16.gmra.mrb[24].mxu0 %v3869_v26  ;;  %v3889_v63 = vpack.c.bf16 %v225_v44, %v216_v39  ;;  %v978_v22 = vpack.c.bf16 %v558_v8, %v554_v11  ;;  %v960_v24 = vpack.c.bf16 %v520_v14, %v516_v12  ;;  %v574_v44 = vld [vmem:[#allocation3 + $0x860] sm:$0xff]  ;;  %v544_v11 = vld [vmem:[#allocation3 + $0x770] sm:$0xff]  ;;  %v587_v8 = vld [vmem:[#allocation3 + $0x8c8] sm:$0xff] }
  0xcf   :  { %1330 = vmatpush1.bf16.msra.mxu0 %v966_v29  ;;  %1294 = vmatprep.mubr.bf16.mxu0 %v3872_v25  ;;  %v111_v29 = vld [vmem:[%s4623_s0 + $0xa8] sm:$0xff]  ;;  %v549_v14 = vld [vmem:[#allocation3 + $0x798] sm:$0xff]  ;;  %v564_v61 = vld [vmem:[#allocation3 + $0x810] sm:$0xff] }
  0xd0   :  { %1331 = vmatprep.subr.bf16.mxu0 %v971_v32  ;;  %v965_v32 = vpack.c.bf16 %v529_v21, %v525_v19  ;;  %v591_v12 = vld [vmem:[#allocation3 + $0x8e8] sm:$0xff]  ;;  %v553_v17 = vld [vmem:[#allocation3 + $0x7b8] sm:$0xff]  ;;  %v972_v19 = vpack.c.bf16 %v544_v11, %v540_v3  ;;  %v610_v11 = vld [vmem:[#allocation3 + $0x980] sm:$0xff] }
  0xd1   :  { %1885 = vmatpush1.bf16.msra.mxu1 %v948_v30  ;;  %v120_v30 = vld [vmem:[%s4623_s0 + $0xf0] sm:$0xff]  ;;  %v995_v21 = vpack.c.bf16 %v591_v12, %v587_v8  ;;  %v977_v52 = vpack.c.bf16 %v553_v17, %v549_v14  ;;  %v615_v3 = vld [vmem:[#allocation3 + $0x9a8] sm:$0xff]  ;;  %v614_v8 = vld [vmem:[#allocation3 + $0x9a0] sm:$0xff] }
  0xd2   :  { %1886 = vmatprep.subr.bf16.mxu1 %v953_v37  ;;  %v3912_v39 = vpack.c.bf16 %v120_v30, %v111_v29  ;;  %v557_v29 = vld [vmem:[#allocation3 + $0x7d8] sm:$0xff]  ;;  %v572_v17 = vld [vmem:[#allocation3 + $0x850] sm:$0xff] }
  0xd3   :  { %1332 = vmatpush1.bf16.msra.mxu0 %v970_v46  ;;  %v570_v46 = vld [vmem:[#allocation3 + $0x840] sm:$0xff]  ;;  %v561_v30 = vld [vmem:[#allocation3 + $0x7f8] sm:$0xff] }
  0xd4   :  { %1830 = vmatmul.mubr.bf16.gmra.mrb[48].mxu1 %v3829_v16  ;;  %1333 = vmatprep.subr.bf16.mxu0 %v975_v55  ;;  %v92_v16 = vld [vmem:[%s4623_s0 + $0x10] sm:$0xff]  ;;  %v579_v55 = vld [vmem:[#allocation3 + $0x888] sm:$0xff] }
  0xd5   :  { %1887 = vmatpush1.bf16.msra.mxu1 %v952_v53  ;;  %1839 = vmatprep.mubr.bf16.mxu1 %v3832_v20  ;;  %v101_v20 = vld [vmem:[%s4623_s0 + $0x58] sm:$0xff]  ;;  %v536_v53 = vld [vmem:[#allocation3 + $0x730] sm:$0xff]  ;;  %v991_v1 = vpack.c.bf16 %v583_v56, %v579_v55  ;;  %v998_v56 = vpack.c.bf16 %v598_v31, %v594_v33 }
  0xd6   :  { %1888 = vmatprep.subr.bf16.mxu1 %v957_v60  ;;  %1295 = vmatmul.mubr.bf16.gmra.mrb[28].mxu0 %v3889_v63  ;;  %v3909_v37 = vpack.c.bf16 %v101_v20, %v92_v16  ;;  %v986_v60 = vpack.c.bf16 %v574_v44, %v570_v46  ;;  %v968_v62 = vpack.c.bf16 %v536_v53, %v532_v48  ;;  %v590_v20 = vld [vmem:[#allocation3 + $0x8e0] sm:$0xff]  ;;  %v560_v46 = vld [vmem:[#allocation3 + $0x7f0] sm:$0xff]  ;;  %v603_v44 = vld [vmem:[#allocation3 + $0x948] sm:$0xff] }
  0xd7   :  { %1334 = vmatpush1.bf16.msra.mxu0 %v974_v5  ;;  %1337 = vmatprep.mubr.bf16.mxu0 %v3892_v2  ;;  %v129_v5 = vld [vmem:[%s4623_s0 + $0x138] sm:$0xff]  ;;  %v607_v48 = vld [vmem:[#allocation3 + $0x968] sm:$0xff]  ;;  %v580_v33 = vld [vmem:[#allocation3 + $0x890] sm:$0xff] }
  0xd8   :  { %1335 = vmatprep.subr.bf16.mxu0 %v979_v9  ;;  %v973_v9 = vpack.c.bf16 %v545_v59, %v541_v57  ;;  %v565_v53 = vld [vmem:[#allocation3 + $0x818] sm:$0xff]  ;;  %v980_v57 = vpack.c.bf16 %v560_v46, %v556_v40  ;;  %v1003_v59 = vpack.c.bf16 %v607_v48, %v603_v44  ;;  %v631_v40 = vld [vmem:[#allocation3 + $0xa28] sm:$0xff]  ;;  %v626_v46 = vld [vmem:[#allocation3 + $0xa00] sm:$0xff] }
  0xd9   :  { %1889 = vmatpush1.bf16.msra.mxu1 %v956_v6  ;;  %v138_v6 = vld [vmem:[%s4623_s0 + $0x180] sm:$0xff]  ;;  %v569_v55 = vld [vmem:[#allocation3 + $0x838] sm:$0xff] }
  0xda   :  { %1890 = vmatprep.subr.bf16.mxu1 %v961_v13  ;;  %v3932_v16 = vpack.c.bf16 %v138_v6, %v129_v5  ;;  %v985_v58 = vpack.c.bf16 %v569_v55, %v565_v53  ;;  %v573_v5 = vld [vmem:[#allocation3 + $0x858] sm:$0xff]  ;;  %v630_v44 = vld [vmem:[#allocation3 + $0xa20] sm:$0xff]  ;;  %v588_v55 = vld [vmem:[#allocation3 + $0x8d0] sm:$0xff] }
  0xdb   :  { %1336 = vmatpush1.bf16.msra.mxu0 %v978_v22  ;;  %v586_v22 = vld [vmem:[#allocation3 + $0x8c0] sm:$0xff]  ;;  %v577_v6 = vld [vmem:[#allocation3 + $0x878] sm:$0xff] }
  0xdc   :  { %1840 = vmatmul.mubr.bf16.gmra.mrb[52].mxu1 %v3849_v54  ;;  %1418 = vmatprep.subr.bf16.mxu0 %v983_v27  ;;  %v110_v54 = vld [vmem:[%s4623_s0 + $0xa0] sm:$0xff]  ;;  %v595_v27 = vld [vmem:[#allocation3 + $0x908] sm:$0xff] }
  0xdd   :  { %1891 = vmatpush1.bf16.msra.mxu1 %v960_v24  ;;  %1849 = vmatprep.mubr.bf16.mxu1 %v3852_v51  ;;  %v119_v51 = vld [vmem:[%s4623_s0 + $0xe8] sm:$0xff]  ;;  %v552_v24 = vld [vmem:[#allocation3 + $0x7b0] sm:$0xff]  ;;  %v999_v38 = vpack.c.bf16 %v599_v28, %v595_v27  ;;  %v585_v27 = vld [vmem:[#allocation3 + $0x8b8] sm:$0xff]  ;;  %v1006_v28 = vpack.c.bf16 %v614_v8, %v610_v11 }
  0xde   :  { %1892 = vmatprep.subr.bf16.mxu1 %v965_v32  ;;  %1338 = vmatmul.mubr.bf16.vlgmr.msra.gmra.mrb[0].mxu0 %v3909_v37  ;;  %v3929_v13 = vpack.c.bf16 %v119_v51, %v110_v54  ;;  %v994_v32 = vpack.c.bf16 %v590_v20, %v586_v22  ;;  %v976_v36 = vpack.c.bf16 %v552_v24, %v548_v23  ;;  %v606_v51 = vld [vmem:[#allocation3 + $0x960] sm:$0xff]  ;;  %v576_v22 = vld [vmem:[#allocation3 + $0x870] sm:$0xff]  ;;  %v619_v20 = vld [vmem:[#allocation3 + $0x9c8] sm:$0xff] }
  0xdf   :  { %1419 = vmatpush1.bf16.msra.mxu0 %v982_v41  ;;  %1347 = vmatprep.mubr.bf16.mxu0 %v3912_v39  ;;  %v147_v41 = vld [vmem:[%s4623_s0 + $0x1c8] sm:$0xff]  ;;  %v581_v24 = vld [vmem:[#allocation3 + $0x898] sm:$0xff]  ;;  %v596_v11 = vld [vmem:[#allocation3 + $0x910] sm:$0xff] }
  0xe0   :  { %1420 = vmatprep.subr.bf16.mxu0 %v987_v45  ;;  %v981_v45 = vpack.c.bf16 %v561_v30, %v557_v29  ;;  %v623_v23 = vld [vmem:[#allocation3 + $0x9e8] sm:$0xff]  ;;  %v988_v29 = vpack.c.bf16 %v576_v22, %v572_v17  ;;  %v993_v31 = vpack.c.bf16 %v585_v27, %v581_v24  ;;  %v642_v22 = vld [vmem:[#allocation3 + $0xa80] sm:$0xff]  ;;  %v604_v27 = vld [vmem:[#allocation3 + $0x950] sm:$0xff] }
  0xe1   :  { %1893 = vmatpush1.bf16.msra.mxu1 %v964_v43  ;;  %v156_v43 = vld [vmem:[%s4623_s0 + $0x210] sm:$0xff]  ;;  %v1011_v30 = vpack.c.bf16 %v623_v23, %v619_v20  ;;  %v647_v17 = vld [vmem:[#allocation3 + $0xaa8] sm:$0xff]  ;;  %v646_v20 = vld [vmem:[#allocation3 + $0xaa0] sm:$0xff] }
  0xe2   :  { %1894 = vmatprep.subr.bf16.mxu1 %v969_v49  ;;  %v3952_v54 = vpack.c.bf16 %v156_v43, %v147_v41  ;;  %v589_v41 = vld [vmem:[#allocation3 + $0x8d8] sm:$0xff] }
  0xe3   :  { %1421 = vmatpush1.bf16.msra.mxu0 %v986_v60  ;;  %v602_v60 = vld [vmem:[#allocation3 + $0x940] sm:$0xff]  ;;  %v593_v43 = vld [vmem:[#allocation3 + $0x8f8] sm:$0xff] }
  0xe4   :  { %1850 = vmatmul.mubr.bf16.gmra.mrb[56].mxu1 %v3869_v26  ;;  %1422 = vmatprep.subr.bf16.mxu0 %v991_v1  ;;  %v128_v26 = vld [vmem:[%s4623_s0 + $0x130] sm:$0xff]  ;;  %v611_v1 = vld [vmem:[#allocation3 + $0x988] sm:$0xff] }
  0xe5   :  { %1895 = vmatpush1.bf16.msra.mxu1 %v968_v62  ;;  %1859 = vmatprep.mubr.bf16.mxu1 %v3872_v25  ;;  %v137_v25 = vld [vmem:[%s4623_s0 + $0x178] sm:$0xff]  ;;  %v568_v62 = vld [vmem:[#allocation3 + $0x830] sm:$0xff]  ;;  %v1007_v14 = vpack.c.bf16 %v615_v3, %v611_v1  ;;  %v1014_v3 = vpack.c.bf16 %v630_v44, %v626_v46 }
  0xe6   :  { %1896 = vmatprep.subr.bf16.mxu1 %v973_v9  ;;  %1348 = vmatmul.mubr.bf16.gmra.mrb[4].mxu0 %v3929_v13  ;;  %v3949_v49 = vpack.c.bf16 %v137_v25, %v128_v26  ;;  %v1002_v9 = vpack.c.bf16 %v606_v51, %v602_v60  ;;  %v984_v12 = vpack.c.bf16 %v568_v62, %v564_v61  ;;  %v622_v25 = vld [vmem:[#allocation3 + $0x9e0] sm:$0xff]  ;;  %v592_v60 = vld [vmem:[#allocation3 + $0x8f0] sm:$0xff]  ;;  %v635_v51 = vld [vmem:[#allocation3 + $0xa48] sm:$0xff] }
  0xe7   :  { %1423 = vmatpush1.bf16.msra.mxu0 %v990_v18  ;;  %1357 = vmatprep.mubr.bf16.mxu0 %v3932_v16  ;;  %v165_v18 = vld [vmem:[%s4623_s0 + $0x258] sm:$0xff]  ;;  %v639_v61 = vld [vmem:[#allocation3 + $0xa68] sm:$0xff]  ;;  %v612_v46 = vld [vmem:[#allocation3 + $0x990] sm:$0xff] }
  0xe8   :  { %1424 = vmatprep.subr.bf16.mxu0 %v995_v21  ;;  %v989_v21 = vpack.c.bf16 %v577_v6, %v573_v5  ;;  %v597_v62 = vld [vmem:[#allocation3 + $0x918] sm:$0xff]  ;;  %v996_v5 = vpack.c.bf16 %v592_v60, %v588_v55  ;;  %v1019_v6 = vpack.c.bf16 %v639_v61, %v635_v51  ;;  %v663_v55 = vld [vmem:[#allocation3 + $0xb28] sm:$0xff]  ;;  %v658_v60 = vld [vmem:[#allocation3 + $0xb00] sm:$0xff] }
  0xe9   :  { %1897 = vmatpush1.bf16.msra.mxu1 %v972_v19  ;;  %v174_v19 = vld [vmem:[%s4623_s0 + $0x2a0] sm:$0xff]  ;;  %v601_v1 = vld [vmem:[#allocation3 + $0x938] sm:$0xff] }
  0xea   :  { %1898 = vmatprep.subr.bf16.mxu1 %v977_v52  ;;  %v3972_v26 = vpack.c.bf16 %v174_v19, %v165_v18  ;;  %v1001_v8 = vpack.c.bf16 %v601_v1, %v597_v62  ;;  %v605_v18 = vld [vmem:[#allocation3 + $0x958] sm:$0xff]  ;;  %v662_v51 = vld [vmem:[#allocation3 + $0xb20] sm:$0xff]  ;;  %v620_v1 = vld [vmem:[#allocation3 + $0x9d0] sm:$0xff] }
  0xeb   :  { %1425 = vmatpush1.bf16.msra.mxu0 %v994_v32  ;;  %v618_v32 = vld [vmem:[#allocation3 + $0x9c0] sm:$0xff]  ;;  %v609_v19 = vld [vmem:[#allocation3 + $0x978] sm:$0xff] }
  0xec   :  { %1860 = vmatmul.mubr.bf16.gmra.mrb[60].mxu1 %v3889_v63  ;;  %1426 = vmatprep.subr.bf16.mxu0 %v999_v38  ;;  %v146_v63 = vld [vmem:[%s4623_s0 + $0x1c0] sm:$0xff]  ;;  %v627_v38 = vld [vmem:[#allocation3 + $0xa08] sm:$0xff] }
  0xed   :  { %1899 = vmatpush1.bf16.msra.mxu1 %v976_v36  ;;  %1902 = vmatprep.mubr.bf16.mxu1 %v3892_v2  ;;  %v155_v2 = vld [vmem:[%s4623_s0 + $0x208] sm:$0xff]  ;;  %v584_v36 = vld [vmem:[#allocation3 + $0x8b0] sm:$0xff]  ;;  %v1015_v53 = vpack.c.bf16 %v631_v40, %v627_v38  ;;  %v617_v38 = vld [vmem:[#allocation3 + $0x9b8] sm:$0xff]  ;;  %v1022_v40 = vpack.c.bf16 %v646_v20, %v642_v22 }
  0xee   :  { %1900 = vmatprep.subr.bf16.mxu1 %v981_v45  ;;  %1358 = vmatmul.mubr.bf16.gmra.mrb[8].mxu0 %v3949_v49  ;;  %v3969_v52 = vpack.c.bf16 %v155_v2, %v146_v63  ;;  %v1010_v45 = vpack.c.bf16 %v622_v25, %v618_v32  ;;  %v992_v48 = vpack.c.bf16 %v584_v36, %v580_v33  ;;  %v638_v2 = vld [vmem:[#allocation3 + $0xa60] sm:$0xff]  ;;  %v608_v32 = vld [vmem:[#allocation3 + $0x970] sm:$0xff]  ;;  %v651_v25 = vld [vmem:[#allocation3 + $0xac8] sm:$0xff] }
  0xef   :  { %1427 = vmatpush1.bf16.msra.mxu0 %v998_v56  ;;  %1367 = vmatprep.mubr.bf16.mxu0 %v3952_v54  ;;  %v183_v56 = vld [vmem:[%s4623_s0 + $0x2e8] sm:$0xff]  ;;  %v613_v36 = vld [vmem:[#allocation3 + $0x998] sm:$0xff]  ;;  %v628_v22 = vld [vmem:[#allocation3 + $0xa10] sm:$0xff] }
  0xf0   :  { %1428 = vmatprep.subr.bf16.mxu0 %v1003_v59  ;;  %v997_v59 = vpack.c.bf16 %v593_v43, %v589_v41  ;;  %v655_v33 = vld [vmem:[#allocation3 + $0xae8] sm:$0xff]  ;;  %v1004_v41 = vpack.c.bf16 %v608_v32, %v604_v27  ;;  %v1009_v44 = vpack.c.bf16 %v617_v38, %v613_v36  ;;  %v674_v32 = vld [vmem:[#allocation3 + $0xb80] sm:$0xff]  ;;  %v636_v38 = vld [vmem:[#allocation3 + $0xa50] sm:$0xff] }
  0xf1   :  { %1901 = vmatpush1.bf16.msra.mxu1 %v980_v57  ;;  %v192_v57 = vld [vmem:[%s4623_s0 + $0x330] sm:$0xff]  ;;  %v1027_v43 = vpack.c.bf16 %v655_v33, %v651_v25  ;;  %v679_v27 = vld [vmem:[#allocation3 + $0xba8] sm:$0xff]  ;;  %v678_v25 = vld [vmem:[#allocation3 + $0xba0] sm:$0xff] }
  0xf2   :  { %1983 = vmatprep.subr.bf16.mxu1 %v985_v58  ;;  %v3992_v63 = vpack.c.bf16 %v192_v57, %v183_v56  ;;  %v621_v56 = vld [vmem:[#allocation3 + $0x9d8] sm:$0xff] }
  0xf3   :  { %1429 = vmatpush1.bf16.msra.mxu0 %v1002_v9  ;;  %v634_v9 = vld [vmem:[#allocation3 + $0xa40] sm:$0xff]  ;;  %v625_v57 = vld [vmem:[#allocation3 + $0x9f8] sm:$0xff] }
  0xf4   :  { %1903 = vmatmul.mubr.bf16.vlgmr.msra.gmra.mrb[32].mxu1 %v3909_v37  ;;  %1430 = vmatprep.subr.bf16.mxu0 %v1007_v14  ;;  %v164_v37 = vld [vmem:[%s4623_s0 + $0x250] sm:$0xff]  ;;  %v643_v14 = vld [vmem:[#allocation3 + $0xa88] sm:$0xff] }
  0xf5   :  { %1984 = vmatpush1.bf16.msra.mxu1 %v984_v12  ;;  %1912 = vmatprep.mubr.bf16.mxu1 %v3912_v39  ;;  %v173_v39 = vld [vmem:[%s4623_s0 + $0x298] sm:$0xff]  ;;  %v600_v12 = vld [vmem:[#allocation3 + $0x930] sm:$0xff]  ;;  %v1023_v24 = vpack.c.bf16 %v647_v17, %v643_v14  ;;  %v1030_v17 = vpack.c.bf16 %v662_v51, %v658_v60 }
  0xf6   :  { %1985 = vmatprep.subr.bf16.mxu1 %v989_v21  ;;  %1368 = vmatmul.mubr.bf16.gmra.mrb[12].mxu0 %v3969_v52  ;;  %v3989_v58 = vpack.c.bf16 %v173_v39, %v164_v37  ;;  %v1018_v21 = vpack.c.bf16 %v638_v2, %v634_v9  ;;  %v1000_v23 = vpack.c.bf16 %v600_v12, %v596_v11  ;;  %v654_v39 = vld [vmem:[#allocation3 + $0xae0] sm:$0xff]  ;;  %v624_v9 = vld [vmem:[#allocation3 + $0x9f0] sm:$0xff]  ;;  %v667_v2 = vld [vmem:[#allocation3 + $0xb48] sm:$0xff] }
  0xf7   :  { %1431 = vmatpush1.bf16.msra.mxu0 %v1006_v28  ;;  %1377 = vmatprep.mubr.bf16.mxu0 %v3972_v26  ;;  %v201_v28 = vld [vmem:[%s4623_s0 + $0x378] sm:$0xff]  ;;  %v671_v11 = vld [vmem:[#allocation3 + $0xb68] sm:$0xff]  ;;  %v644_v60 = vld [vmem:[#allocation3 + $0xa90] sm:$0xff] }
  0xf8   :  { %1432 = vmatprep.subr.bf16.mxu0 %v1011_v30  ;;  %v1005_v30 = vpack.c.bf16 %v609_v19, %v605_v18  ;;  %v629_v12 = vld [vmem:[#allocation3 + $0xa18] sm:$0xff]  ;;  %v1012_v18 = vpack.c.bf16 %v624_v9, %v620_v1  ;;  %v1035_v19 = vpack.c.bf16 %v671_v11, %v667_v2  ;;  %v695_v1 = vld [vmem:[#allocation3 + $0xc28] sm:$0xff]  ;;  %v690_v9 = vld [vmem:[#allocation3 + $0xc00] sm:$0xff] }
  0xf9   :  { %1986 = vmatpush1.bf16.msra.mxu1 %v988_v29  ;;  %v210_v29 = vld [vmem:[%s4623_s0 + $0x3c0] sm:$0xff]  ;;  %v633_v14 = vld [vmem:[#allocation3 + $0xa38] sm:$0xff] }
  0xfa   :  { %1987 = vmatprep.subr.bf16.mxu1 %v993_v31  ;;  %v4012_v37 = vpack.c.bf16 %v210_v29, %v201_v28  ;;  %v1017_v20 = vpack.c.bf16 %v633_v14, %v629_v12  ;;  %v637_v28 = vld [vmem:[#allocation3 + $0xa58] sm:$0xff]  ;;  %v694_v2 = vld [vmem:[#allocation3 + $0xc20] sm:$0xff]  ;;  %v652_v14 = vld [vmem:[#allocation3 + $0xad0] sm:$0xff] }
  0xfb   :  { %1433 = vmatpush1.bf16.msra.mxu0 %v1010_v45  ;;  %v650_v45 = vld [vmem:[#allocation3 + $0xac0] sm:$0xff]  ;;  %v641_v29 = vld [vmem:[#allocation3 + $0xa78] sm:$0xff] }
  0xfc   :  { %1913 = vmatmul.mubr.bf16.gmra.mrb[36].mxu1 %v3929_v13  ;;  %1434 = vmatprep.subr.bf16.mxu0 %v1015_v53  ;;  %v182_v13 = vld [vmem:[%s4623_s0 + $0x2e0] sm:$0xff]  ;;  %v659_v53 = vld [vmem:[#allocation3 + $0xb08] sm:$0xff] }
  0xfd   :  { %1988 = vmatpush1.bf16.msra.mxu1 %v992_v48  ;;  %1922 = vmatprep.mubr.bf16.mxu1 %v3932_v16  ;;  %v191_v16 = vld [vmem:[%s4623_s0 + $0x328] sm:$0xff]  ;;  %v616_v48 = vld [vmem:[#allocation3 + $0x9b0] sm:$0xff]  ;;  %v1031_v62 = vpack.c.bf16 %v663_v55, %v659_v53  ;;  %v649_v53 = vld [vmem:[#allocation3 + $0xab8] sm:$0xff]  ;;  %v1038_v55 = vpack.c.bf16 %v678_v25, %v674_v32 }
  0xfe   :  { %1989 = vmatprep.subr.bf16.mxu1 %v997_v59  ;;  %1378 = vmatmul.mubr.bf16.gmra.mrb[16].mxu0 %v3989_v58  ;;  %v4009_v31 = vpack.c.bf16 %v191_v16, %v182_v13  ;;  %v1026_v59 = vpack.c.bf16 %v654_v39, %v650_v45  ;;  %v1008_v61 = vpack.c.bf16 %v616_v48, %v612_v46  ;;  %v670_v16 = vld [vmem:[#allocation3 + $0xb60] sm:$0xff]  ;;  %v640_v45 = vld [vmem:[#allocation3 + $0xa70] sm:$0xff]  ;;  %v683_v39 = vld [vmem:[#allocation3 + $0xbc8] sm:$0xff] }
  0xff   :  { %1435 = vmatpush1.bf16.msra.mxu0 %v1014_v3  ;;  %1387 = vmatprep.mubr.bf16.mxu0 %v3992_v63  ;;  %v219_v3 = vld [vmem:[%s4623_s0 + $0x408] sm:$0xff]  ;;  %v645_v48 = vld [vmem:[#allocation3 + $0xa98] sm:$0xff]  ;;  %v660_v32 = vld [vmem:[#allocation3 + $0xb10] sm:$0xff] }
 0x100   :  { %1436 = vmatprep.subr.bf16.mxu0 %v1019_v6  ;;  %v1013_v6 = vpack.c.bf16 %v625_v57, %v621_v56  ;;  %v687_v46 = vld [vmem:[#allocation3 + $0xbe8] sm:$0xff]  ;;  %v1020_v56 = vpack.c.bf16 %v640_v45, %v636_v38  ;;  %v1025_v51 = vpack.c.bf16 %v649_v53, %v645_v48  ;;  %v706_v45 = vld [vmem:[#allocation3 + $0xc80] sm:$0xff]  ;;  %v668_v53 = vld [vmem:[#allocation3 + $0xb50] sm:$0xff] }
 0x101   :  { %1990 = vmatpush1.bf16.msra.mxu1 %v996_v5  ;;  %v228_v5 = vld [vmem:[%s4623_s0 + $0x450] sm:$0xff]  ;;  %v1043_v57 = vpack.c.bf16 %v687_v46, %v683_v39  ;;  %v711_v38 = vld [vmem:[#allocation3 + $0xca8] sm:$0xff]  ;;  %v710_v39 = vld [vmem:[#allocation3 + $0xca0] sm:$0xff] }
 0x102   :  { %1991 = vmatprep.subr.bf16.mxu1 %v1001_v8  ;;  %v4032_v13 = vpack.c.bf16 %v228_v5, %v219_v3  ;;  %v653_v3 = vld [vmem:[#allocation3 + $0xad8] sm:$0xff] }
 0x103   :  { %1437 = vmatpush1.bf16.msra.mxu0 %v1018_v21  ;;  %v666_v21 = vld [vmem:[#allocation3 + $0xb40] sm:$0xff]  ;;  %v657_v5 = vld [vmem:[#allocation3 + $0xaf8] sm:$0xff] }
 0x104   :  { %1923 = vmatmul.mubr.bf16.gmra.mrb[40].mxu1 %v3949_v49  ;;  %1438 = vmatprep.subr.bf16.mxu0 %v1023_v24  ;;  %v200_v49 = vld [vmem:[%s4623_s0 + $0x370] sm:$0xff]  ;;  %v675_v24 = vld [vmem:[#allocation3 + $0xb88] sm:$0xff] }
 0x105   :  { %1992 = vmatpush1.bf16.msra.mxu1 %v1000_v23  ;;  %1932 = vmatprep.mubr.bf16.mxu1 %v3952_v54  ;;  %v209_v54 = vld [vmem:[%s4623_s0 + $0x3b8] sm:$0xff]  ;;  %v632_v23 = vld [vmem:[#allocation3 + $0xa30] sm:$0xff]  ;;  %v1039_v36 = vpack.c.bf16 %v679_v27, %v675_v24  ;;  %v1046_v27 = vpack.c.bf16 %v694_v2, %v690_v9 }
 0x106   :  { %1993 = vmatprep.subr.bf16.mxu1 %v1005_v30  ;;  %1388 = vmatmul.mubr.bf16.gmra.mrb[20].mxu0 %v4009_v31  ;;  %v4029_v8 = vpack.c.bf16 %v209_v54, %v200_v49  ;;  %v1034_v30 = vpack.c.bf16 %v670_v16, %v666_v21  ;;  %v1016_v33 = vpack.c.bf16 %v632_v23, %v628_v22  ;;  %v686_v54 = vld [vmem:[#allocation3 + $0xbe0] sm:$0xff]  ;;  %v656_v21 = vld [vmem:[#allocation3 + $0xaf0] sm:$0xff]  ;;  %v699_v16 = vld [vmem:[#allocation3 + $0xc48] sm:$0xff] }
 0x107   :  { %1439 = vmatpush1.bf16.msra.mxu0 %v1022_v40  ;;  %1397 = vmatprep.mubr.bf16.mxu0 %v4012_v37  ;;  %v95_v40 = vld [vmem:[%s4623_s0 + $0x28] sm:$0xff]  ;;  %v661_v23 = vld [vmem:[#allocation3 + $0xb18] sm:$0xff]  ;;  %v676_v9 = vld [vmem:[#allocation3 + $0xb90] sm:$0xff] }
 0x108   :  { %1440 = vmatprep.subr.bf16.mxu0 %v1027_v43  ;;  %v1021_v43 = vpack.c.bf16 %v641_v29, %v637_v28  ;;  %v703_v22 = vld [vmem:[#allocation3 + $0xc68] sm:$0xff]  ;;  %v665_v24 = vld [vmem:[#allocation3 + $0xb38] sm:$0xff]  ;;  %v1028_v28 = vpack.c.bf16 %v656_v21, %v652_v14  ;;  %v722_v21 = vld [vmem:[#allocation3 + $0xd00] sm:$0xff] }
 0x109   :  { %1994 = vmatpush1.bf16.msra.mxu1 %v1004_v41  ;;  %v104_v41 = vld [vmem:[%s4623_s0 + $0x70] sm:$0xff]  ;;  %v1051_v29 = vpack.c.bf16 %v703_v22, %v699_v16  ;;  %v1033_v25 = vpack.c.bf16 %v665_v24, %v661_v23  ;;  %v727_v14 = vld [vmem:[#allocation3 + $0xd28] sm:$0xff]  ;;  %v726_v16 = vld [vmem:[#allocation3 + $0xd20] sm:$0xff] }
 0x10a   :  { %1995 = vmatprep.subr.bf16.mxu1 %v1009_v44  ;;  %v4052_v49 = vpack.c.bf16 %v104_v41, %v95_v40  ;;  %v669_v40 = vld [vmem:[#allocation3 + $0xb58] sm:$0xff]  ;;  %v684_v24 = vld [vmem:[#allocation3 + $0xbd0] sm:$0xff] }
 0x10b   :  { %1441 = vmatpush1.bf16.msra.mxu0 %v1026_v59  ;;  %v682_v59 = vld [vmem:[#allocation3 + $0xbc0] sm:$0xff]  ;;  %v673_v41 = vld [vmem:[#allocation3 + $0xb78] sm:$0xff] }
 0x10c   :  { %1933 = vmatmul.mubr.bf16.gmra.mrb[44].mxu1 %v3969_v52  ;;  %1442 = vmatprep.subr.bf16.mxu0 %v1031_v62  ;;  %v218_v52 = vld [vmem:[%s4623_s0 + $0x400] sm:$0xff]  ;;  %v691_v62 = vld [vmem:[#allocation3 + $0xc08] sm:$0xff] }
 0x10d   :  { %1996 = vmatpush1.bf16.msra.mxu1 %v1008_v61  ;;  %1942 = vmatprep.mubr.bf16.mxu1 %v3972_v26  ;;  %v227_v26 = vld [vmem:[%s4623_s0 + $0x448] sm:$0xff]  ;;  %v648_v61 = vld [vmem:[#allocation3 + $0xab0] sm:$0xff]  ;;  %v1047_v12 = vpack.c.bf16 %v695_v1, %v691_v62  ;;  %v681_v62 = vld [vmem:[#allocation3 + $0xbb8] sm:$0xff]  ;;  %v1054_v1 = vpack.c.bf16 %v710_v39, %v706_v45 }
 0x10e   :  { %1997 = vmatprep.subr.bf16.mxu1 %v1013_v6  ;;  %1398 = vmatmul.mubr.bf16.gmra.mrb[24].mxu0 %v4029_v8  ;;  %v4049_v44 = vpack.c.bf16 %v227_v26, %v218_v52  ;;  %v1042_v6 = vpack.c.bf16 %v686_v54, %v682_v59  ;;  %v1024_v11 = vpack.c.bf16 %v648_v61, %v644_v60  ;;  %v702_v26 = vld [vmem:[#allocation3 + $0xc60] sm:$0xff]  ;;  %v672_v59 = vld [vmem:[#allocation3 + $0xb70] sm:$0xff]  ;;  %v715_v54 = vld [vmem:[#allocation3 + $0xcc8] sm:$0xff] }
 0x10f   :  { %1443 = vmatpush1.bf16.msra.mxu0 %v1030_v17  ;;  %1407 = vmatprep.mubr.bf16.mxu0 %v4032_v13  ;;  %v113_v17 = vld [vmem:[%s4623_s0 + $0xb8] sm:$0xff]  ;;  %v719_v60 = vld [vmem:[#allocation3 + $0xce8] sm:$0xff]  ;;  %v692_v45 = vld [vmem:[#allocation3 + $0xc10] sm:$0xff] }
 0x110   :  { %1444 = vmatprep.subr.bf16.mxu0 %v1035_v19  ;;  %v1029_v19 = vpack.c.bf16 %v657_v5, %v653_v3  ;;  %v677_v61 = vld [vmem:[#allocation3 + $0xb98] sm:$0xff]  ;;  %v1036_v3 = vpack.c.bf16 %v672_v59, %v668_v53  ;;  %v1059_v5 = vpack.c.bf16 %v719_v60, %v715_v54  ;;  %v743_v53 = vld [vmem:[#allocation3 + $0xda8] sm:$0xff]  ;;  %v738_v59 = vld [vmem:[#allocation3 + $0xd80] sm:$0xff] }
 0x111   :  { %1998 = vmatpush1.bf16.msra.mxu1 %v1012_v18  ;;  %v122_v18 = vld [vmem:[%s4623_s0 + $0x100] sm:$0xff]  ;;  %v1041_v2 = vpack.c.bf16 %v681_v62, %v677_v61  ;;  %v700_v62 = vld [vmem:[#allocation3 + $0xc50] sm:$0xff] }
 0x112   :  { %1999 = vmatprep.subr.bf16.mxu1 %v1017_v20  ;;  %v4072_v52 = vpack.c.bf16 %v122_v18, %v113_v17  ;;  %v685_v17 = vld [vmem:[#allocation3 + $0xbd8] sm:$0xff]  ;;  %v742_v54 = vld [vmem:[#allocation3 + $0xda0] sm:$0xff] }
 0x113   :  { %1445 = vmatpush1.bf16.msra.mxu0 %v1034_v30  ;;  %v698_v30 = vld [vmem:[#allocation3 + $0xc40] sm:$0xff]  ;;  %v689_v18 = vld [vmem:[#allocation3 + $0xbf8] sm:$0xff] }
 0x114   :  { %1943 = vmatmul.mubr.bf16.gmra.mrb[48].mxu1 %v3989_v58  ;;  %1446 = vmatprep.subr.bf16.mxu0 %v1039_v36  ;;  %v94_v58 = vld [vmem:[%s4623_s0 + $0x20] sm:$0xff]  ;;  %v707_v36 = vld [vmem:[#allocation3 + $0xc88] sm:$0xff] }
 0x115   :  { %2000 = vmatpush1.bf16.msra.mxu1 %v1016_v33  ;;  %1952 = vmatprep.mubr.bf16.mxu1 %v3992_v63  ;;  %v103_v63 = vld [vmem:[%s4623_s0 + $0x68] sm:$0xff]  ;;  %v664_v33 = vld [vmem:[#allocation3 + $0xb30] sm:$0xff]  ;;  %v1055_v48 = vpack.c.bf16 %v711_v38, %v707_v36  ;;  %v697_v36 = vld [vmem:[#allocation3 + $0xc38] sm:$0xff]  ;;  %v1062_v38 = vpack.c.bf16 %v726_v16, %v722_v21 }
 0x116   :  { %2001 = vmatprep.subr.bf16.mxu1 %v1021_v43  ;;  %1408 = vmatmul.mubr.bf16.gmra.mrb[28].mxu0 %v4049_v44  ;;  %v4069_v20 = vpack.c.bf16 %v103_v63, %v94_v58  ;;  %v1050_v43 = vpack.c.bf16 %v702_v26, %v698_v30  ;;  %v1032_v46 = vpack.c.bf16 %v664_v33, %v660_v32  ;;  %v718_v63 = vld [vmem:[#allocation3 + $0xce0] sm:$0xff]  ;;  %v688_v30 = vld [vmem:[#allocation3 + $0xbf0] sm:$0xff]  ;;  %v731_v26 = vld [vmem:[#allocation3 + $0xd48] sm:$0xff] }
 0x117   :  { %1447 = vmatpush1.bf16.msra.mxu0 %v1038_v55  ;;  %1450 = vmatprep.mubr.bf16.mxu0 %v4052_v49  ;;  %v131_v55 = vld [vmem:[%s4623_s0 + $0x148] sm:$0xff]  ;;  %v693_v33 = vld [vmem:[#allocation3 + $0xc18] sm:$0xff]  ;;  %v708_v21 = vld [vmem:[#allocation3 + $0xc90] sm:$0xff] }
 0x118   :  { %1448 = vmatprep.subr.bf16.mxu0 %v1043_v57  ;;  %v1037_v57 = vpack.c.bf16 %v673_v41, %v669_v40  ;;  %v735_v32 = vld [vmem:[#allocation3 + $0xd68] sm:$0xff]  ;;  %v1044_v40 = vpack.c.bf16 %v688_v30, %v684_v24  ;;  %v1049_v39 = vpack.c.bf16 %v697_v36, %v693_v33  ;;  %v754_v30 = vld [vmem:[#allocation3 + $0xe00] sm:$0xff]  ;;  %v716_v36 = vld [vmem:[#allocation3 + $0xcd0] sm:$0xff] }
 0x119   :  { %2002 = vmatpush1.bf16.msra.mxu1 %v1020_v56  ;;  %v140_v56 = vld [vmem:[%s4623_s0 + $0x190] sm:$0xff]  ;;  %v1067_v41 = vpack.c.bf16 %v735_v32, %v731_v26  ;;  %v759_v24 = vld [vmem:[#allocation3 + $0xe28] sm:$0xff]  ;;  %v758_v26 = vld [vmem:[#allocation3 + $0xe20] sm:$0xff] }
 0x11a   :  { %2003 = vmatprep.subr.bf16.mxu1 %v1025_v51  ;;  %v4092_v58 = vpack.c.bf16 %v140_v56, %v131_v55  ;;  %v701_v55 = vld [vmem:[#allocation3 + $0xc58] sm:$0xff] }
 0x11b   :  { %1449 = vmatpush1.bf16.msra.mxu0 %v1042_v6  ;;  %v714_v6 = vld [vmem:[#allocation3 + $0xcc0] sm:$0xff]  ;;  %v705_v56 = vld [vmem:[#allocation3 + $0xc78] sm:$0xff] }
 0x11c   :  { %1953 = vmatmul.mubr.bf16.gmra.mrb[52].mxu1 %v4009_v31  ;;  %1531 = vmatprep.subr.bf16.mxu0 %v1047_v12  ;;  %v112_v31 = vld [vmem:[%s4623_s0 + $0xb0] sm:$0xff]  ;;  %v723_v12 = vld [vmem:[#allocation3 + $0xd08] sm:$0xff] }
 0x11d   :  { %2004 = vmatpush1.bf16.msra.mxu1 %v1024_v11  ;;  %1962 = vmatprep.mubr.bf16.mxu1 %v4012_v37  ;;  %v121_v37 = vld [vmem:[%s4623_s0 + $0xf8] sm:$0xff]  ;;  %v680_v11 = vld [vmem:[#allocation3 + $0xbb0] sm:$0xff]  ;;  %v1063_v23 = vpack.c.bf16 %v727_v14, %v723_v12  ;;  %v1070_v14 = vpack.c.bf16 %v742_v54, %v738_v59 }
 0x11e   :  { %2005 = vmatprep.subr.bf16.mxu1 %v1029_v19  ;;  %1451 = vmatmul.mubr.bf16.vlgmr.msra.gmra.mrb[0].mxu0 %v4069_v20  ;;  %v4089_v51 = vpack.c.bf16 %v121_v37, %v112_v31  ;;  %v1058_v19 = vpack.c.bf16 %v718_v63, %v714_v6  ;;  %v1040_v22 = vpack.c.bf16 %v680_v11, %v676_v9  ;;  %v734_v37 = vld [vmem:[#allocation3 + $0xd60] sm:$0xff]  ;;  %v704_v6 = vld [vmem:[#allocation3 + $0xc70] sm:$0xff]  ;;  %v747_v63 = vld [vmem:[#allocation3 + $0xdc8] sm:$0xff] }
 0x11f   :  { %1532 = vmatpush1.bf16.msra.mxu0 %v1046_v27  ;;  %1460 = vmatprep.mubr.bf16.mxu0 %v4072_v52  ;;  %v149_v27 = vld [vmem:[%s4623_s0 + $0x1d8] sm:$0xff]  ;;  %v751_v9 = vld [vmem:[#allocation3 + $0xde8] sm:$0xff]  ;;  %v724_v59 = vld [vmem:[#allocation3 + $0xd10] sm:$0xff] }
 0x120   :  { %1533 = vmatprep.subr.bf16.mxu0 %v1051_v29  ;;  %v1045_v29 = vpack.c.bf16 %v689_v18, %v685_v17  ;;  %v709_v11 = vld [vmem:[#allocation3 + $0xc98] sm:$0xff]  ;;  %v1052_v17 = vpack.c.bf16 %v704_v6, %v700_v62  ;;  %v1075_v18 = vpack.c.bf16 %v751_v9, %v747_v63  ;;  %v775_v62 = vld [vmem:[#allocation3 + $0xea8] sm:$0xff]  ;;  %v770_v6 = vld [vmem:[#allocation3 + $0xe80] sm:$0xff] }
 0x121   :  { %2006 = vmatpush1.bf16.msra.mxu1 %v1028_v28  ;;  %v158_v28 = vld [vmem:[%s4623_s0 + $0x220] sm:$0xff]  ;;  %v713_v12 = vld [vmem:[#allocation3 + $0xcb8] sm:$0xff] }
 0x122   :  { %2007 = vmatprep.subr.bf16.mxu1 %v1033_v25  ;;  %v4112_v31 = vpack.c.bf16 %v158_v28, %v149_v27  ;;  %v1057_v16 = vpack.c.bf16 %v713_v12, %v709_v11  ;;  %v717_v27 = vld [vmem:[#allocation3 + $0xcd8] sm:$0xff]  ;;  %v774_v63 = vld [vmem:[#allocation3 + $0xea0] sm:$0xff]  ;;  %v732_v12 = vld [vmem:[#allocation3 + $0xd50] sm:$0xff] }
 0x123   :  { %1534 = vmatpush1.bf16.msra.mxu0 %v1050_v43  ;;  %v730_v43 = vld [vmem:[#allocation3 + $0xd40] sm:$0xff]  ;;  %v721_v28 = vld [vmem:[#allocation3 + $0xcf8] sm:$0xff] }
 0x124   :  { %1963 = vmatmul.mubr.bf16.gmra.mrb[56].mxu1 %v4029_v8  ;;  %1535 = vmatprep.subr.bf16.mxu0 %v1055_v48  ;;  %v130_v8 = vld [vmem:[%s4623_s0 + $0x140] sm:$0xff]  ;;  %v739_v48 = vld [vmem:[#allocation3 + $0xd88] sm:$0xff] }
 0x125   :  { %2008 = vmatpush1.bf16.msra.mxu1 %v1032_v46  ;;  %1972 = vmatprep.mubr.bf16.mxu1 %v4032_v13  ;;  %v139_v13 = vld [vmem:[%s4623_s0 + $0x188] sm:$0xff]  ;;  %v696_v46 = vld [vmem:[#allocation3 + $0xc30] sm:$0xff]  ;;  %v1071_v61 = vpack.c.bf16 %v743_v53, %v739_v48  ;;  %v729_v48 = vld [vmem:[#allocation3 + $0xd38] sm:$0xff]  ;;  %v1078_v53 = vpack.c.bf16 %v758_v26, %v754_v30 }
 0x126   :  { %2009 = vmatprep.subr.bf16.mxu1 %v1037_v57  ;;  %1461 = vmatmul.mubr.bf16.gmra.mrb[4].mxu0 %v4089_v51  ;;  %v4109_v25 = vpack.c.bf16 %v139_v13, %v130_v8  ;;  %v1066_v57 = vpack.c.bf16 %v734_v37, %v730_v43  ;;  %v1048_v60 = vpack.c.bf16 %v696_v46, %v692_v45  ;;  %v750_v13 = vld [vmem:[#allocation3 + $0xde0] sm:$0xff]  ;;  %v720_v43 = vld [vmem:[#allocation3 + $0xcf0] sm:$0xff]  ;;  %v763_v37 = vld [vmem:[#allocation3 + $0xe48] sm:$0xff] }
 0x127   :  { %1536 = vmatpush1.bf16.msra.mxu0 %v1054_v1  ;;  %1470 = vmatprep.mubr.bf16.mxu0 %v4092_v58  ;;  %v167_v1 = vld [vmem:[%s4623_s0 + $0x268] sm:$0xff]  ;;  %v725_v46 = vld [vmem:[#allocation3 + $0xd18] sm:$0xff]  ;;  %v740_v30 = vld [vmem:[#allocation3 + $0xd90] sm:$0xff] }
 0x128   :  { %1537 = vmatprep.subr.bf16.mxu0 %v1059_v5  ;;  %v1053_v5 = vpack.c.bf16 %v705_v56, %v701_v55  ;;  %v767_v45 = vld [vmem:[#allocation3 + $0xe68] sm:$0xff]  ;;  %v1060_v55 = vpack.c.bf16 %v720_v43, %v716_v36  ;;  %v1065_v54 = vpack.c.bf16 %v729_v48, %v725_v46  ;;  %v790_v46 = vld [vmem:[#allocation3 + $0xf20] sm:$0xff] }
 0x129   :  { %2010 = vmatpush1.bf16.msra.mxu1 %v1036_v3  ;;  %v176_v3 = vld [vmem:[%s4623_s0 + $0x2b0] sm:$0xff]  ;;  %v1083_v56 = vpack.c.bf16 %v767_v45, %v763_v37  ;;  %v791_v36 = vld [vmem:[#allocation3 + $0xf28] sm:$0xff]  ;;  %v786_v45 = vld [vmem:[#allocation3 + $0xf00] sm:$0xff] }
 0x12a   :  { %2011 = vmatprep.subr.bf16.mxu1 %v1041_v2  ;;  %v4132_v8 = vpack.c.bf16 %v176_v3, %v167_v1  ;;  %v733_v1 = vld [vmem:[#allocation3 + $0xd58] sm:$0xff] }
 0x12b   :  { %1538 = vmatpush1.bf16.msra.mxu0 %v1058_v19  ;;  %v746_v19 = vld [vmem:[#allocation3 + $0xdc0] sm:$0xff]  ;;  %v737_v3 = vld [vmem:[#allocation3 + $0xd78] sm:$0xff] }
 0x12c   :  { %1973 = vmatmul.mubr.bf16.gmra.mrb[60].mxu1 %v4049_v44  ;;  %1539 = vmatprep.subr.bf16.mxu0 %v1063_v23  ;;  %v148_v44 = vld [vmem:[%s4623_s0 + $0x1d0] sm:$0xff]  ;;  %v755_v23 = vld [vmem:[#allocation3 + $0xe08] sm:$0xff] }
 0x12d   :  { %2012 = vmatpush1.bf16.msra.mxu1 %v1040_v22  ;;  %2015 = vmatprep.mubr.bf16.mxu1 %v4052_v49  ;;  %v157_v49 = vld [vmem:[%s4623_s0 + $0x218] sm:$0xff]  ;;  %v712_v22 = vld [vmem:[#allocation3 + $0xcb0] sm:$0xff]  ;;  %v1079_v33 = vpack.c.bf16 %v759_v24, %v755_v23  ;;  %v1086_v24 = vpack.c.bf16 %v774_v63, %v770_v6 }
 0x12e   :  { %2013 = vmatprep.subr.bf16.mxu1 %v1045_v29  ;;  %1471 = vmatmul.mubr.bf16.gmra.mrb[8].mxu0 %v4109_v25  ;;  %v4129_v2 = vpack.c.bf16 %v157_v49, %v148_v44  ;;  %v1074_v29 = vpack.c.bf16 %v750_v13, %v746_v19  ;;  %v1056_v32 = vpack.c.bf16 %v712_v22, %v708_v21  ;;  %v766_v49 = vld [vmem:[#allocation3 + $0xe60] sm:$0xff]  ;;  %v736_v19 = vld [vmem:[#allocation3 + $0xd70] sm:$0xff]  ;;  %v779_v13 = vld [vmem:[#allocation3 + $0xec8] sm:$0xff] }
 0x12f   :  { %1540 = vmatpush1.bf16.msra.mxu0 %v1062_v38  ;;  %1480 = vmatprep.mubr.bf16.mxu0 %v4112_v31  ;;  %v185_v38 = vld [vmem:[%s4623_s0 + $0x2f8] sm:$0xff]  ;;  %v783_v21 = vld [vmem:[#allocation3 + $0xee8] sm:$0xff] }
 0x130   :  { %1541 = vmatprep.subr.bf16.mxu0 %v1067_v41  ;;  %v1061_v41 = vpack.c.bf16 %v721_v28, %v717_v27  ;;  %v741_v22 = vld [vmem:[#allocation3 + $0xd98] sm:$0xff]  ;;  %v1068_v27 = vpack.c.bf16 %v736_v19, %v732_v12  ;;  %v1091_v28 = vpack.c.bf16 %v783_v21, %v779_v13  ;;  %v756_v12 = vld [vmem:[#allocation3 + $0xe10] sm:$0xff]  ;;  %v807_v19 = vld [vmem:[#allocation3 + $0xfa8] sm:$0xff] }
 0x131   :  { %2014 = vmatpush1.bf16.msra.mxu1 %v1044_v40  ;;  %v194_v40 = vld [vmem:[%s4623_s0 + $0x340] sm:$0xff]  ;;  %v745_v23 = vld [vmem:[#allocation3 + $0xdb8] sm:$0xff] }
 0x132   :  { %2096 = vmatprep.subr.bf16.mxu1 %v1049_v39  ;;  %v4152_v44 = vpack.c.bf16 %v194_v40, %v185_v38  ;;  %v1073_v26 = vpack.c.bf16 %v745_v23, %v741_v22  ;;  %v749_v40 = vld [vmem:[#allocation3 + $0xdd8] sm:$0xff] }
 0x133   :  { %1542 = vmatpush1.bf16.msra.mxu0 %v1066_v57  ;;  %v762_v57 = vld [vmem:[#allocation3 + $0xe40] sm:$0xff]  ;;  %v765_v21 = vld [vmem:[#allocation3 + $0xe58] sm:$0xff] }
 0x134   :  { %2016 = vmatmul.mubr.bf16.vlgmr.msra.gmra.mrb[32].mxu1 %v4069_v20  ;;  %1543 = vmatprep.subr.bf16.mxu0 %v1071_v61  ;;  %v166_v20 = vld [vmem:[%s4623_s0 + $0x260] sm:$0xff]  ;;  %v771_v61 = vld [vmem:[#allocation3 + $0xe88] sm:$0xff]  ;;  %v769_v22 = vld [vmem:[#allocation3 + $0xe78] sm:$0xff] }
 0x135   :  { %2097 = vmatpush1.bf16.msra.mxu1 %v1048_v60  ;;  %2025 = vmatprep.mubr.bf16.mxu1 %v4072_v52  ;;  %v175_v52 = vld [vmem:[%s4623_s0 + $0x2a8] sm:$0xff]  ;;  %v728_v60 = vld [vmem:[#allocation3 + $0xd30] sm:$0xff]  ;;  %v1087_v11 = vpack.c.bf16 %v775_v62, %v771_v61 }
 0x136   :  { %2098 = vmatprep.subr.bf16.mxu1 %v1053_v5  ;;  %1481 = vmatmul.mubr.bf16.gmra.mrb[12].mxu0 %v4129_v2  ;;  %v4149_v39 = vpack.c.bf16 %v175_v52, %v166_v20  ;;  %v1082_v5 = vpack.c.bf16 %v766_v49, %v762_v57  ;;  %v1064_v9 = vpack.c.bf16 %v728_v60, %v724_v59  ;;  %v782_v52 = vld [vmem:[#allocation3 + $0xee0] sm:$0xff]  ;;  %v221_v57 = vld [vmem:[%s4623_s0 + $0x418] sm:$0xff]  ;;  %v752_v60 = vld [vmem:[#allocation3 + $0xdf0] sm:$0xff] }
 0x137   :  { %1544 = vmatpush1.bf16.msra.mxu0 %v1070_v14  ;;  %1490 = vmatprep.mubr.bf16.mxu0 %v4132_v8  ;;  %v203_v14 = vld [vmem:[%s4623_s0 + $0x388] sm:$0xff]  ;;  %v230_v49 = vld [vmem:[%s4623_s0 + $0x460] sm:$0xff] }
 0x138   :  { %1545 = vmatprep.subr.bf16.mxu0 %v1075_v18  ;;  %v1069_v18 = vpack.c.bf16 %v737_v3, %v733_v1  ;;  %v795_v61 = vld [vmem:[#allocation3 + $0xf48] sm:$0xff]  ;;  %v757_v1 = vld [vmem:[#allocation3 + $0xe18] sm:$0xff] }
 0x139   :  { %2099 = vmatpush1.bf16.msra.mxu1 %v1052_v17  ;;  %v212_v17 = vld [vmem:[%s4623_s0 + $0x3d0] sm:$0xff]  ;;  %v799_v62 = vld [vmem:[#allocation3 + $0xf68] sm:$0xff]  ;;  %v761_v3 = vld [vmem:[#allocation3 + $0xe38] sm:$0xff] }
 0x13a   :  { %2100 = vmatprep.subr.bf16.mxu1 %v1057_v16  ;;  %v4172_v20 = vpack.c.bf16 %v212_v17, %v203_v14  ;;  %v1099_v63 = vpack.c.bf16 %v799_v62, %v795_v61  ;;  %v1081_v14 = vpack.c.bf16 %v761_v3, %v757_v1  ;;  %v760_v17 = vld [vmem:[#allocation3 + $0xe30] sm:$0xff]  ;;  %v785_v3 = vld [vmem:[#allocation3 + $0xef8] sm:$0xff] }
 0x13b   :  { %1546 = vmatpush1.bf16.msra.mxu0 %v1074_v29  ;;  %v778_v29 = vld [vmem:[#allocation3 + $0xec0] sm:$0xff]  ;;  %v772_v61 = vld [vmem:[#allocation3 + $0xe90] sm:$0xff] }
 0x13c   :  { %2026 = vmatmul.mubr.bf16.gmra.mrb[36].mxu1 %v4089_v51  ;;  %1547 = vmatprep.subr.bf16.mxu0 %v1079_v33  ;;  %v184_v51 = vld [vmem:[%s4623_s0 + $0x2f0] sm:$0xff]  ;;  %v787_v33 = vld [vmem:[#allocation3 + $0xf08] sm:$0xff]  ;;  %v1090_v37 = vpack.c.bf16 %v782_v52, %v778_v29  ;;  %v1080_v52 = vpack.c.bf16 %v760_v17, %v756_v12 }
 0x13d   :  { %2101 = vmatpush1.bf16.msra.mxu1 %v1056_v32  ;;  %2035 = vmatprep.mubr.bf16.mxu1 %v4092_v58  ;;  %v193_v58 = vld [vmem:[%s4623_s0 + $0x338] sm:$0xff]  ;;  %v744_v32 = vld [vmem:[#allocation3 + $0xdb0] sm:$0xff]  ;;  %v115_v12 = vld [vmem:[%s4623_s0 + $0xc8] sm:$0xff] }
 0x13e   :  { %2102 = vmatprep.subr.bf16.mxu1 %v1061_v41  ;;  %1491 = vmatmul.mubr.bf16.gmra.mrb[16].mxu0 %v4149_v39  ;;  %v4169_v16 = vpack.c.bf16 %v193_v58, %v184_v51  ;;  %v753_v41 = vld [vmem:[#allocation3 + $0xdf8] sm:$0xff]  ;;  %v4200_v58 = vpack.c.bf16 %v230_v49, %v221_v57  ;;  %v810_v49 = vld [vmem:[#allocation3 + $0xfc0] sm:$0xff]  ;;  %v776_v62 = vld [vmem:[#allocation3 + $0xeb0] sm:$0xff] }
 0x13f   :  { %1548 = vmatpush1.bf16.msra.mxu0 %v1078_v53  ;;  %1500 = vmatprep.mubr.bf16.mxu0 %v4152_v44  ;;  %v1072_v53 = vpack.c.bf16 %v744_v32, %v740_v30  ;;  %v97_v32 = vld [vmem:[%s4623_s0 + $0x38] sm:$0xff] }
 0x140   :  { %1549 = vmatprep.subr.bf16.mxu0 %v1083_v56  ;;  %v748_v56 = vld [vmem:[#allocation3 + $0xdd0] sm:$0xff] }
 0x141   :  { %2103 = vmatpush1.bf16.msra.mxu1 %v1060_v55  ;;  %v1095_v55 = vpack.c.bf16 %v791_v36, %v787_v33  ;;  %v1076_v6 = vpack.c.bf16 %v752_v60, %v748_v56  ;;  %v106_v33 = vld [vmem:[%s4623_s0 + $0x80] sm:$0xff] }
 0x142   :  { %2104 = vmatprep.subr.bf16.mxu1 %v1065_v54  ;;  %v1077_v54 = vpack.c.bf16 %v753_v41, %v749_v40  ;;  %v768_v40 = vld [vmem:[#allocation3 + $0xe70] sm:$0xff]  ;;  %v811_v41 = vld [vmem:[#allocation3 + $0xfc8] sm:$0xff] }
 0x143   :  { %1550 = vmatpush1.bf16.msra.mxu0 %v1082_v5  ;;  %v1094_v5 = vpack.c.bf16 %v790_v46, %v786_v45  ;;  %v773_v45 = vld [vmem:[#allocation3 + $0xe98] sm:$0xff] }
 0x144   :  { %2036 = vmatmul.mubr.bf16.gmra.mrb[40].mxu1 %v4109_v25  ;;  %1551 = vmatprep.subr.bf16.mxu0 %v1087_v11  ;;  %v202_v25 = vld [vmem:[%s4623_s0 + $0x380] sm:$0xff]  ;;  %v777_v46 = vld [vmem:[#allocation3 + $0xeb8] sm:$0xff] }
 0x145   :  { %2105 = vmatpush1.bf16.msra.mxu1 %v1064_v9  ;;  %2045 = vmatprep.mubr.bf16.mxu1 %v4112_v31  ;;  %v211_v31 = vld [vmem:[%s4623_s0 + $0x3c8] sm:$0xff]  ;;  %v794_v9 = vld [vmem:[#allocation3 + $0xf40] sm:$0xff]  ;;  %v1089_v60 = vpack.c.bf16 %v777_v46, %v773_v45 }
 0x146   :  { %2106 = vmatprep.subr.bf16.mxu1 %v1069_v18  ;;  %1501 = vmatmul.mubr.bf16.gmra.mrb[20].mxu0 %v4169_v16  ;;  %v4197_v51 = vpack.c.bf16 %v211_v31, %v202_v25  ;;  %v798_v11 = vld [vmem:[#allocation3 + $0xf60] sm:$0xff]  ;;  %v803_v18 = vld [vmem:[#allocation3 + $0xf88] sm:$0xff]  ;;  %v1085_v25 = vpack.c.bf16 %v769_v22, %v765_v21  ;;  %v789_v22 = vld [vmem:[#allocation3 + $0xf18] sm:$0xff] }
 0x147   :  { %v4175_v38 = vpop.f32.mrb[0].mxu1  ;;  %1552 = vmatpush1.bf16.msra.mxu0 %v1086_v24  ;;  %1510 = vmatprep.mubr.bf16.mxu0 %v4172_v20  ;;  %v1098_v24 = vpack.c.bf16 %v798_v11, %v794_v9  ;;  %v1103_v30 = vpack.c.bf16 %v807_v19, %v803_v18  ;;  %v1088_v11 = vpack.c.bf16 %v776_v62, %v772_v61  ;;  %v780_v19 = vld [vmem:[#allocation3 + $0xed0] sm:$0xff]  ;;  %v142_v45 = vld [vmem:[%s4623_s0 + $0x1a0] sm:$0xff] }
 0x148   :  { %v4181_v43 = vpop.f32.mrb[1].mxu1  ;;  %1553 = vmatprep.subr.bf16.mxu0 %v1091_v28  ;;  %v806_v28 = vld [vmem:[#allocation3 + $0xfa0] sm:$0xff] }
 0x149   :  { %v4187_v48 = vpop.f32.mrb[2].mxu1  ;;  %2107 = vmatpush1.bf16.msra.mxu1 %v1068_v27  ;;  %v802_v27 = vld [vmem:[#allocation3 + $0xf80] sm:$0xff] }
 0x14a   :  { %v4195_v59 = vpop.f32.mrb[3].mxu1  ;;  %2108 = vmatprep.subr.bf16.mxu1 %v1073_v26  ;;  %v764_v26 = vld [vmem:[#allocation3 + $0xe50] sm:$0xff] }
 0x14b   :  { %1554 = vmatpush1.bf16.msra.mxu0 %v1090_v37  ;;  %v815_v37 = vld [vmem:[#allocation3 + $0xfe8] sm:$0xff]  ;;  %v1084_v56 = vpack.c.bf16 %v768_v40, %v764_v26 }
 0x14c   :  { %2046 = vmatmul.mubr.bf16.gmra.mrb[44].mxu1 %v4129_v2  ;;  %1555 = vmatprep.subr.bf16.mxu0 %v1095_v55  ;;  %v220_v2 = vld [vmem:[%s4623_s0 + $0x410] sm:$0xff]  ;;  %v4228_v55 = vpack.c.bf16 %v106_v33, %v97_v32  ;;  %v1107_v57 = vpack.c.bf16 %v815_v37, %v811_v41  ;;  %v797_v32 = vld [vmem:[#allocation3 + $0xf58] sm:$0xff] }
 0x14d   :  { %2109 = vmatpush1.bf16.msra.mxu1 %v1072_v53  ;;  %2055 = vmatprep.mubr.bf16.mxu1 %v4132_v8  ;;  %v229_v8 = vld [vmem:[%s4623_s0 + $0x458] sm:$0xff]  ;;  %v1102_v53 = vpack.c.bf16 %v806_v28, %v802_v27 }
 0x14e   :  { %2110 = vmatprep.subr.bf16.mxu1 %v1077_v54  ;;  %1511 = vmatmul.mubr.bf16.gmra.mrb[24].mxu0 %v4197_v51  ;;  %v4225_v31 = vpack.c.bf16 %v229_v8, %v220_v2  ;;  %v814_v54 = vld [vmem:[#allocation3 + $0xfe0] sm:$0xff]  ;;  %v784_v2 = vld [vmem:[#allocation3 + $0xef0] sm:$0xff]  ;;  %v801_v33 = vld [vmem:[#allocation3 + $0xf78] sm:$0xff] }
 0x14f   :  { %v4203_v13 = vpop.f32.mrb[4].mxu1  ;;  %1556 = vmatpush1.bf16.msra.mxu0 %v1094_v5  ;;  %1520 = vmatprep.mubr.bf16.mxu0 %v4200_v58  ;;  %v1092_v27 = vpack.c.bf16 %v784_v2, %v780_v19  ;;  %v133_v37 = vld [vmem:[%s4623_s0 + $0x158] sm:$0xff]  ;;  %v151_v19 = vld [vmem:[%s4623_s0 + $0x1e8] sm:$0xff]  ;;  %v160_v2 = vld [vmem:[%s4623_s0 + $0x230] sm:$0xff] }
 0x150   :  { %v4209_v23 = vpop.f32.mrb[5].mxu1  ;;  %1557 = vmatprep.subr.bf16.mxu0 %v1099_v63  ;;  %v96_v63 = vld [vmem:[%s4623_s0 + $0x30] sm:$0xff]  ;;  %v4284_v61 = vpack.c.bf16 %v142_v45, %v133_v37  ;;  %v2389_v37 = vld [vmem:[#allocation7 + $0x18] sm:$0xff]  ;;  %v2386_v45 = vld [vmem:[#allocation7] sm:$0xff] }
 0x151   :  { %v4215_v29 = vpop.f32.mrb[6].mxu1  ;;  %2111 = vmatpush1.bf16.msra.mxu1 %v1076_v6  ;;  %v1106_v6 = vpack.c.bf16 %v814_v54, %v810_v49  ;;  %v805_v54 = vld [vmem:[#allocation3 + $0xf98] sm:$0xff] }
 0x152   :  { %v4223_v36 = vpop.f32.mrb[7].mxu1  ;;  %2112 = vmatprep.subr.bf16.mxu1 %v1081_v14  ;;  %v124_v14 = vld [vmem:[%s4623_s0 + $0x110] sm:$0xff] }
 0x153   :  { %1558 = vmatpush1.bf16.msra.mxu0 %v1098_v24  ;;  %v793_v24 = vld [vmem:[#allocation3 + $0xf38] sm:$0xff]  ;;  %v4256_v8 = vpack.c.bf16 %v124_v14, %v115_v12 }
 0x154   :  { %2056 = vmatmul.mubr.bf16.gmra.mrb[48].mxu1 %v4149_v39  ;;  %1559 = vmatprep.subr.bf16.mxu0 %v1103_v30  ;;  %v781_v39 = vld [vmem:[#allocation3 + $0xed8] sm:$0xff]  ;;  %v1097_v28 = vpack.c.bf16 %v793_v24, %v789_v22  ;;  %v792_v30 = vld [vmem:[#allocation3 + $0xf30] sm:$0xff] }
 0x155   :  { %2113 = vmatpush1.bf16.msra.mxu1 %v1080_v52  ;;  %2065 = vmatprep.mubr.bf16.mxu1 %v4152_v44  ;;  %v105_v44 = vld [vmem:[%s4623_s0 + $0x78] sm:$0xff]  ;;  %v1093_v18 = vpack.c.bf16 %v785_v3, %v781_v39  ;;  %v788_v52 = vld [vmem:[#allocation3 + $0xf10] sm:$0xff] }
 0x156   :  { %2114 = vmatprep.subr.bf16.mxu1 %v1085_v25  ;;  %1521 = vmatmul.mubr.bf16.gmra.mrb[28].mxu0 %v4225_v31  ;;  %v4253_v21 = vpack.c.bf16 %v105_v44, %v96_v63  ;;  %v1096_v41 = vpack.c.bf16 %v792_v30, %v788_v52  ;;  %v804_v3 = vld [vmem:[#allocation3 + $0xf90] sm:$0xff]  ;;  %v813_v44 = vld [vmem:[#allocation3 + $0xfd8] sm:$0xff] }
 0x157   :  { %v4231_v1 = vpop.f32.mrb[8].mxu1  ;;  %1560 = vmatpush1.bf16.msra.mxu0 %v1102_v53  ;;  %1563 = vmatprep.mubr.bf16.mxu0 %v4228_v55  ;;  %v1101_v53 = vpack.c.bf16 %v801_v33, %v797_v32  ;;  %v821_v30 = vld [vmem:[#allocation3 + $0x1018] sm:$0xff]  ;;  %v820_v33 = vld [vmem:[#allocation3 + $0x1010] sm:$0xff] }
 0x158   :  { %v4234_v5 = vpop.f32.mrb[9].mxu1  ;;  %1561 = vmatprep.subr.bf16.mxu0 %v1107_v57  ;;  %v800_v57 = vld [vmem:[#allocation3 + $0xf70] sm:$0xff]  ;;  %v825_v32 = vld [vmem:[#allocation3 + $0x1038] sm:$0xff] }
 0x159   :  { %v4243_v9 = vpop.f32.mrb[10].mxu1  ;;  %2115 = vmatpush1.bf16.msra.mxu1 %v1084_v56  ;;  %v796_v56 = vld [vmem:[#allocation3 + $0xf50] sm:$0xff] }
 0x15a   :  { %v4251_v17 = vpop.f32.mrb[11].mxu1  ;;  %2116 = vmatprep.subr.bf16.mxu1 %v1089_v60  ;;  %v809_v60 = vld [vmem:[#allocation3 + $0xfb8] sm:$0xff]  ;;  %v1100_v62 = vpack.c.bf16 %v800_v57, %v796_v56 }
 0x15b   :  { %1562 = vmatpush1.bf16.msra.mxu0 %v1106_v6  ;;  %v1105_v39 = vpack.c.bf16 %v809_v60, %v805_v54  ;;  %v808_v6 = vld [vmem:[#allocation3 + $0xfb0] sm:$0xff]  ;;  %v2393_v60 = vld [vmem:[#allocation7 + $0x38] sm:$0xff] }
 0x15c   :  { %2066 = vmatmul.mubr.bf16.gmra.mrb[52].mxu1 %v4169_v16  ;;  %v114_v16 = vld [vmem:[%s4623_s0 + $0xc0] sm:$0xff]  ;;  %v2388_v57 = vld [vmem:[#allocation7 + $0x10] sm:$0xff]  ;;  %v2391_v54 = vld [vmem:[#allocation7 + $0x28] sm:$0xff] }
 0x15d   :  { %2117 = vmatpush1.bf16.msra.mxu1 %v1088_v11  ;;  %2075 = vmatprep.mubr.bf16.mxu1 %v4172_v20  ;;  %v123_v20 = vld [vmem:[%s4623_s0 + $0x108] sm:$0xff]  ;;  %v817_v11 = vld [vmem:[#allocation3 + $0xff8] sm:$0xff] }
 0x15e   :  { %2118 = vmatprep.subr.bf16.mxu1 %v1093_v18  ;;  %1564 = vmatmul.mubr.bf16.vlgmr.msra.gmra.mrb[0].mxu0 %v4253_v21  ;;  %v4281_v49 = vpack.c.bf16 %v123_v20, %v114_v16  ;;  %v1104_v18 = vpack.c.bf16 %v808_v6, %v804_v3  ;;  %v1109_v24 = vpack.c.bf16 %v817_v11, %v813_v44  ;;  %v824_v16 = vld [vmem:[#allocation3 + $0x1030] sm:$0xff]  ;;  %v2390_v44 = vld [vmem:[#allocation7 + $0x20] sm:$0xff] }
 0x15f   :  { %v4259_v26 = vpop.f32.mrb[12].mxu1  ;;  %1573 = vmatprep.mubr.bf16.mxu0 %v4256_v8  ;;  %v4312_v20 = vpack.c.bf16 %v160_v2, %v151_v19  ;;  %v2514_v3 = vpack.c.bf16 %v2388_v57, %v2386_v45  ;;  %v2517_v6 = vpack.c.bf16 %v2393_v60, %v2391_v54  ;;  %v2392_v11 = vld [vmem:[#allocation7 + $0x30] sm:$0xff]  ;;  %v159_v2 = vld [vmem:[%s4623_s0 + $0x228] sm:$0xff] }
 0x160   :  { %v4262_v25 = vpop.f32.mrb[13].mxu1  ;;  %v2396_v45 = vld [vmem:[#allocation7 + $0x50] sm:$0xff] }
 0x161   :  { %v4271_v40 = vpop.f32.mrb[14].mxu1  ;;  %2119 = vmatpush1.bf16.msra.mxu1 %v1092_v27  ;;  %v812_v27 = vld [vmem:[#allocation3 + $0xfd0] sm:$0xff] }
 0x162   :  { %v4279_v46 = vpop.f32.mrb[15].mxu1  ;;  %2120 = vmatprep.subr.bf16.mxu1 %v1097_v28  ;;  %v816_v28 = vld [vmem:[#allocation3 + $0xff0] sm:$0xff] }
 0x163   :  { %v832_v54 = vld [vmem:[#allocation3 + $0x1070] sm:$0xff] }
 0x164   :  { %2076 = vmatmul.mubr.bf16.gmra.mrb[56].mxu1 %v4197_v51  ;;  %v132_v51 = vld [vmem:[%s4623_s0 + $0x150] sm:$0xff] }
 0x165   :  { %2121 = vmatpush1.bf16.msra.mxu1 %v1096_v41  ;;  %2085 = vmatprep.mubr.bf16.mxu1 %v4200_v58  ;;  %v141_v58 = vld [vmem:[%s4623_s0 + $0x198] sm:$0xff]  ;;  %v2387_v41 = vld [vmem:[#allocation7 + $0x8] sm:$0xff] }
 0x166   :  { %2122 = vmatprep.subr.bf16.mxu1 %v1101_v53  ;;  %1574 = vmatmul.mubr.bf16.gmra.mrb[4].mxu0 %v4281_v49  ;;  %v4309_v52 = vpack.c.bf16 %v141_v58, %v132_v51  ;;  %v1108_v53 = vpack.c.bf16 %v816_v28, %v812_v27  ;;  %v2515_v56 = vpack.c.bf16 %v2389_v37, %v2387_v41  ;;  %v2395_v58 = vld [vmem:[#allocation7 + $0x48] sm:$0xff]  ;;  %v178_v27 = vld [vmem:[%s4623_s0 + $0x2c0] sm:$0xff] }
 0x167   :  { %v4287_v63 = vpop.f32.mrb[16].mxu1  ;;  %1583 = vmatprep.mubr.bf16.mxu0 %v4284_v61  ;;  %v2516_v28 = vpack.c.bf16 %v2392_v11, %v2390_v44  ;;  %v828_v41 = vld [vmem:[#allocation3 + $0x1050] sm:$0xff]  ;;  %v2394_v37 = vld [vmem:[#allocation7 + $0x40] sm:$0xff]  ;;  %v841_v44 = vld [vmem:[#allocation3 + $0x10b8] sm:$0xff] }
 0x168   :  { %v4290_v12 = vpop.f32.mrb[17].mxu1  ;;  %2622 = vmatprep.subr.bf16.mxu0 %v2515_v56  ;;  %v2400_v11 = vld [vmem:[#allocation7 + $0x70] sm:$0xff] }
 0x169   :  { %4633 = vst [vmem:[#allocation14_spill] sm:$0xff] %v4290_v12  ;;  %v4299_v14 = vpop.f32.mrb[18].mxu1  ;;  %2123 = vmatpush1.bf16.msra.mxu1 %v1100_v62  ;;  %v1113_v62 = vpack.c.bf16 %v825_v32, %v821_v30  ;;  %2623 = vmatpush1.bf16.msra.mxu0 %v2514_v3  ;;  %v1112_v32 = vpack.c.bf16 %v824_v16, %v820_v33  ;;  %v837_v3 = vld [vmem:[#allocation3 + $0x1098] sm:$0xff] }
 0x16a   :  { %4634 = vst [vmem:[#allocation15_spill] sm:$0xff] %v4299_v14  ;;  %v4307_v22 = vpop.f32.mrb[19].mxu1  ;;  %2124 = vmatprep.subr.bf16.mxu1 %v1105_v39  ;;  %v829_v39 = vld [vmem:[#allocation3 + $0x1058] sm:$0xff]  ;;  %2624 = vmatprep.subr.bf16.mxu0 %v2517_v6  ;;  %v2518_v33 = vpack.c.bf16 %v2396_v45, %v2394_v37  ;;  %v1116_v16 = vpack.c.bf16 %v832_v54, %v828_v41  ;;  %v2398_v6 = vld [vmem:[#allocation7 + $0x60] sm:$0xff]  ;;  %v844_v41 = vld [vmem:[#allocation3 + $0x10d0] sm:$0xff] }
 0x16b   :  { %4635 = vst [vmem:[#allocation16_spill] sm:$0xff] %v4307_v22  ;;  %v2520_v37 = vpack.c.bf16 %v2400_v11, %v2398_v6  ;;  %v848_v54 = vld [vmem:[#allocation3 + $0x10f0] sm:$0xff]  ;;  %v2409_v14 = vld [vmem:[#allocation7 + $0xb8] sm:$0xff]  ;;  %v2406_v11 = vld [vmem:[#allocation7 + $0xa0] sm:$0xff] }
 0x16c   :  { %2086 = vmatmul.mubr.bf16.gmra.mrb[60].mxu1 %v4225_v31  ;;  %v150_v31 = vld [vmem:[%s4623_s0 + $0x1e0] sm:$0xff]  ;;  %v2407_v22 = vld [vmem:[#allocation7 + $0xa8] sm:$0xff] }
 0x16d   :  { %2125 = vmatpush1.bf16.msra.mxu1 %v1104_v18  ;;  %2128 = vmatprep.mubr.bf16.mxu1 %v4228_v55  ;;  %v833_v55 = vld [vmem:[#allocation3 + $0x1078] sm:$0xff]  ;;  %v2525_v6 = vpack.c.bf16 %v2409_v14, %v2407_v22  ;;  %v195_v14 = vld [vmem:[%s4623_s0 + $0x348] sm:$0xff] }
 0x16e   :  { %2126 = vmatprep.subr.bf16.mxu1 %v1109_v24  ;;  %1584 = vmatmul.mubr.bf16.gmra.mrb[8].mxu0 %v4309_v52  ;;  %v2397_v18 = vld [vmem:[#allocation7 + $0x58] sm:$0xff]  ;;  %v1117_v57 = vpack.c.bf16 %v833_v55, %v829_v39  ;;  %v1121_v55 = vpack.c.bf16 %v841_v44, %v837_v3  ;;  %v2404_v3 = vld [vmem:[#allocation7 + $0x90] sm:$0xff] }
 0x16f   :  { %v4318_v51 = vpop.f32.mrb[20].mxu1  ;;  %1593 = vmatprep.mubr.bf16.mxu0 %v4312_v20  ;;  %v169_v24 = vld [vmem:[%s4623_s0 + $0x278] sm:$0xff]  ;;  %v2519_v60 = vpack.c.bf16 %v2397_v18, %v2395_v58  ;;  %2625 = vmatpush1.bf16.msra.mxu0 %v2516_v28  ;;  %v840_v58 = vld [vmem:[#allocation3 + $0x10b0] sm:$0xff]  ;;  %v187_v28 = vld [vmem:[%s4623_s0 + $0x308] sm:$0xff] }
 0x170   :  { %4636 = vst [vmem:[#allocation17_spill] sm:$0xff] %v4318_v51  ;;  %v4321_v19 = vpop.f32.mrb[21].mxu1  ;;  %v4337_v51 = vpack.c.bf16 %v159_v2, %v150_v31  ;;  %v168_v31 = vld [vmem:[%s4623_s0 + $0x270] sm:$0xff]  ;;  %v845_v18 = vld [vmem:[#allocation3 + $0x10d8] sm:$0xff] }
 0x171   :  { %4637 = vst [vmem:[#allocation18_spill] sm:$0xff] %v4321_v19  ;;  %v4333_v30 = vpop.f32.mrb[22].mxu1  ;;  %2127 = vmatpush1.bf16.msra.mxu1 %v1108_v53  ;;  %v2401_v19 = vld [vmem:[#allocation7 + $0x78] sm:$0xff]  ;;  %v4340_v53 = vpack.c.bf16 %v178_v27, %v169_v24  ;;  %2626 = vmatprep.subr.bf16.mxu0 %v2519_v60  ;;  %v2402_v60 = vld [vmem:[#allocation7 + $0x80] sm:$0xff] }
 0x172   :  { %4638 = vst [vmem:[#allocation19_spill] sm:$0xff] %v4333_v30  ;;  %v4335_v56 = vpop.f32.mrb[23].mxu1  ;;  %2209 = vmatprep.subr.bf16.mxu1 %v1113_v62  ;;  %v836_v62 = vld [vmem:[#allocation3 + $0x1090] sm:$0xff]  ;;  %v2521_v39 = vpack.c.bf16 %v2401_v19, %v2399_v0  ;;  %v849_v2 = vld [vmem:[#allocation3 + $0x10f8] sm:$0xff] }
 0x173   :  { %4639 = vst [vmem:[#allocation20_spill] sm:$0xff] %v4335_v56  ;;  %v853_v0 = vld [vmem:[#allocation3 + $0x1118] sm:$0x1]  ;;  %v2403_v19 = vld [vmem:[#allocation7 + $0x88] sm:$0xff]  ;;  %v2405_v24 = vld [vmem:[#allocation7 + $0x98] sm:$0xff]  ;;  %2627 = vmatpush1.bf16.msra.mxu0 %v2518_v33 }
 0x174   :  { %2129 = vmatmul.mubr.bf16.vlgmr.msra.gmra.mrb[32].mxu1 %v4253_v21  ;;  %v177_v21 = vld [vmem:[%s4623_s0 + $0x2b8] sm:$0xff]  ;;  %2628 = vmatprep.subr.bf16.mxu0 %v2521_v39  ;;  %v852_v56 = vld [vmem:[#allocation3 + $0x1110] sm:$0x1]  ;;  %v2523_v30 = vpack.c.bf16 %v2405_v24, %v2403_v19 }
 0x175   :  { %2210 = vmatpush1.bf16.msra.mxu1 %v1112_v32  ;;  %2138 = vmatprep.mubr.bf16.mxu1 %v4256_v8  ;;  %v196_v32 = vld [vmem:[%s4623_s0 + $0x350] sm:$0xff]  ;;  %v4365_v12 = vpack.c.bf16 %v177_v21, %v168_v31  ;;  %v1128_v39 = vpack.c.bf16 %v852_v56, %v852_v56  ;;  %v2413_v21 = vld [vmem:[#allocation7 + $0xd8] sm:$0xff] }
 0x176   :  { %2211 = vmatprep.subr.bf16.mxu1 %v1117_v57  ;;  %1594 = vmatmul.mubr.bf16.gmra.mrb[12].mxu0 %v4337_v51  ;;  %v1120_v57 = vpack.c.bf16 %v840_v58, %v836_v62  ;;  %v4368_v33 = vpack.c.bf16 %v196_v32, %v187_v28  ;;  %v1124_v62 = vpack.c.bf16 %v848_v54, %v844_v41  ;;  %v205_v22 = vld [vmem:[%s4623_s0 + $0x398] sm:$0xff]  ;;  %v2415_v28 = vld [vmem:[#allocation7 + $0xe8] sm:$0xff]  ;;  %v2414_v54 = vld [vmem:[#allocation7 + $0xe0] sm:$0xff] }
 0x177   :  { %v4349_v8 = vpop.f32.mrb[24].mxu1  ;;  %1603 = vmatprep.mubr.bf16.mxu0 %v4340_v53  ;;  %2629 = vmatpush1.bf16.msra.mxu0 %v2520_v37  ;;  %v2412_v19 = vld [vmem:[#allocation7 + $0xd0] sm:$0xff]  ;;  %v2417_v32 = vld [vmem:[#allocation7 + $0xf8] sm:$0xff] }
 0x178   :  { %4640 = vst [vmem:[#allocation21_spill] sm:$0xff] %v4349_v8  ;;  %v4352_v27 = vpop.f32.mrb[25].mxu1  ;;  %v1129_v8 = vpack.c.bf16 %v853_v0, %v853_v0  ;;  %2630 = vmatprep.subr.bf16.mxu0 %v2523_v30  ;;  %v2410_v0 = vld [vmem:[#allocation7 + $0xc0] sm:$0xff] }
 0x179   :  { %4641 = vst [vmem:[#allocation22_spill] sm:$0xff] %v4352_v27  ;;  %v4361_v45 = vpop.f32.mrb[26].mxu1  ;;  %2212 = vmatpush1.bf16.msra.mxu1 %v1116_v16  ;;  %v1125_v27 = vpack.c.bf16 %v849_v2, %v845_v18  ;;  %v2522_v16 = vpack.c.bf16 %v2404_v3, %v2402_v60  ;;  %v214_v2 = vld [vmem:[%s4623_s0 + $0x3e0] sm:$0xff]  ;;  %v2416_v60 = vld [vmem:[#allocation7 + $0xf0] sm:$0xff]  ;;  %v2419_v3 = vld [vmem:[#allocation7 + $0x108] sm:$0xff] }
 0x17a   :  { %v4363_v44 = vpop.f32.mrb[27].mxu1  ;;  %2213 = vmatprep.subr.bf16.mxu1 %v1121_v55  ;;  %v2408_v55 = vld [vmem:[#allocation7 + $0xb0] sm:$0xff]  ;;  %v1190_v58 = vand.u32 %v3642_v50, %v1129_v8  ;;  %v1187_v8 = vand.u32 %v3642_v50, %v1128_v39  ;;  %v4398_v37 = vpack.c.bf16 %v214_v2, %v205_v22  ;;  %v2529_v50 = vpack.c.bf16 %v2417_v32, %v2415_v28  ;;  %v2422_v2 = vld [vmem:[#allocation7 + $0x120] sm:$0xff] }
 0x17b   :  { %2631 = vmatpush1.bf16.msra.mxu0 %v2522_v16  ;;  %v2524_v30 = vpack.c.bf16 %v2408_v55, %v2406_v11  ;;  %v2421_v16 = vld [vmem:[#allocation7 + $0x118] sm:$0xff]  ;;  %v2528_v39 = vpack.c.bf16 %v2416_v60, %v2414_v54  ;;  %v2418_v55 = vld [vmem:[#allocation7 + $0x100] sm:$0xff] }
 0x17c   :  { %2139 = vmatmul.mubr.bf16.gmra.mrb[36].mxu1 %v4281_v49  ;;  %v2411_v49 = vld [vmem:[#allocation7 + $0xc8] sm:$0xff]  ;;  %2632 = vmatprep.subr.bf16.mxu0 %v2525_v6  ;;  %v2531_v11 = vpack.c.bf16 %v2421_v16, %v2419_v3  ;;  %v2426_v32 = vld [vmem:[#allocation7 + $0x140] sm:$0xff]  ;;  %v2433_v54 = vld [vmem:[#allocation7 + $0x178] sm:$0xff] }
 0x17d   :  { %2148 = vmatprep.mubr.bf16.mxu1 %v4284_v61  ;;  %2214 = vmatpush1.bf16.msra.mxu1 %v1120_v57  ;;  %v186_v61 = vld [vmem:[%s4623_s0 + $0x300] sm:$0xff]  ;;  %v2526_v57 = vpack.c.bf16 %v2412_v19, %v2410_v0  ;;  %v232_v6 = vld [vmem:[%s4623_s0 + $0x470] sm:$0xff] }
 0x17e   :  { %2215 = vmatprep.subr.bf16.mxu1 %v1125_v27  ;;  %1604 = vmatmul.mubr.bf16.gmra.mrb[16].mxu0 %v4365_v12  ;;  %v2527_v27 = vpack.c.bf16 %v2413_v21, %v2411_v49  ;;  %v4395_v41 = vpack.c.bf16 %v195_v14, %v186_v61  ;;  %v2423_v49 = vld [vmem:[#allocation7 + $0x128] sm:$0xff]  ;;  %v2425_v21 = vld [vmem:[#allocation7 + $0x138] sm:$0xff] }
 0x17f   :  { %v4372_v31 = vpop.f32.mrb[28].mxu1  ;;  %1613 = vmatprep.mubr.bf16.mxu0 %v4368_v33  ;;  %2633 = vmatpush1.bf16.msra.mxu0 %v2524_v30  ;;  %v2533_v30 = vpack.c.bf16 %v2425_v21, %v2423_v49  ;;  %v2427_v0 = vld [vmem:[#allocation7 + $0x148] sm:$0xff]  ;;  %v2429_v19 = vld [vmem:[#allocation7 + $0x158] sm:$0xff] }
 0x180   :  { %v4375_v18 = vpop.f32.mrb[29].mxu1  ;;  %2634 = vmatprep.subr.bf16.mxu0 %v2527_v27  ;;  %v222_v27 = vld [vmem:[%s4623_s0 + $0x420] sm:$0xff]  ;;  %v2439_v49 = vld [vmem:[#allocation7 + $0x1a8] sm:$0xff] }
 0x181   :  { %v4387_v56 = vpop.f32.mrb[30].mxu1  ;;  %2216 = vmatpush1.bf16.msra.mxu1 %v1124_v62  ;;  %v213_v62 = vld [vmem:[%s4623_s0 + $0x3d8] sm:$0xff] }
 0x182   :  { %v4393_v24 = vpop.f32.mrb[31].mxu1  ;;  %2217 = vmatprep.subr.bf16.mxu1 %v1190_v58  ;;  %v2420_v58 = vld [vmem:[#allocation7 + $0x110] sm:$0xff]  ;;  %v2441_v21 = vld [vmem:[#allocation7 + $0x1b8] sm:$0xff] }
 0x183   :  { %2635 = vmatpush1.bf16.msra.mxu0 %v2526_v57  ;;  %v2530_v22 = vpack.c.bf16 %v2420_v58, %v2418_v55  ;;  %v2428_v57 = vld [vmem:[#allocation7 + $0x150] sm:$0xff]  ;;  %v2434_v55 = vld [vmem:[#allocation7 + $0x180] sm:$0xff] }
 0x184   :  { %2149 = vmatmul.mubr.bf16.gmra.mrb[40].mxu1 %v4309_v52  ;;  %v204_v52 = vld [vmem:[%s4623_s0 + $0x390] sm:$0xff]  ;;  %2636 = vmatprep.subr.bf16.mxu0 %v2529_v50  ;;  %v2534_v3 = vpack.c.bf16 %v2428_v57, %v2426_v32 }
 0x185   :  { %2158 = vmatprep.mubr.bf16.mxu1 %v4312_v20  ;;  %2218 = vmatpush1.bf16.msra.mxu1 %v1187_v8  ;;  %v223_v20 = vld [vmem:[%s4623_s0 + $0x428] sm:$0xff]  ;;  %v294_v61 = vpack.c.bf16 %v213_v62, %v204_v52  ;;  %v2424_v8 = vld [vmem:[#allocation7 + $0x130] sm:$0xff] }
 0x186   :  { %1614 = vmatmul.mubr.bf16.gmra.mrb[20].mxu0 %v4395_v41  ;;  %v304_v14 = vpack.c.bf16 %v232_v6, %v223_v20  ;;  %v2532_v28 = vpack.c.bf16 %v2424_v8, %v2422_v2  ;;  %v2431_v50 = vld [vmem:[#allocation7 + $0x168] sm:$0xff]  ;;  %v2430_v52 = vld [vmem:[#allocation7 + $0x160] sm:$0xff]  ;;  %v2432_v62 = vld [vmem:[#allocation7 + $0x170] sm:$0xff] }
 0x187   :  { %1623 = vmatprep.mubr.bf16.mxu0 %v4398_v37  ;;  %2637 = vmatpush1.bf16.msra.mxu0 %v2528_v39  ;;  %v2537_v16 = vpack.c.bf16 %v2433_v54, %v2431_v50  ;;  %v2435_v20 = vld [vmem:[#allocation7 + $0x188] sm:$0xff]  ;;  %v2437_v39 = vld [vmem:[#allocation7 + $0x198] sm:$0xff]  ;;  %v2536_v6 = vpack.c.bf16 %v2432_v62, %v2430_v52  ;;  %v2436_v58 = vld [vmem:[#allocation7 + $0x190] sm:$0xff] }
 0x188   :  { %2638 = vmatprep.subr.bf16.mxu0 %v2531_v11  ;;  %v2539_v11 = vpack.c.bf16 %v2437_v39, %v2435_v20  ;;  %v2440_v2 = vld [vmem:[#allocation7 + $0x1b0] sm:$0xff]  ;;  %v2453_v50 = vld [vmem:[#allocation7 + $0x218] sm:$0xff] }
 0x189   :  { %v2448_v32 = vld [vmem:[#allocation7 + $0x1f0] sm:$0xff] }
 0x18b   :  { %2639 = vmatpush1.bf16.msra.mxu0 %v2530_v22  ;;  %v2541_v22 = vpack.c.bf16 %v2441_v21, %v2439_v49  ;;  %v2450_v21 = vld [vmem:[#allocation7 + $0x200] sm:$0xff] }
 0x18c   :  { %2159 = vmatmul.mubr.bf16.gmra.mrb[44].mxu1 %v4337_v51  ;;  %v231_v51 = vld [vmem:[%s4623_s0 + $0x468] sm:$0xff]  ;;  %2640 = vmatprep.subr.bf16.mxu0 %v2533_v30 }
 0x18d   :  { %2168 = vmatprep.mubr.bf16.mxu1 %v4340_v53  ;;  %v2535_v53 = vpack.c.bf16 %v2429_v19, %v2427_v0  ;;  %v303_v60 = vpack.c.bf16 %v231_v51, %v222_v27  ;;  %v2438_v30 = vld [vmem:[#allocation7 + $0x1a0] sm:$0xff]  ;;  %v2444_v0 = vld [vmem:[#allocation7 + $0x1d0] sm:$0xff]  ;;  %v2447_v27 = vld [vmem:[#allocation7 + $0x1e8] sm:$0xff] }
 0x18e   :  { %1624 = vmatmul.mubr.bf16.gmra.mrb[24].mxu0 %v294_v61  ;;  %v2540_v8 = vpack.c.bf16 %v2440_v2, %v2438_v30  ;;  %v2449_v51 = vld [vmem:[#allocation7 + $0x1f8] sm:$0xff] }
 0x18f   :  { %1633 = vmatprep.mubr.bf16.mxu0 %v304_v14  ;;  %2641 = vmatpush1.bf16.msra.mxu0 %v2532_v28  ;;  %v2545_v28 = vpack.c.bf16 %v2449_v51, %v2447_v27 }
 0x190   :  { %2642 = vmatprep.subr.bf16.mxu0 %v2535_v53  ;;  %v2446_v53 = vld [vmem:[#allocation7 + $0x1e0] sm:$0xff] }
 0x191   :  { %v2544_v57 = vpack.c.bf16 %v2448_v32, %v2446_v53  ;;  %v2454_v53 = vld [vmem:[#allocation7 + $0x220] sm:$0xff]  ;;  %v2456_v32 = vld [vmem:[#allocation7 + $0x230] sm:$0xff] }
 0x193   :  { %2643 = vmatpush1.bf16.msra.mxu0 %v2534_v3 }
 0x194   :  { %2169 = vmatmul.mubr.bf16.gmra.mrb[48].mxu1 %v4365_v12  ;;  %2644 = vmatprep.subr.bf16.mxu0 %v2537_v16  ;;  %v2538_v12 = vpack.c.bf16 %v2436_v58, %v2434_v55 }
 0x195   :  { %2178 = vmatprep.mubr.bf16.mxu1 %v4368_v33  ;;  %v4642_v33 = vmov 0  }
 0x196   :  { %1634 = vmatmul.mubr.bf16.gmra.mrb[28].mxu0 %v303_v60 }
 0x197   :  { %2645 = vmatpush1.bf16.msra.mxu0 %v2536_v6 }
 0x198   :  { %2646 = vmatprep.subr.bf16.mxu0 %v2539_v11 }
 0x19b   :  { %2647 = vmatpush1.bf16.msra.mxu0 %v2538_v12 }
 0x19c   :  { %2179 = vmatmul.mubr.bf16.gmra.mrb[52].mxu1 %v4395_v41  ;;  %2648 = vmatprep.subr.bf16.mxu0 %v2541_v22  ;;  %v2443_v41 = vld [vmem:[#allocation7 + $0x1c8] sm:$0xff]  ;;  %v2452_v22 = vld [vmem:[#allocation7 + $0x210] sm:$0xff] }
 0x19d   :  { %2188 = vmatprep.mubr.bf16.mxu1 %v4398_v37  ;;  %v2445_v37 = vld [vmem:[#allocation7 + $0x1d8] sm:$0xff] }
 0x19f   :  { %2649 = vmatpush1.bf16.msra.mxu0 %v2540_v8 }
 0x1a4   :  { %2189 = vmatmul.mubr.bf16.gmra.mrb[56].mxu1 %v294_v61  ;;  %v2543_v61 = vpack.c.bf16 %v2445_v37, %v2443_v41  ;;  %v2455_v41 = vld [vmem:[#allocation7 + $0x228] sm:$0xff] }
 0x1a5   :  { %2198 = vmatprep.mubr.bf16.mxu1 %v304_v14  ;;  %v2442_v14 = vld [vmem:[#allocation7 + $0x1c0] sm:$0xff] }
 0x1a6   :  { %v2542_v19 = vpack.c.bf16 %v2444_v0, %v2442_v14  ;;  %2650 = vmatprep.subr.bf16.mxu0 %v2543_v61 }
 0x1a8   :  { %2651 = vmatpush1.bf16.msra.mxu0 %v2542_v19 }
 0x1a9   :  { %2652 = vmatprep.subr.bf16.mxu0 %v2545_v28 }
 0x1ac   :  { %2199 = vmatmul.mubr.bf16.gmra.mrb[60].mxu1 %v303_v60  ;;  %2653 = vmatpush1.bf16.msra.mxu0 %v2544_v57 }
 0x1ad   :  { %2241 = vmatprep.mubr.bf16.mxu1 %v4642_v33 }
 0x1b4   :  { %2980 = vmatmul.mubr.msk.bf16.vlgmr.msra.gmra.mrb[32].mxu1 %vm1152_vm1, %v3652_v15  ;;  %v2451_v15 = vld [vmem:[#allocation7 + $0x208] sm:$0xff] }
 0x1b5   :  { %2251 = vmatprep.mubr.bf16.mxu1 %v4642_v33  ;;  %v2547_v54 = vpack.c.bf16 %v2453_v50, %v2451_v15  ;;  %v2459_v50 = vld [vmem:[#allocation7 + $0x248] sm:$0xff] }
 0x1b7   :  { %2735 = vmatprep.subr.bf16.mxu0 %v2547_v54  ;;  %v2461_v54 = vld [vmem:[#allocation7 + $0x258] sm:$0xff] }
 0x1bc   :  { %2981 = vmatmul.mubr.msk.bf16.gmra.mrb[36].mxu1 %vm1152_vm1, %v3663_v42  ;;  %v1132_v42 = vlaneseq }
 0x1bd   :  { %2261 = vmatprep.mubr.bf16.mxu1 %v4642_v33 }
 0x1c4   :  { %2982 = vmatmul.mubr.msk.bf16.gmra.mrb[40].mxu1 %vm1152_vm1, %v3674_v7  ;;  %v4451_v7 = vshrl.u32 %v1132_v42, 7 }
 0x1c5   :  { %2271 = vmatprep.mubr.bf16.mxu1 %v4642_v33 }
 0x1cc   :  { %2983 = vmatmul.mubr.msk.bf16.gmra.mrb[44].mxu1 %vm1152_vm1, %v3685_v35  ;;  %v4454_v35 = vsub.s32 0, %v4451_v7 }
 0x1cd   :  { %2281 = vmatprep.mubr.bf16.mxu1 %v4642_v33 }
 0x1d4   :  { %2984 = vmatmul.mubr.msk.bf16.gmra.mrb[48].mxu1 %vm1152_vm1, %v3705_v4  ;;  %v4456_v4 = vld [vmem:[#allocation5] sm:$0xf] }
 0x1d5   :  { %2291 = vmatprep.mubr.bf16.mxu1 %v4642_v33  ;;  %v4463_v60 = vrot.slane %v4456_v4, %v4454_v35 }
 0x1dc   :  { %2985 = vmatmul.mubr.msk.bf16.gmra.mrb[52].mxu1 %vm1152_vm1, %v3719_v34  ;;  %v4459_v34 = vsub.s32 1, %v4451_v7 }
 0x1dd   :  { %2301 = vmatprep.mubr.bf16.mxu1 %v4642_v33 }
 0x1e4   :  { %2986 = vmatmul.mubr.msk.bf16.gmra.mrb[56].mxu1 %vm1152_vm1, %v3747_v10  ;;  %v4467_v10 = vrot.slane %v4456_v4, %v4459_v34 }
 0x1e5   :  { %2311 = vmatprep.mubr.bf16.mxu1 %v4642_v33 }
 0x1ec   :  { %2987 = vmatmul.mubr.msk.bf16.gmra.mrb[60].mxu1 %vm1152_vm1, %v3776_v47 }
 0x231   :  { %v1565_v47 = vpop.f32.mrb[0].mxu0 }
 0x232   :  { %v3020_v3 = vadd.f32 %v1565_v47, %v4463_v60  ;;  %v1567_v16 = vpop.f32.mrb[1].mxu0 }
 0x233   :  { %v3022_v52 = vadd.f32 %v1567_v16, %v4467_v10  ;;  %v1569_v62 = vpop.f32.mrb[2].mxu0 }
 0x234   :  { %v3021_v20 = vadd.f32 %v3020_v3, %v4175_v38  ;;  %v3024_v39 = vadd.f32 %v1569_v62, %v4463_v60  ;;  %v1571_v6 = vpop.f32.mrb[3].mxu0  ;;  %v2457_v38 = vld [vmem:[#allocation7 + $0x238] sm:$0xff]  ;;  %v2458_v62 = vld [vmem:[#allocation7 + $0x240] sm:$0xff] }
 0x235   :  { %v3023_v11 = vadd.f32 %v3022_v52, %v4181_v43  ;;  %v3026_v55 = vadd.f32 %v1571_v6, %v4467_v10  ;;  %v2549_v28 = vpack.c.bf16 %v2457_v38, %v2455_v41  ;;  %v2551_v52 = vpack.c.bf16 %v2461_v54, %v2459_v50  ;;  %v2462_v41 = vld [vmem:[#allocation7 + $0x260] sm:$0xff]  ;;  %v2464_v38 = vld [vmem:[#allocation7 + $0x270] sm:$0xff] }
 0x236   :  { %v3025_v58 = vadd.f32 %v3024_v39, %v4187_v48  ;;  %v2322_v33 = vmax.f32 %v3021_v20, 0.0  ;;  %v2546_v48 = vpack.c.bf16 %v2452_v22, %v2450_v21  ;;  %v2460_v20 = vld [vmem:[#allocation7 + $0x250] sm:$0xff] }
 0x237   :  { %v3027_v12 = vadd.f32 %v3026_v55, %v4195_v59  ;;  %v2323_v30 = vmax.f32 %v3023_v11, 0.0  ;;  %v2463_v11 = vld [vmem:[#allocation7 + $0x268] sm:$0xff]  ;;  %v2465_v55 = vld [vmem:[#allocation7 + $0x278] sm:$0xff]  ;;  %v2550_v21 = vpack.c.bf16 %v2460_v20, %v2458_v62  ;;  %v2470_v20 = vld [vmem:[#allocation7 + $0x2a0] sm:$0xff] }
 0x238   :  { %v2326_v49 = vmax.f32 %v3025_v58, 0.0 }
 0x239   :  { %v2327_v2 = vmax.f32 %v3027_v12, 0.0  ;;  %v1575_v8 = vpop.f32.mrb[4].mxu0 }
 0x23a   :  { %v2578_v37 = vpack.c.bf16 %v2326_v49, %v2322_v33  ;;  %v3028_v61 = vadd.f32 %v1575_v8, %v4463_v60  ;;  %v1577_v14 = vpop.f32.mrb[5].mxu0  ;;  %v2553_v8 = vpack.c.bf16 %v2465_v55, %v2463_v11  ;;  %v2475_v11 = vld [vmem:[#allocation7 + $0x2c8] sm:$0xff]  ;;  %v2477_v55 = vld [vmem:[#allocation7 + $0x2d8] sm:$0xff] }
 0x23b   :  { %v3030_v43 = vadd.f32 %v1577_v14, %v4467_v10  ;;  %v1579_v0 = vpop.f32.mrb[6].mxu0  ;;  %v2579_v19 = vpack.c.bf16 %v2327_v2, %v2323_v30  ;;  %v2467_v14 = vld [vmem:[#allocation7 + $0x288] sm:$0xff] }
 0x23c   :  { %v3029_v59 = vadd.f32 %v3028_v61, %v4203_v13  ;;  %v3032_v27 = vadd.f32 %v1579_v0, %v4463_v60  ;;  %v1581_v51 = vpop.f32.mrb[7].mxu0  ;;  %v2548_v13 = vpack.c.bf16 %v2456_v32, %v2454_v53 }
 0x23d   :  { %v3031_v57 = vadd.f32 %v3030_v43, %v4209_v23  ;;  %v3034_v15 = vadd.f32 %v1581_v51, %v4467_v10  ;;  %2654 = vmatprep.mubr.bf16.mxu0 %v2579_v19  ;;  %v2469_v43 = vld [vmem:[#allocation7 + $0x298] sm:$0xff]  ;;  %v2466_v51 = vld [vmem:[#allocation7 + $0x280] sm:$0xff] }
 0x23e   :  { %v3033_v42 = vadd.f32 %v3032_v27, %v4215_v29  ;;  %2655 = vmatmul.mubr.bf16.vlgmr.msra.gmra.mrb[32].mxu0 %v2578_v37  ;;  %v2330_v3 = vmax.f32 %v3029_v59, 0.0  ;;  %v2555_v27 = vpack.c.bf16 %v2469_v43, %v2467_v14 }
 0x23f   :  { %v3035_v47 = vadd.f32 %v3034_v15, %v4223_v36  ;;  %2736 = vmatpush1.bf16.msra.mxu0 %v2546_v48  ;;  %v2331_v39 = vmax.f32 %v3031_v57, 0.0  ;;  %v2471_v57 = vld [vmem:[#allocation7 + $0x2a8] sm:$0xff]  ;;  %v2473_v15 = vld [vmem:[#allocation7 + $0x2b8] sm:$0xff] }
 0x240   :  { %v2334_v16 = vmax.f32 %v3033_v42, 0.0  ;;  %2737 = vmatprep.subr.bf16.mxu0 %v2549_v28  ;;  %v2468_v28 = vld [vmem:[#allocation7 + $0x290] sm:$0xff]  ;;  %v2557_v62 = vpack.c.bf16 %v2473_v15, %v2471_v57 }
 0x241   :  { %v2335_v23 = vmax.f32 %v3035_v47, 0.0  ;;  %v1585_v6 = vpop.f32.mrb[8].mxu0  ;;  %v4645_v15 = vld [vmem:[#allocation16_spill] sm:$0xff] }
 0x242   :  { %v3036_v58 = vadd.f32 %v1585_v6, %v4463_v60  ;;  %v1587_v12 = vpop.f32.mrb[9].mxu0  ;;  %v2582_v29 = vpack.c.bf16 %v2334_v16, %v2330_v3 }
 0x243   :  { %v3038_v33 = vadd.f32 %v1587_v12, %v4467_v10  ;;  %v1589_v36 = vpop.f32.mrb[10].mxu0  ;;  %v2583_v49 = vpack.c.bf16 %v2335_v23, %v2331_v39  ;;  %2738 = vmatpush1.bf16.msra.mxu0 %v2548_v13  ;;  %v2554_v13 = vpack.c.bf16 %v2468_v28, %v2466_v51  ;;  %v2472_v39 = vld [vmem:[#allocation7 + $0x2b0] sm:$0xff] }
 0x244   :  { %v3037_v22 = vadd.f32 %v3036_v58, %v4231_v1  ;;  %v3040_v30 = vadd.f32 %v1589_v36, %v4463_v60  ;;  %v1591_v2 = vpop.f32.mrb[11].mxu0  ;;  %2739 = vmatprep.subr.bf16.mxu0 %v2551_v52  ;;  %v2552_v1 = vpack.c.bf16 %v2464_v38, %v2462_v41  ;;  %v2559_v36 = vpack.c.bf16 %v2477_v55, %v2475_v11 }
 0x245   :  { %v3039_v37 = vadd.f32 %v3038_v33, %v4234_v5  ;;  %v3042_v61 = vadd.f32 %v1591_v2, %v4467_v10  ;;  %2664 = vmatprep.mubr.bf16.mxu0 %v2583_v49  ;;  %v2474_v49 = vld [vmem:[#allocation7 + $0x2c0] sm:$0xff]  ;;  %v2479_v2 = vld [vmem:[#allocation7 + $0x2e8] sm:$0xff] }
 0x246   :  { %v3041_v0 = vadd.f32 %v3040_v30, %v4243_v9  ;;  %2665 = vmatmul.mubr.bf16.gmra.mrb[36].mxu0 %v2582_v29  ;;  %v2338_v48 = vmax.f32 %v3037_v22, 0.0 }
 0x247   :  { %v3043_v19 = vadd.f32 %v3042_v61, %v4251_v17  ;;  %2740 = vmatpush1.bf16.msra.mxu0 %v2550_v21  ;;  %v2339_v53 = vmax.f32 %v3039_v37, 0.0  ;;  %v2476_v21 = vld [vmem:[#allocation7 + $0x2d0] sm:$0xff] }
 0x248   :  { %v2342_v59 = vmax.f32 %v3041_v0, 0.0  ;;  %2741 = vmatprep.subr.bf16.mxu0 %v2553_v8  ;;  %v2481_v8 = vld [vmem:[#allocation7 + $0x2f8] sm:$0xff]  ;;  %v2558_v14 = vpack.c.bf16 %v2476_v21, %v2474_v49  ;;  %v2486_v49 = vld [vmem:[#allocation7 + $0x320] sm:$0xff]  ;;  %v2488_v21 = vld [vmem:[#allocation7 + $0x330] sm:$0xff] }
 0x249   :  { %v2343_v5 = vmax.f32 %v3043_v19, 0.0  ;;  %v1595_v32 = vpop.f32.mrb[12].mxu0 }
 0x24a   :  { %v3044_v50 = vadd.f32 %v1595_v32, %v4463_v60  ;;  %v1597_v54 = vpop.f32.mrb[13].mxu0  ;;  %v2586_v9 = vpack.c.bf16 %v2342_v59, %v2338_v48  ;;  %v2478_v48 = vld [vmem:[#allocation7 + $0x2e0] sm:$0xff]  ;;  %v2480_v59 = vld [vmem:[#allocation7 + $0x2f0] sm:$0xff] }
 0x24b   :  { %v3046_v42 = vadd.f32 %v1597_v54, %v4467_v10  ;;  %v1599_v17 = vpop.f32.mrb[14].mxu0  ;;  %v2587_v47 = vpack.c.bf16 %v2343_v5, %v2339_v53  ;;  %2742 = vmatpush1.bf16.msra.mxu0 %v2552_v1  ;;  %v2561_v1 = vpack.c.bf16 %v2481_v8, %v2479_v2  ;;  %v2483_v53 = vld [vmem:[#allocation7 + $0x308] sm:$0xff]  ;;  %v2485_v5 = vld [vmem:[#allocation7 + $0x318] sm:$0xff] }
 0x24c   :  { %v3045_v3 = vadd.f32 %v3044_v50, %v4259_v26  ;;  %v3048_v16 = vadd.f32 %v1599_v17, %v4463_v60  ;;  %v1601_v52 = vpop.f32.mrb[15].mxu0  ;;  %2743 = vmatprep.subr.bf16.mxu0 %v2555_v27  ;;  %v2556_v26 = vpack.c.bf16 %v2472_v39, %v2470_v20  ;;  %v4643_v27 = vld [vmem:[#allocation14_spill] sm:$0xff]  ;;  %v4644_v32 = vld [vmem:[#allocation15_spill] sm:$0xff]  ;;  %v2493_v8 = vld [vmem:[#allocation7 + $0x358] sm:$0xff] }
 0x24d   :  { %v3047_v23 = vadd.f32 %v3046_v42, %v4262_v25  ;;  %v3050_v6 = vadd.f32 %v1601_v52, %v4467_v10  ;;  %2674 = vmatprep.mubr.bf16.mxu0 %v2587_v47  ;;  %v2563_v42 = vpack.c.bf16 %v2485_v5, %v2483_v53  ;;  %v2482_v17 = vld [vmem:[#allocation7 + $0x300] sm:$0xff]  ;;  %v2484_v47 = vld [vmem:[#allocation7 + $0x310] sm:$0xff]  ;;  %v2487_v52 = vld [vmem:[#allocation7 + $0x328] sm:$0xff] }
 0x24e   :  { %v3049_v58 = vadd.f32 %v3048_v16, %v4271_v40  ;;  %2675 = vmatmul.mubr.bf16.gmra.mrb[40].mxu0 %v2586_v9  ;;  %v2346_v29 = vmax.f32 %v3045_v3, 0.0  ;;  %v2491_v2 = vld [vmem:[#allocation7 + $0x348] sm:$0xff] }
 0x24f   :  { %v3051_v12 = vadd.f32 %v3050_v6, %v4279_v46  ;;  %2744 = vmatpush1.bf16.msra.mxu0 %v2554_v13  ;;  %v2347_v22 = vmax.f32 %v3047_v23, 0.0 }
 0x250   :  { %v2350_v33 = vmax.f32 %v3049_v58, 0.0  ;;  %2745 = vmatprep.subr.bf16.mxu0 %v2557_v62  ;;  %v2489_v62 = vld [vmem:[#allocation7 + $0x338] sm:$0xff]  ;;  %v2562_v58 = vpack.c.bf16 %v2484_v47, %v2482_v17  ;;  %v2494_v47 = vld [vmem:[#allocation7 + $0x360] sm:$0xff] }
 0x251   :  { %v2351_v25 = vmax.f32 %v3051_v12, 0.0  ;;  %v1605_v30 = vpop.f32.mrb[16].mxu0  ;;  %v4646_v12 = vld [vmem:[#allocation17_spill] sm:$0xff] }
 0x252   :  { %v3052_v41 = vadd.f32 %v1605_v30, %v4463_v60  ;;  %v1607_v38 = vpop.f32.mrb[17].mxu0  ;;  %v2590_v40 = vpack.c.bf16 %v2350_v33, %v2346_v29 }
 0x253   :  { %v3054_v37 = vadd.f32 %v1607_v38, %v4467_v10  ;;  %v1609_v46 = vpop.f32.mrb[18].mxu0  ;;  %v2591_v61 = vpack.c.bf16 %v2351_v25, %v2347_v22  ;;  %2746 = vmatpush1.bf16.msra.mxu0 %v2556_v26  ;;  %v4647_v22 = vld [vmem:[#allocation18_spill] sm:$0xff] }
 0x254   :  { %v3053_v43 = vadd.f32 %v3052_v41, %v4287_v63  ;;  %v3056_v0 = vadd.f32 %v1609_v46, %v4463_v60  ;;  %v1611_v19 = vpop.f32.mrb[19].mxu0  ;;  %2747 = vmatprep.subr.bf16.mxu0 %v2559_v36  ;;  %v2560_v63 = vpack.c.bf16 %v2480_v59, %v2478_v48  ;;  %v2565_v36 = vpack.c.bf16 %v2489_v62, %v2487_v52  ;;  %v4648_v41 = vld [vmem:[#allocation19_spill] sm:$0xff] }
 0x255   :  { %v3055_v51 = vadd.f32 %v3054_v37, %v4643_v27  ;;  %v3058_v28 = vadd.f32 %v1611_v19, %v4467_v10  ;;  %2684 = vmatprep.mubr.bf16.mxu0 %v2591_v61  ;;  %v2564_v46 = vpack.c.bf16 %v2488_v21, %v2486_v49  ;;  %v2492_v19 = vld [vmem:[#allocation7 + $0x350] sm:$0xff]  ;;  %v2495_v27 = vld [vmem:[#allocation7 + $0x368] sm:$0xff]  ;;  %v2505_v21 = vld [vmem:[#allocation7 + $0x3b8] sm:$0xff] }
 0x256   :  { %v3057_v57 = vadd.f32 %v3056_v0, %v4644_v32  ;;  %2685 = vmatmul.mubr.bf16.gmra.mrb[44].mxu0 %v2590_v40  ;;  %v2354_v54 = vmax.f32 %v3053_v43, 0.0  ;;  %v4649_v40 = vld [vmem:[#allocation20_spill] sm:$0xff]  ;;  %v2567_v43 = vpack.c.bf16 %v2493_v8, %v2491_v2  ;;  %v2490_v0 = vld [vmem:[#allocation7 + $0x340] sm:$0xff]  ;;  %v2499_v62 = vld [vmem:[#allocation7 + $0x388] sm:$0xff] }
 0x257   :  { %v3059_v50 = vadd.f32 %v3058_v28, %v4645_v15  ;;  %2748 = vmatpush1.bf16.msra.mxu0 %v2558_v14  ;;  %v2355_v13 = vmax.f32 %v3055_v51, 0.0  ;;  %v2497_v51 = vld [vmem:[#allocation7 + $0x378] sm:$0xff]  ;;  %v2503_v49 = vld [vmem:[#allocation7 + $0x3a8] sm:$0xff] }
 0x258   :  { %v2358_v9 = vmax.f32 %v3057_v57, 0.0  ;;  %2749 = vmatprep.subr.bf16.mxu0 %v2561_v1  ;;  %v2569_v17 = vpack.c.bf16 %v2497_v51, %v2495_v27  ;;  %v2506_v51 = vld [vmem:[#allocation7 + $0x3c0] sm:$0xff] }
 0x259   :  { %v2359_v3 = vmax.f32 %v3059_v50, 0.0  ;;  %v1615_v16 = vpop.f32.mrb[20].mxu0  ;;  %v2566_v50 = vpack.c.bf16 %v2492_v19, %v2490_v0  ;;  %v2507_v0 = vld [vmem:[#allocation7 + $0x3c8] sm:$0xff]  ;;  %v2509_v19 = vld [vmem:[#allocation7 + $0x3d8] sm:$0xff] }
 0x25a   :  { %v3060_v20 = vadd.f32 %v1615_v16, %v4463_v60  ;;  %v1617_v39 = vpop.f32.mrb[21].mxu0  ;;  %v2594_v23 = vpack.c.bf16 %v2358_v9, %v2354_v54  ;;  %v2575_v27 = vpack.c.bf16 %v2509_v19, %v2507_v0 }
 0x25b   :  { %v3062_v6 = vadd.f32 %v1617_v39, %v4467_v10  ;;  %v1619_v11 = vpop.f32.mrb[22].mxu0  ;;  %v2595_v55 = vpack.c.bf16 %v2359_v3, %v2355_v13  ;;  %2750 = vmatpush1.bf16.msra.mxu0 %v2560_v63  ;;  %v4650_v63 = vld [vmem:[#allocation21_spill] sm:$0xff]  ;;  %v2496_v13 = vld [vmem:[#allocation7 + $0x370] sm:$0xff]  ;;  %v4651_v3 = vld [vmem:[#allocation22_spill] sm:$0xff] }
 0x25c   :  { %v3061_v26 = vadd.f32 %v3060_v20, %v4646_v12  ;;  %v3064_v29 = vadd.f32 %v1619_v11, %v4463_v60  ;;  %v1621_v33 = vpop.f32.mrb[23].mxu0  ;;  %2751 = vmatprep.subr.bf16.mxu0 %v2563_v42  ;;  %v2501_v20 = vld [vmem:[#allocation7 + $0x398] sm:$0xff]  ;;  %v2498_v12 = vld [vmem:[#allocation7 + $0x380] sm:$0xff] }
 0x25d   :  { %v3063_v25 = vadd.f32 %v3062_v6, %v4647_v22  ;;  %v3066_v30 = vadd.f32 %v1621_v33, %v4467_v10  ;;  %2694 = vmatprep.mubr.bf16.mxu0 %v2595_v55  ;;  %v2568_v6 = vpack.c.bf16 %v2496_v13, %v2494_v47 }
 0x25e   :  { %v3065_v38 = vadd.f32 %v3064_v29, %v4648_v41  ;;  %2695 = vmatmul.mubr.bf16.gmra.mrb[48].mxu0 %v2594_v23  ;;  %v2362_v61 = vmax.f32 %v3061_v26, 0.0  ;;  %v2500_v26 = vld [vmem:[#allocation7 + $0x390] sm:$0xff] }
 0x25f   :  { %v3067_v37 = vadd.f32 %v3066_v30, %v4649_v40  ;;  %2752 = vmatpush1.bf16.msra.mxu0 %v2562_v58  ;;  %v2363_v1 = vmax.f32 %v3063_v25, 0.0  ;;  %v2571_v58 = vpack.c.bf16 %v2501_v20, %v2499_v62  ;;  %v2570_v8 = vpack.c.bf16 %v2500_v26, %v2498_v12 }
 0x260   :  { %v2366_v14 = vmax.f32 %v3065_v38, 0.0  ;;  %2753 = vmatprep.subr.bf16.mxu0 %v2565_v36 }
 0x261   :  { %v2367_v48 = vmax.f32 %v3067_v37, 0.0  ;;  %v1625_v59 = vpop.f32.mrb[24].mxu0  ;;  %v2573_v37 = vpack.c.bf16 %v2505_v21, %v2503_v49 }
 0x262   :  { %v3068_v28 = vadd.f32 %v1625_v59, %v4463_v60  ;;  %v1627_v53 = vpop.f32.mrb[25].mxu0  ;;  %v2598_v5 = vpack.c.bf16 %v2366_v14, %v2362_v61  ;;  %v2504_v61 = vld [vmem:[#allocation7 + $0x3b0] sm:$0xff] }
 0x263   :  { %v3070_v32 = vadd.f32 %v1627_v53, %v4467_v10  ;;  %v1629_v57 = vpop.f32.mrb[26].mxu0  ;;  %v2599_v15 = vpack.c.bf16 %v2367_v48, %v2363_v1  ;;  %2754 = vmatpush1.bf16.msra.mxu0 %v2564_v46  ;;  %v2502_v46 = vld [vmem:[#allocation7 + $0x3a0] sm:$0xff] }
 0x264   :  { %v3069_v54 = vadd.f32 %v3068_v28, %v4650_v63  ;;  %v3072_v9 = vadd.f32 %v1629_v57, %v4463_v60  ;;  %v1631_v42 = vpop.f32.mrb[27].mxu0  ;;  %2755 = vmatprep.subr.bf16.mxu0 %v2567_v43  ;;  %v2508_v28 = vld [vmem:[#allocation7 + $0x3d0] sm:$0xff] }
 0x265   :  { %v3071_v16 = vadd.f32 %v3070_v32, %v4651_v3  ;;  %v3074_v52 = vadd.f32 %v1631_v42, %v4467_v10  ;;  %2704 = vmatprep.mubr.bf16.mxu0 %v2599_v15  ;;  %v2574_v15 = vpack.c.bf16 %v2508_v28, %v2506_v51 }
 0x266   :  { %v3073_v39 = vadd.f32 %v3072_v9, %v4361_v45  ;;  %2705 = vmatmul.mubr.bf16.gmra.mrb[52].mxu0 %v2598_v5  ;;  %v2370_v11 = vmax.f32 %v3069_v54, 0.0  ;;  %v2511_v5 = vld [vmem:[#allocation7 + $0x3e8] sm:$0xff]  ;;  %v1142_v54 = vsub.s32 2, %v4451_v7  ;;  %v1146_v9 = vsub.s32 3, %v4451_v7 }
 0x267   :  { %v3075_v23 = vadd.f32 %v3074_v52, %v4363_v44  ;;  %2756 = vmatpush1.bf16.msra.mxu0 %v2566_v50  ;;  %v2371_v29 = vmax.f32 %v3071_v16, 0.0  ;;  %v2510_v50 = vld [vmem:[#allocation7 + $0x3e0] sm:$0xff] }
 0x268   :  { %v2374_v55 = vmax.f32 %v3073_v39, 0.0  ;;  %2757 = vmatprep.subr.bf16.mxu0 %v2569_v17  ;;  %v4536_v42 = vrot.slane %v4456_v4, %v1142_v54  ;;  %v4539_v17 = vrot.slane %v4456_v4, %v1146_v9 }
 0x269   :  { %v2375_v33 = vmax.f32 %v3075_v23, 0.0  ;;  %v1635_v36 = vpop.f32.mrb[28].mxu0 }
 0x26a   :  { %v3076_v22 = vadd.f32 %v1635_v36, %v4463_v60  ;;  %v1637_v25 = vpop.f32.mrb[29].mxu0  ;;  %v2602_v45 = vpack.c.bf16 %v2374_v55, %v2370_v11 }
 0x26b   :  { %v3078_v30 = vadd.f32 %v1637_v25, %v4467_v10  ;;  %v1639_v44 = vpop.f32.mrb[30].mxu0  ;;  %v2603_v2 = vpack.c.bf16 %v2375_v33, %v2371_v29  ;;  %2758 = vmatpush1.bf16.msra.mxu0 %v2568_v6 }
 0x26c   :  { %v3077_v41 = vadd.f32 %v3076_v22, %v4372_v31  ;;  %v3080_v38 = vadd.f32 %v1639_v44, %v4463_v60  ;;  %v1641_v40 = vpop.f32.mrb[31].mxu0  ;;  %2759 = vmatprep.subr.bf16.mxu0 %v2571_v58  ;;  %v2572_v31 = vpack.c.bf16 %v2504_v61, %v2502_v46 }
 0x26d   :  { %v3079_v14 = vadd.f32 %v3078_v30, %v4375_v18  ;;  %v3082_v43 = vadd.f32 %v1641_v40, %v4467_v10  ;;  %2714 = vmatprep.mubr.bf16.mxu0 %v2603_v2  ;;  %v2513_v10 = vld [vmem:[#allocation7 + $0x3f8] sm:$0xff] }
 0x26e   :  { %v3081_v1 = vadd.f32 %v3080_v38, %v4387_v56  ;;  %2715 = vmatmul.mubr.bf16.gmra.mrb[56].mxu0 %v2602_v45  ;;  %v2378_v60 = vmax.f32 %v3077_v41, 0.0  ;;  %v2577_v56 = vpack.c.bf16 %v2513_v10, %v2511_v5 }
 0x26f   :  { %v3083_v48 = vadd.f32 %v3082_v43, %v4393_v24  ;;  %2760 = vmatpush1.bf16.msra.mxu0 %v2570_v8  ;;  %v2379_v53 = vmax.f32 %v3079_v14, 0.0  ;;  %v2512_v24 = vld [vmem:[#allocation7 + $0x3f0] sm:$0xff] }
 0x270   :  { %v2382_v59 = vmax.f32 %v3081_v1, 0.0  ;;  %2761 = vmatprep.subr.bf16.mxu0 %v2573_v37  ;;  %v2576_v63 = vpack.c.bf16 %v2512_v24, %v2510_v50 }
 0x271   :  { %v2383_v18 = vmax.f32 %v3083_v48, 0.0 }
 0x272   :  { %v2606_v32 = vpack.c.bf16 %v2382_v59, %v2378_v60 }
 0x273   :  { %v2607_v57 = vpack.c.bf16 %v2383_v18, %v2379_v53  ;;  %2762 = vmatpush1.bf16.msra.mxu0 %v2572_v31 }
 0x274   :  { %2763 = vmatprep.subr.bf16.mxu0 %v2575_v27 }
 0x275   :  { %2724 = vmatprep.mubr.bf16.mxu0 %v2607_v57 }
 0x276   :  { %2725 = vmatmul.mubr.bf16.gmra.mrb[60].mxu0 %v2606_v32 }
 0x277   :  { %2764 = vmatpush1.bf16.msra.mxu0 %v2574_v15 }
 0x278   :  { %2765 = vmatprep.subr.bf16.mxu0 %v2577_v56 }
 0x27b   :  { %2766 = vmatpush1.bf16.msra.mxu0 %v2576_v63 }
 0x287   :  { %v2243_v47 = vpop.f32.mrb[32].mxu1 }
 0x288   :  { %v3084_v13 = vadd.f32 %v2243_v47, %v4536_v42  ;;  %v2245_v3 = vpop.f32.mrb[33].mxu1 }
 0x289   :  { %v3085_v16 = vadd.f32 %v2245_v3, %v4539_v17  ;;  %v2247_v52 = vpop.f32.mrb[34].mxu1 }
 0x28a   :  { %v3086_v62 = vadd.f32 %v2247_v52, %v4536_v42  ;;  %v2249_v20 = vpop.f32.mrb[35].mxu1  ;;  %v2324_v23 = vmax.f32 %v3084_v13, 0.0 }
 0x28b   :  { %v3087_v39 = vadd.f32 %v2249_v20, %v4539_v17  ;;  %v2325_v6 = vmax.f32 %v3085_v16, 0.0 }
 0x28c   :  { %v2328_v7 = vmax.f32 %v3086_v62, 0.0 }
 0x28d   :  { %v2329_v11 = vmax.f32 %v3087_v39, 0.0 }
 0x28e   :  { %v2580_v55 = vpack.c.bf16 %v2328_v7, %v2324_v23 }
 0x28f   :  { %v2581_v58 = vpack.c.bf16 %v2329_v11, %v2325_v6  ;;  %v2253_v4 = vpop.f32.mrb[36].mxu1 }
 0x290   :  { %v3088_v12 = vadd.f32 %v2253_v4, %v4536_v42  ;;  %v2255_v26 = vpop.f32.mrb[37].mxu1 }
 0x291   :  { %v3089_v29 = vadd.f32 %v2255_v26, %v4539_v17  ;;  %v2257_v33 = vpop.f32.mrb[38].mxu1  ;;  %2767 = vmatprep.mubr.bf16.mxu0 %v2581_v58 }
 0x292   :  { %v3090_v36 = vadd.f32 %v2257_v33, %v4536_v42  ;;  %v2259_v49 = vpop.f32.mrb[39].mxu1  ;;  %2768 = vmatmul.mubr.bf16.vlgmr.msra.gmra.mrb[32].mxu0 %v2580_v55  ;;  %v2332_v22 = vmax.f32 %v3088_v12, 0.0 }
 0x293   :  { %v3091_v21 = vadd.f32 %v2259_v49, %v4539_v17  ;;  %v2333_v45 = vmax.f32 %v3089_v29, 0.0 }
 0x294   :  { %v2336_v25 = vmax.f32 %v3090_v36, 0.0 }
 0x295   :  { %v2337_v30 = vmax.f32 %v3091_v21, 0.0 }
 0x296   :  { %v2584_v44 = vpack.c.bf16 %v2336_v25, %v2332_v22 }
 0x297   :  { %v2585_v2 = vpack.c.bf16 %v2337_v30, %v2333_v45  ;;  %v2263_v8 = vpop.f32.mrb[40].mxu1 }
 0x298   :  { %v3092_v41 = vadd.f32 %v2263_v8, %v4536_v42  ;;  %v2265_v38 = vpop.f32.mrb[41].mxu1 }
 0x299   :  { %v3093_v40 = vadd.f32 %v2265_v38, %v4539_v17  ;;  %v2267_v37 = vpop.f32.mrb[42].mxu1  ;;  %2777 = vmatprep.mubr.bf16.mxu0 %v2585_v2 }
 0x29a   :  { %v3094_v46 = vadd.f32 %v2267_v37, %v4536_v42  ;;  %v2269_v61 = vpop.f32.mrb[43].mxu1  ;;  %2778 = vmatmul.mubr.bf16.gmra.mrb[36].mxu0 %v2584_v44  ;;  %v2340_v43 = vmax.f32 %v3092_v41, 0.0 }
 0x29b   :  { %v3095_v14 = vadd.f32 %v2269_v61, %v4539_v17  ;;  %v2341_v19 = vmax.f32 %v3093_v40, 0.0 }
 0x29c   :  { %v2344_v0 = vmax.f32 %v3094_v46, 0.0 }
 0x29d   :  { %v2345_v1 = vmax.f32 %v3095_v14, 0.0 }
 0x29e   :  { %v2588_v48 = vpack.c.bf16 %v2344_v0, %v2340_v43 }
 0x29f   :  { %v2589_v31 = vpack.c.bf16 %v2345_v1, %v2341_v19  ;;  %v2273_v60 = vpop.f32.mrb[44].mxu1 }
 0x2a0   :  { %v3096_v59 = vadd.f32 %v2273_v60, %v4536_v42  ;;  %v2275_v27 = vpop.f32.mrb[45].mxu1 }
 0x2a1   :  { %v3097_v51 = vadd.f32 %v2275_v27, %v4539_v17  ;;  %v2277_v28 = vpop.f32.mrb[46].mxu1  ;;  %2787 = vmatprep.mubr.bf16.mxu0 %v2589_v31 }
 0x2a2   :  { %v3098_v53 = vadd.f32 %v2277_v28, %v4536_v42  ;;  %v2279_v18 = vpop.f32.mrb[47].mxu1  ;;  %2788 = vmatmul.mubr.bf16.gmra.mrb[40].mxu0 %v2588_v48  ;;  %v2348_v10 = vmax.f32 %v3096_v59, 0.0 }
 0x2a3   :  { %v3099_v5 = vadd.f32 %v2279_v18, %v4539_v17  ;;  %v2349_v57 = vmax.f32 %v3097_v51, 0.0 }
 0x2a4   :  { %v2352_v32 = vmax.f32 %v3098_v53, 0.0 }
 0x2a5   :  { %v2353_v15 = vmax.f32 %v3099_v5, 0.0 }
 0x2a6   :  { %v2592_v56 = vpack.c.bf16 %v2352_v32, %v2348_v10 }
 0x2a7   :  { %v2593_v50 = vpack.c.bf16 %v2353_v15, %v2349_v57  ;;  %v2283_v24 = vpop.f32.mrb[48].mxu1  ;;  %v4573_v57 = vld [vmem:[#allocation10] sm:$0x3] }
 0x2a8   :  { %v3100_v63 = vadd.f32 %v2283_v24, %v4536_v42  ;;  %v2285_v54 = vpop.f32.mrb[49].mxu1  ;;  %v2891_v15 = vrot.slane %v4573_v57, %v4459_v34 }
 0x2a9   :  { %v3101_v9 = vadd.f32 %v2285_v54, %v4539_v17  ;;  %v2287_v47 = vpop.f32.mrb[50].mxu1  ;;  %2797 = vmatprep.mubr.bf16.mxu0 %v2593_v50 }
 0x2aa   :  { %v3102_v13 = vadd.f32 %v2287_v47, %v4536_v42  ;;  %v2289_v3 = vpop.f32.mrb[51].mxu1  ;;  %2798 = vmatmul.mubr.bf16.gmra.mrb[44].mxu0 %v2592_v56  ;;  %v2356_v52 = vmax.f32 %v3100_v63, 0.0  ;;  %2958 = vmatprep.mubr.f32.mxu1 %v2891_v15  ;;  %v2610_v56 = vld [vmem:[#allocation8] sm:$0x3] }
 0x2ab   :  { %v3103_v16 = vadd.f32 %v2289_v3, %v4539_v17  ;;  %v2357_v20 = vmax.f32 %v3101_v9, 0.0 }
 0x2ac   :  { %v2360_v62 = vmax.f32 %v3102_v13, 0.0 }
 0x2ad   :  { %v2361_v39 = vmax.f32 %v3103_v16, 0.0 }
 0x2ae   :  { %v2596_v23 = vpack.c.bf16 %v2360_v62, %v2356_v52 }
 0x2af   :  { %v2597_v7 = vpack.c.bf16 %v2361_v39, %v2357_v20  ;;  %v2293_v6 = vpop.f32.mrb[52].mxu1 }
 0x2b0   :  { %v3104_v11 = vadd.f32 %v2293_v6, %v4536_v42  ;;  %v2295_v55 = vpop.f32.mrb[53].mxu1 }
 0x2b1   :  { %v3105_v58 = vadd.f32 %v2295_v55, %v4539_v17  ;;  %v2297_v4 = vpop.f32.mrb[54].mxu1  ;;  %2807 = vmatprep.mubr.bf16.mxu0 %v2597_v7 }
 0x2b2   :  { %v3106_v12 = vadd.f32 %v2297_v4, %v4536_v42  ;;  %v2299_v26 = vpop.f32.mrb[55].mxu1  ;;  %2808 = vmatmul.mubr.bf16.gmra.mrb[48].mxu0 %v2596_v23  ;;  %v2364_v33 = vmax.f32 %v3104_v11, 0.0 }
 0x2b3   :  { %v3107_v29 = vadd.f32 %v2299_v26, %v4539_v17  ;;  %v2365_v49 = vmax.f32 %v3105_v58, 0.0 }
 0x2b4   :  { %v2368_v36 = vmax.f32 %v3106_v12, 0.0 }
 0x2b5   :  { %v2369_v21 = vmax.f32 %v3107_v29, 0.0 }
 0x2b6   :  { %v2600_v22 = vpack.c.bf16 %v2368_v36, %v2364_v33 }
 0x2b7   :  { %v2601_v25 = vpack.c.bf16 %v2369_v21, %v2365_v49  ;;  %v2303_v45 = vpop.f32.mrb[56].mxu1 }
 0x2b8   :  { %v3108_v30 = vadd.f32 %v2303_v45, %v4536_v42  ;;  %v2305_v44 = vpop.f32.mrb[57].mxu1 }
 0x2b9   :  { %v3109_v2 = vadd.f32 %v2305_v44, %v4539_v17  ;;  %v2307_v8 = vpop.f32.mrb[58].mxu1  ;;  %2817 = vmatprep.mubr.bf16.mxu0 %v2601_v25 }
 0x2ba   :  { %v3110_v41 = vadd.f32 %v2307_v8, %v4536_v42  ;;  %v2309_v38 = vpop.f32.mrb[59].mxu1  ;;  %2818 = vmatmul.mubr.bf16.gmra.mrb[52].mxu0 %v2600_v22  ;;  %v2372_v37 = vmax.f32 %v3108_v30, 0.0 }
 0x2bb   :  { %v3111_v40 = vadd.f32 %v2309_v38, %v4539_v17  ;;  %v2373_v61 = vmax.f32 %v3109_v2, 0.0 }
 0x2bc   :  { %v2376_v46 = vmax.f32 %v3110_v41, 0.0 }
 0x2bd   :  { %v2377_v14 = vmax.f32 %v3111_v40, 0.0 }
 0x2be   :  { %v2604_v43 = vpack.c.bf16 %v2376_v46, %v2372_v37 }
 0x2bf   :  { %v2605_v0 = vpack.c.bf16 %v2377_v14, %v2373_v61  ;;  %v2313_v19 = vpop.f32.mrb[60].mxu1 }
 0x2c0   :  { %v3112_v1 = vadd.f32 %v2313_v19, %v4536_v42  ;;  %v2315_v48 = vpop.f32.mrb[61].mxu1 }
 0x2c1   :  { %v3113_v31 = vadd.f32 %v2315_v48, %v4539_v17  ;;  %v2317_v60 = vpop.f32.mrb[62].mxu1  ;;  %2827 = vmatprep.mubr.bf16.mxu0 %v2605_v0 }
 0x2c2   :  { %v3114_v59 = vadd.f32 %v2317_v60, %v4536_v42  ;;  %v2319_v27 = vpop.f32.mrb[63].mxu1  ;;  %2828 = vmatmul.mubr.bf16.gmra.mrb[56].mxu0 %v2604_v43  ;;  %v2380_v28 = vmax.f32 %v3112_v1, 0.0  ;;  %v4578_v42 = vrot.slane %v2610_v56, %v4454_v35 }
 0x2c3   :  { %v3115_v51 = vadd.f32 %v2319_v27, %v4539_v17  ;;  %v2381_v18 = vmax.f32 %v3113_v31, 0.0  ;;  %v4581_v17 = vrot.slane %v2610_v56, %v4459_v34 }
 0x2c4   :  { %v2384_v53 = vmax.f32 %v3114_v59, 0.0 }
 0x2c5   :  { %v2385_v5 = vmax.f32 %v3115_v51, 0.0 }
 0x2c6   :  { %v2608_v10 = vpack.c.bf16 %v2384_v53, %v2380_v28 }
 0x2c7   :  { %v2609_v32 = vpack.c.bf16 %v2385_v5, %v2381_v18 }
 0x2c9   :  { %2837 = vmatprep.mubr.bf16.mxu0 %v2609_v32 }
 0x2ca   :  { %2838 = vmatmul.mubr.bf16.gmra.mrb[60].mxu0 %v2608_v10 }
 0x365   :  { %v2769_v50 = vpop.f32.mrb[32].mxu0 }
 0x366   :  { %v3116_v24 = vadd.f32 %v2769_v50, %v4578_v42  ;;  %v2771_v63 = vpop.f32.mrb[33].mxu0 }
 0x367   :  { %v3117_v54 = vadd.f32 %v2771_v63, %v4581_v17  ;;  %v2773_v9 = vpop.f32.mrb[34].mxu0 }
 0x368   :  { %v3118_v47 = vadd.f32 %v2773_v9, %v4578_v42  ;;  %v2775_v13 = vpop.f32.mrb[35].mxu0  ;;  %v2848_v16 = vmax.f32 %v3116_v24, 0.0 }
 0x369   :  { %v3119_v3 = vadd.f32 %v2775_v13, %v4581_v17  ;;  %v2849_v62 = vmax.f32 %v3117_v54, 0.0 }
 0x36a   :  { %v2850_v52 = vmax.f32 %v3118_v47, 0.0 }
 0x36b   :  { %v2851_v20 = vmax.f32 %v3119_v3, 0.0 }
 0x36c   :  { %v2990_v39 = vpack.c.bf16 %v2850_v52, %v2848_v16 }
 0x36d   :  { %v2988_v23 = vpack.c.bf16 %v2851_v20, %v2849_v62  ;;  %v2779_v34 = vpop.f32.mrb[36].mxu0 }
 0x36e   :  { %v3120_v7 = vadd.f32 %v2779_v34, %v4578_v42  ;;  %v2781_v6 = vpop.f32.mrb[37].mxu0 }
 0x36f   :  { %v3121_v11 = vadd.f32 %v2781_v6, %v4581_v17  ;;  %v2783_v55 = vpop.f32.mrb[38].mxu0  ;;  %2989 = vmatprep.subr.bf16.mxu1 %v2988_v23 }
 0x370   :  { %v3122_v58 = vadd.f32 %v2783_v55, %v4578_v42  ;;  %v2785_v4 = vpop.f32.mrb[39].mxu0  ;;  %2991 = vmatpush1.bf16.xpose.msra.mxu1 %v2990_v39  ;;  %v2852_v26 = vmax.f32 %v3120_v7, 0.0 }
 0x371   :  { %v3123_v12 = vadd.f32 %v2785_v4, %v4581_v17  ;;  %v2853_v33 = vmax.f32 %v3121_v11, 0.0 }
 0x372   :  { %v2854_v29 = vmax.f32 %v3122_v58, 0.0 }
 0x373   :  { %v2855_v36 = vmax.f32 %v3123_v12, 0.0 }
 0x374   :  { %v2994_v49 = vpack.c.bf16 %v2854_v29, %v2852_v26 }
 0x375   :  { %v2992_v21 = vpack.c.bf16 %v2855_v36, %v2853_v33  ;;  %v2789_v22 = vpop.f32.mrb[40].mxu0 }
 0x376   :  { %v3124_v25 = vadd.f32 %v2789_v22, %v4578_v42  ;;  %v2791_v45 = vpop.f32.mrb[41].mxu0 }
 0x377   :  { %v3125_v30 = vadd.f32 %v2791_v45, %v4581_v17  ;;  %v2793_v44 = vpop.f32.mrb[42].mxu0  ;;  %2993 = vmatprep.subr.bf16.mxu1 %v2992_v21 }
 0x378   :  { %v3126_v2 = vadd.f32 %v2793_v44, %v4578_v42  ;;  %v2795_v8 = vpop.f32.mrb[43].mxu0  ;;  %2995 = vmatpush1.bf16.xpose.msra.mxu1 %v2994_v49  ;;  %v2856_v38 = vmax.f32 %v3124_v25, 0.0 }
 0x379   :  { %v3127_v41 = vadd.f32 %v2795_v8, %v4581_v17  ;;  %v2857_v37 = vmax.f32 %v3125_v30, 0.0 }
 0x37a   :  { %v2858_v40 = vmax.f32 %v3126_v2, 0.0 }
 0x37b   :  { %v2859_v46 = vmax.f32 %v3127_v41, 0.0 }
 0x37c   :  { %v2998_v61 = vpack.c.bf16 %v2858_v40, %v2856_v38 }
 0x37d   :  { %v2996_v14 = vpack.c.bf16 %v2859_v46, %v2857_v37  ;;  %v2799_v43 = vpop.f32.mrb[44].mxu0 }
 0x37e   :  { %v3128_v0 = vadd.f32 %v2799_v43, %v4578_v42  ;;  %v2801_v19 = vpop.f32.mrb[45].mxu0 }
 0x37f   :  { %v3129_v1 = vadd.f32 %v2801_v19, %v4581_v17  ;;  %v2803_v48 = vpop.f32.mrb[46].mxu0  ;;  %2997 = vmatprep.subr.bf16.mxu1 %v2996_v14 }
 0x380   :  { %v3130_v31 = vadd.f32 %v2803_v48, %v4578_v42  ;;  %v2805_v60 = vpop.f32.mrb[47].mxu0  ;;  %2999 = vmatpush1.bf16.xpose.msra.mxu1 %v2998_v61  ;;  %v2860_v27 = vmax.f32 %v3128_v0, 0.0 }
 0x381   :  { %v3131_v59 = vadd.f32 %v2805_v60, %v4581_v17  ;;  %v2861_v28 = vmax.f32 %v3129_v1, 0.0 }
 0x382   :  { %v2862_v51 = vmax.f32 %v3130_v31, 0.0 }
 0x383   :  { %v2863_v53 = vmax.f32 %v3131_v59, 0.0 }
 0x384   :  { %v3002_v18 = vpack.c.bf16 %v2862_v51, %v2860_v27 }
 0x385   :  { %v3000_v5 = vpack.c.bf16 %v2863_v53, %v2861_v28  ;;  %v2809_v10 = vpop.f32.mrb[48].mxu0  ;;  %v2887_v28 = vrot.slane %v4573_v57, %v4454_v35 }
 0x386   :  { %v3132_v32 = vadd.f32 %v2809_v10, %v4578_v42  ;;  %v2811_v15 = vpop.f32.mrb[49].mxu0 }
 0x387   :  { %v3133_v56 = vadd.f32 %v2811_v15, %v4581_v17  ;;  %v2813_v50 = vpop.f32.mrb[50].mxu0  ;;  %3001 = vmatprep.subr.bf16.mxu1 %v3000_v5 }
 0x388   :  { %v3134_v24 = vadd.f32 %v2813_v50, %v4578_v42  ;;  %v2815_v63 = vpop.f32.mrb[51].mxu0  ;;  %3003 = vmatpush1.bf16.xpose.msra.mxu1 %v3002_v18  ;;  %v2864_v9 = vmax.f32 %v3132_v32, 0.0 }
 0x389   :  { %v3135_v54 = vadd.f32 %v2815_v63, %v4581_v17  ;;  %v2865_v13 = vmax.f32 %v3133_v56, 0.0 }
 0x38a   :  { %v2866_v47 = vmax.f32 %v3134_v24, 0.0 }
 0x38b   :  { %v2867_v3 = vmax.f32 %v3135_v54, 0.0 }
 0x38c   :  { %v3006_v16 = vpack.c.bf16 %v2866_v47, %v2864_v9 }
 0x38d   :  { %v3004_v52 = vpack.c.bf16 %v2867_v3, %v2865_v13  ;;  %v2819_v62 = vpop.f32.mrb[52].mxu0 }
 0x38e   :  { %v3136_v20 = vadd.f32 %v2819_v62, %v4578_v42  ;;  %v2821_v39 = vpop.f32.mrb[53].mxu0 }
 0x38f   :  { %v3137_v23 = vadd.f32 %v2821_v39, %v4581_v17  ;;  %v2823_v34 = vpop.f32.mrb[54].mxu0  ;;  %3005 = vmatprep.subr.bf16.mxu1 %v3004_v52 }
 0x390   :  { %v3138_v7 = vadd.f32 %v2823_v34, %v4578_v42  ;;  %v2825_v6 = vpop.f32.mrb[55].mxu0  ;;  %3007 = vmatpush1.bf16.xpose.msra.mxu1 %v3006_v16  ;;  %v2868_v55 = vmax.f32 %v3136_v20, 0.0 }
 0x391   :  { %v3139_v11 = vadd.f32 %v2825_v6, %v4581_v17  ;;  %v2869_v4 = vmax.f32 %v3137_v23, 0.0 }
 0x392   :  { %v2870_v58 = vmax.f32 %v3138_v7, 0.0 }
 0x393   :  { %v2871_v12 = vmax.f32 %v3139_v11, 0.0 }
 0x394   :  { %v3010_v26 = vpack.c.bf16 %v2870_v58, %v2868_v55 }
 0x395   :  { %v3008_v29 = vpack.c.bf16 %v2871_v12, %v2869_v4  ;;  %v2829_v33 = vpop.f32.mrb[56].mxu0 }
 0x396   :  { %v3140_v36 = vadd.f32 %v2829_v33, %v4578_v42  ;;  %v2831_v49 = vpop.f32.mrb[57].mxu0 }
 0x397   :  { %v3141_v21 = vadd.f32 %v2831_v49, %v4581_v17  ;;  %v2833_v22 = vpop.f32.mrb[58].mxu0  ;;  %3009 = vmatprep.subr.bf16.mxu1 %v3008_v29 }
 0x398   :  { %v3142_v25 = vadd.f32 %v2833_v22, %v4578_v42  ;;  %v2835_v45 = vpop.f32.mrb[59].mxu0  ;;  %3011 = vmatpush1.bf16.xpose.msra.mxu1 %v3010_v26  ;;  %v2872_v44 = vmax.f32 %v3140_v36, 0.0 }
 0x399   :  { %v3143_v30 = vadd.f32 %v2835_v45, %v4581_v17  ;;  %v2873_v8 = vmax.f32 %v3141_v21, 0.0 }
 0x39a   :  { %v2874_v2 = vmax.f32 %v3142_v25, 0.0 }
 0x39b   :  { %v2875_v41 = vmax.f32 %v3143_v30, 0.0 }
 0x39c   :  { %v3014_v38 = vpack.c.bf16 %v2874_v2, %v2872_v44 }
 0x39d   :  { %v3012_v40 = vpack.c.bf16 %v2875_v41, %v2873_v8  ;;  %v2839_v37 = vpop.f32.mrb[60].mxu0 }
 0x39e   :  { %v3144_v46 = vadd.f32 %v2839_v37, %v4578_v42  ;;  %v2841_v61 = vpop.f32.mrb[61].mxu0 }
 0x39f   :  { %v3145_v14 = vadd.f32 %v2841_v61, %v4581_v17  ;;  %v2843_v43 = vpop.f32.mrb[62].mxu0  ;;  %3013 = vmatprep.subr.bf16.mxu1 %v3012_v40 }
 0x3a0   :  { %v3146_v0 = vadd.f32 %v2843_v43, %v4578_v42  ;;  %v2845_v19 = vpop.f32.mrb[63].mxu0  ;;  %3015 = vmatpush1.bf16.xpose.msra.mxu1 %v3014_v38  ;;  %v2876_v48 = vmax.f32 %v3144_v46, 0.0  ;;  %v2882_v42 = vstv %s4629_s6 }
 0x3a1   :  { %v3147_v1 = vadd.f32 %v2845_v19, %v4581_v17  ;;  %v2877_v60 = vmax.f32 %v3145_v14, 0.0 }
 0x3a2   :  { %v2878_v31 = vmax.f32 %v3146_v0, 0.0 }
 0x3a3   :  { %v2879_v59 = vmax.f32 %v3147_v1, 0.0 }
 0x3a4   :  { %v3018_v27 = vpack.c.bf16 %v2878_v31, %v2876_v48 }
 0x3a5   :  { %v3016_v51 = vpack.c.bf16 %v2879_v59, %v2877_v60 }
 0x3a7   :  { %3017 = vmatprep.subr.bf16.mxu1 %v3016_v51 }
 0x3a8   :  { %3019 = vmatpush1.bf16.xpose.msra.mxu1 %v3018_v27 }
 0x3af   :  { %2959 = vmatmul.mubr.f32.vlgmr.msra.gmra.mrb[64].mxu1 %v2887_v28 }
 0x482   :  { %v2960_v53 = vpop.f32.mrb[64].mxu1 }
 0x483   :  { %v2961_v18 = vadd.f32 %v2960_v53, %v2882_v42  ;;  %v2962_v5 = vpop.f32.mrb[65].mxu1 }
 0x485   :  { %2964 = vst [vmem:[%s4630_s7] sm:$0x1] %v2961_v18 }
 0x486   :  { %2969 = vsyncpa [#allocation4], 1 }
 0x487   :  { %2970 = vsyncpa [#allocation6], 1 }
 0x488   :  { %2971 = vsyncpa [#allocation9], 1 }

</bundles_post_ra>
